<compile_context>
chip_gen: v7x
topology: tpu7x:2x2x1
jax: 0.10.0
libtpu: 0.0.40
codegen_flags: <defaults>
</compile_context>

<pallas_src>
import math

import jax
import jax.numpy as jnp
from jax.experimental import pallas as pl
from jax.experimental.pallas import tpu as pltpu

LRELU_SLOPE = 0.1
# MXU-native compute dtype (v5e/v6e/v7x); accumulation is always f32.
COMPUTE_DTYPE = jnp.bfloat16

PERIODS = [2, 3, 5, 7, 11]
MPD_CHANNELS = [32, 128, 512, 1024, 1024]
MPD_STRIDES = [1, 2, 2, 2, 2]

MSD_CHANNELS = [128, 128, 256, 512, 1024, 1024, 1024]
MSD_KERNELS = [15, 3, 3, 3, 3, 3, 3]
MSD_STRIDES = [1, 2, 2, 4, 4, 1, 1]
MSD_PADDINGS = [7, 6, 6, 18, 18, 0, 0]

LANE_TILE = 512                      # output-length lane tile (multiple of 128)
VMEM_LIMIT = 48 * 1024 * 1024        # explicit scoped-VMEM budget (fits v7x's 64 MiB)


def _round_up(x, m):
    return (x + m - 1) // m * m


# ----------------------------- Pallas kernel ---------------------------------
def _make_conv_kernel(K, stride, Lt, n_l, cin_is_one, with_act):
    """Direct (im2col-free) conv producing one (tile_co, Lt) output tile.

    w_ref : (K, tile_co, Cin)     k-major weights
    x_ref : (1, stride, Cin, Lq)  phase-split, zero-padded input row (full extent)
    b_ref : (tile_co, 1)          f32 bias
    o_ref : (1, tile_co, Lt)      pre-activation (f32)
    a_ref : (1, tile_co, Lt)      LeakyReLU(0.1) output (f32), only if with_act
    """

    def accumulate(w_ref, x_ref, b_ref, o_ref):
        if n_l == 1:
            t0 = 0                                        # fully static slices
        else:
            t0 = pl.multiple_of(pl.program_id(2) * Lt, 128)
        for k in range(K):
            q, r = divmod(k, stride)                      # x_pad[s*t + k] == ph[r, t + q]
            xw = x_ref[0, r, :, pl.ds(t0 + q, Lt)]        # (Cin, Lt)
            wk = w_ref[k]                                 # (tile_co, Cin)
            if cin_is_one:
                # Cin == 1: keep it off the MXU — VPU broadcast-FMA.
                term = wk.astype(jnp.float32) * xw.astype(jnp.float32)
            else:
                term = jnp.dot(wk, xw, preferred_element_type=jnp.float32)
            if k == 0:
                o_ref[0] = term + b_ref[...]
            else:
                o_ref[0] += term

    if with_act:
        def kernel(w_ref, x_ref, b_ref, o_ref, a_ref):
            accumulate(w_ref, x_ref, b_ref, o_ref)
            y = o_ref[0]
            a_ref[0] = jnp.where(y > 0.0, y, LRELU_SLOPE * y)
    else:
        def kernel(w_ref, x_ref, b_ref, o_ref):
            accumulate(w_ref, x_ref, b_ref, o_ref)
    return kernel


def conv1d_pallas(x, w, b, stride, padding, with_act=True):
    """torch.nn.Conv1d(stride, zero padding) on (N, Cin, L) + optional fused LeakyReLU.

    Returns (pre, act) if with_act else pre; outputs are (N, Cout, Lout) float32.
    """
    N, Cin, L = x.shape
    Cout, Cin_w, K = w.shape
    assert Cin_w == Cin
    Lout = (L + 2 * padding - K) // stride + 1
    assert Lout >= 1

    # ---- tiling ----
    tile_co = Cout if Cout < 128 else 128
    assert Cout % tile_co == 0
    n_co = Cout // tile_co
    if Lout > LANE_TILE:
        Lt = LANE_TILE
        n_l = (Lout + Lt - 1) // Lt
    else:
        Lt = Lout                      # single full-extent lane block (always legal)
        n_l = 1
    Kq = -(-K // stride)               # taps per phase
    Lq = _round_up(n_l * Lt + Kq - 1, 128)

    # ---- layout glue (addressing only; 1x input traffic, no K-fold im2col) ----
    total = stride * Lq
    right = total - (L + padding)
    assert right >= 0
    xp = jnp.pad(x.astype(COMPUTE_DTYPE), ((0, 0), (0, 0), (padding, right)))
    # phase split: xph[n, r, c, u] = x_padded[n, c, stride*u + r]
    xph = jnp.transpose(xp.reshape(N, Cin, Lq, stride), (0, 3, 1, 2))
    wkm = jnp.transpose(w.astype(COMPUTE_DTYPE), (2, 0, 1))        # (K, Cout, Cin)
    bcol = b.reshape(Cout, 1).astype(jnp.float32)
    # TODO(synk): for very long inputs, window the activation row with halo blocks
    # instead of keeping the full padded row resident in VMEM.

    # ---- grid order: keep the larger of {weights, activations} outer-stable ----
    w_elems = Cout * Cin * K
    x_elems = N * stride * Cin * Lq
    weights_outer = (n_co - 1) * x_elems <= (N - 1) * w_elems
    if weights_outer:
        grid = (n_co, N, n_l)          # weight tile DMA'd once per co tile
        w_map = lambda c, n, l: (0, c, 0)
        x_map = lambda c, n, l: (n, 0, 0, 0)
        b_map = lambda c, n, l: (c, 0)
        o_map = lambda c, n, l: (n, c, l)
    else:
        grid = (N, n_co, n_l)          # activation row DMA'd once per batch item
        w_map = lambda n, c, l: (0, c, 0)
        x_map = lambda n, c, l: (n, 0, 0, 0)
        b_map = lambda n, c, l: (c, 0)
        o_map = lambda n, c, l: (n, c, l)

    out_sds = jax.ShapeDtypeStruct((N, Cout, Lout), jnp.float32)
    o_spec = pl.BlockSpec((1, tile_co, Lt), o_map)
    kernel = _make_conv_kernel(K, stride, Lt, n_l, Cin == 1, with_act)

    return pl.pallas_call(
        kernel,
        out_shape=(out_sds, out_sds) if with_act else out_sds,
        grid=grid,
        in_specs=[
            pl.BlockSpec((K, tile_co, Cin), w_map),
            pl.BlockSpec((1, stride, Cin, Lq), x_map),
            pl.BlockSpec((tile_co, 1), b_map),
        ],
        out_specs=(o_spec, o_spec) if with_act else o_spec,
        compiler_params=pltpu.CompilerParams(
            dimension_semantics=("parallel", "parallel", "parallel"),
            vmem_limit_bytes=VMEM_LIMIT,
        ),
    )(wkm, xph, bcol)


def avg_pool1d_pallas(x):
    # nn.AvgPool1d(4, 2, padding=2), count_include_pad=True == conv1d with 1/4 weights.
    # Cin==1 => VPU path, no im2col, no unused activation output.
    w = jnp.full((1, 1, 4), 0.25, jnp.float32)
    b = jnp.zeros((1,), jnp.float32)
    return conv1d_pallas(x, w, b, stride=2, padding=2, with_act=False)


# --------------------------- discriminator forward ---------------------------
def period_disc_forward(params, x, period):
    """x: (B, 1, T). Returns feature list matching the PyTorch module order."""
    B, C, T = x.shape
    if T % period != 0:
        pad_len = period - T % period
        x = jnp.pad(x, ((0, 0), (0, 0), (0, pad_len)), mode="reflect")
        T = T + pad_len
    H = T // period
    x4 = x.reshape(B, C, H, period)                        # NCHW (W = period)
    cur = jnp.transpose(x4, (0, 3, 1, 2)).reshape(B * period, C, H)

    def to_nchw(t):                                        # (B*P, c, l) -> (B, c, l, P)
        n, c, l = t.shape
        return jnp.transpose(t.reshape(B, period, c, l), (0, 2, 3, 1))

    features = []
    for (w, b), st in zip(params["convs"], MPD_STRIDES):
        pre, act = conv1d_pallas(cur, w, b, stride=st, padding=2)
        features.append(to_nchw(pre))    # Conv2d layer output
        features.append(to_nchw(act))    # LeakyReLU layer output
        cur = act
    w, b = params["final"]
    pre = conv1d_pallas(cur, w, b, stride=1, padding=1, with_act=False)
    last = to_nchw(pre)
    features.append(last)
    features.append(last.reshape(B, -1))                   # torch.flatten(x, 1, -1)
    return features


def scale_disc_forward(params, x):
    features = []
    cur = x
    for (w, b), st, pd in zip(params["convs"], MSD_STRIDES, MSD_PADDINGS):
        pre, act = conv1d_pallas(cur, w, b, stride=st, padding=pd)
        features.append(pre)             # Conv1d layer output
        features.append(act)             # LeakyReLU layer output
        cur = act
    w, b = params["final"]
    features.append(conv1d_pallas(cur, w, b, stride=1, padding=1, with_act=False))
    return features


def hifigan_disc_forward(params, x):
    mpd_outs = [
        period_disc_forward(p, x, per) for p, per in zip(params["mpd"], PERIODS)
    ]
    msd_outs = []
    cur = x
    for i, sp in enumerate(params["msd"]):
        if i > 0:
            cur = avg_pool1d_pallas(cur)
        msd_outs.append(scale_disc_forward(sp, cur))
    return mpd_outs, msd_outs


# ------------------------------ parameter init --------------------------------
def _init_conv(key, cout, cin, k):
    kw, kb = jax.random.split(key)
    bound = 1.0 / math.sqrt(cin * k)            # PyTorch default Conv init bound
    w = jax.random.uniform(kw, (cout, cin, k), jnp.float32, -bound, bound)
    b = jax.random.uniform(kb, (cout,), jnp.float32, -bound, bound)
    return w, b


def init_params(key):
    k_mpd, k_msd = jax.random.split(key)
    mpd = []
    for kp in jax.random.split(k_mpd, len(PERIODS)):
        ks = jax.random.split(kp, len(MPD_CHANNELS) + 1)
        convs, in_ch = [], 1
        for ch, kk in zip(MPD_CHANNELS, ks[:-1]):
            convs.append(_init_conv(kk, ch, in_ch, 5))     # Conv2d (k,1) squeezed
            in_ch = ch
        mpd.append({"convs": convs, "final": _init_conv(ks[-1], 1, in_ch, 3)})
    msd = []
    for km in jax.random.split(k_msd, 3):
        ks = jax.random.split(km, len(MSD_CHANNELS) + 1)
        convs, in_ch = [], 1
        for ch, kk, kkey in zip(MSD_CHANNELS, MSD_KERNELS, ks[:-1]):
            convs.append(_init_conv(kkey, ch, in_ch, kk))
            in_ch = ch
        msd.append({"convs": convs, "final": _init_conv(ks[-1], 1, in_ch, 3)})
    return {"mpd": mpd, "msd": msd}


# ------------------------------------ main ------------------------------------
if __name__ == "__main__":
    key = jax.random.PRNGKey(0)
    kx, kp = jax.random.split(key)
    B, T = 2, 16
    x = jax.random.normal(kx, (B, 1, T), jnp.float32)
    params = init_params(kp)

    def ref_conv(xi, wi, bi, s, p):
        # Reference applying the same bf16 input rounding + f32 accumulation.
        xr = xi.astype(COMPUTE_DTYPE).astype(jnp.float32)
        wr = wi.astype(COMPUTE_DTYPE).astype(jnp.float32)
        y = jax.lax.conv_general_dilated(
            xr, wr, window_strides=(s,), padding=[(p, p)],
            dimension_numbers=("NCH", "OIH", "NCH"),
            precision=jax.lax.Precision.HIGHEST,
        )
        return y + bi[None, :, None]

    # sanity check 1: Cin=1 / stride=1 layer (VPU path)
    w0, b0 = params["msd"][0]["convs"][0]
    pre0, act0 = conv1d_pallas(x, w0, b0, stride=1, padding=7)
    assert jnp.allclose(pre0, ref_conv(x, w0, b0, 1, 7), rtol=1e-2, atol=1e-3), \
        "conv kernel mismatch (Cin=1 path)"

    # sanity check 2: Cin=128 / stride=2 layer (MXU path + phase split)
    w1, b1 = params["msd"][0]["convs"][1]
    pre1, _ = conv1d_pallas(act0, w1, b1, stride=2, padding=6)
    assert jnp.allclose(pre1, ref_conv(act0, w1, b1, 2, 6), rtol=1e-2, atol=1e-3), \
        "conv kernel mismatch (MXU path)"

    mpd_outs, msd_outs = hifigan_disc_forward(params, x)
    jax.block_until_ready(jax.tree_util.tree_leaves((mpd_outs, msd_outs)))
    print("KERNEL_OK")
</pallas_src>

<mosaic_0001>
module attributes {stable_mosaic.version = 11 : i64} {
  func.func @kernel(%arg0: i32, %arg1: i32, %arg2: i32, %arg3: memref<15x128x1xbf16, #tpu.memory_space<vmem>>, %arg4: memref<1x1x1x128xbf16, #tpu.memory_space<vmem>>, %arg5: memref<128x1xf32, #tpu.memory_space<vmem>>, %arg6: memref<1x128x16xf32, #tpu.memory_space<vmem>>, %arg7: memref<1x128x16xf32, #tpu.memory_space<vmem>>) attributes {dimension_semantics = [#tpu.dimension_semantics<parallel>, #tpu.dimension_semantics<parallel>, #tpu.dimension_semantics<parallel>], iteration_bounds = array<i64: 1, 2, 1>, scalar_prefetch = 0 : i64, scratch_operands = 0 : i64, tpu.core_type = #tpu.core_type<tc>, window_params = [{transform_indices = @transform_0, window_bounds = array<i64: 15, 128, 1>}, {transform_indices = @transform_1, window_bounds = array<i64: 1, 1, 1, 128>}, {transform_indices = @transform_2, window_bounds = array<i64: 128, 1>}, {transform_indices = @transform_3, window_bounds = array<i64: 1, 128, 16>}, {transform_indices = @transform_4, window_bounds = array<i64: 1, 128, 16>}]} {
    %c0 = arith.constant 0 : index
    %c0_0 = arith.constant 0 : index
    %c0_1 = arith.constant 0 : index
    %c0_2 = arith.constant 0 : index
    %0 = vector.load %arg4[%c0, %c0_0, %c0_1, %c0_2] : memref<1x1x1x128xbf16, #tpu.memory_space<vmem>>, vector<1x1x1x16xbf16>
    %1 = vector.shape_cast %0 : vector<1x1x1x16xbf16> to vector<1x16xbf16>
    %c0_3 = arith.constant 0 : index
    %c0_4 = arith.constant 0 : index
    %c0_5 = arith.constant 0 : index
    %2 = vector.load %arg3[%c0_3, %c0_4, %c0_5] : memref<15x128x1xbf16, #tpu.memory_space<vmem>>, vector<1x128x1xbf16>
    %3 = vector.shape_cast %2 : vector<1x128x1xbf16> to vector<128x1xbf16>
    %4 = arith.extf %3 : vector<128x1xbf16> to vector<128x1xf32>
    %5 = arith.extf %1 : vector<1x16xbf16> to vector<1x16xf32>
    %6 = vector.broadcast %4 : vector<128x1xf32> to vector<128x16xf32>
    %7 = vector.broadcast %5 : vector<1x16xf32> to vector<128x16xf32>
    %8 = arith.mulf %6, %7 : vector<128x16xf32>
    %c0_6 = arith.constant 0 : index
    %c0_7 = arith.constant 0 : index
    %9 = vector.load %arg5[%c0_6, %c0_7] : memref<128x1xf32, #tpu.memory_space<vmem>>, vector<128x1xf32>
    %10 = vector.broadcast %9 : vector<128x1xf32> to vector<128x16xf32>
    %11 = arith.addf %8, %10 : vector<128x16xf32>
    %c0_8 = arith.constant 0 : index
    %c0_9 = arith.constant 0 : index
    %c0_10 = arith.constant 0 : index
    %12 = vector.load %arg6[%c0_8, %c0_9, %c0_10] : memref<1x128x16xf32, #tpu.memory_space<vmem>>, vector<1x128x16xf32>
    %13 = vector.shape_cast %12 : vector<1x128x16xf32> to vector<128x16xf32>
    %14 = vector.shape_cast %11 : vector<128x16xf32> to vector<1x128x16xf32>
    tpu.vector_store %arg6[%c0_8, %c0_9, %c0_10], %14 {strides = array<i32>} : memref<1x128x16xf32, #tpu.memory_space<vmem>>, vector<1x128x16xf32>,
    %c0_11 = arith.constant 0 : index
    %c0_12 = arith.constant 0 : index
    %c0_13 = arith.constant 0 : index
    %c1 = arith.constant 1 : index
    %15 = vector.load %arg4[%c0_11, %c0_12, %c0_13, %c1] : memref<1x1x1x128xbf16, #tpu.memory_space<vmem>>, vector<1x1x1x16xbf16>
    %16 = vector.shape_cast %15 : vector<1x1x1x16xbf16> to vector<1x16xbf16>
    %c1_14 = arith.constant 1 : index
    %c0_15 = arith.constant 0 : index
    %c0_16 = arith.constant 0 : index
    %17 = vector.load %arg3[%c1_14, %c0_15, %c0_16] : memref<15x128x1xbf16, #tpu.memory_space<vmem>>, vector<1x128x1xbf16>
    %18 = vector.shape_cast %17 : vector<1x128x1xbf16> to vector<128x1xbf16>
    %19 = arith.extf %18 : vector<128x1xbf16> to vector<128x1xf32>
    %20 = arith.extf %16 : vector<1x16xbf16> to vector<1x16xf32>
    %21 = vector.broadcast %19 : vector<128x1xf32> to vector<128x16xf32>
    %22 = vector.broadcast %20 : vector<1x16xf32> to vector<128x16xf32>
    %23 = arith.mulf %21, %22 : vector<128x16xf32>
    %c0_17 = arith.constant 0 : index
    %c0_18 = arith.constant 0 : index
    %c0_19 = arith.constant 0 : index
    %24 = vector.load %arg6[%c0_17, %c0_18, %c0_19] : memref<1x128x16xf32, #tpu.memory_space<vmem>>, vector<1x128x16xf32>
    %25 = vector.shape_cast %24 : vector<1x128x16xf32> to vector<128x16xf32>
    %26 = arith.addf %25, %23 : vector<128x16xf32>
    %c0_20 = arith.constant 0 : index
    %c0_21 = arith.constant 0 : index
    %c0_22 = arith.constant 0 : index
    %27 = vector.load %arg6[%c0_20, %c0_21, %c0_22] : memref<1x128x16xf32, #tpu.memory_space<vmem>>, vector<1x128x16xf32>
    %28 = vector.shape_cast %27 : vector<1x128x16xf32> to vector<128x16xf32>
    %29 = vector.shape_cast %26 : vector<128x16xf32> to vector<1x128x16xf32>
    tpu.vector_store %arg6[%c0_20, %c0_21, %c0_22], %29 {strides = array<i32>} : memref<1x128x16xf32, #tpu.memory_space<vmem>>, vector<1x128x16xf32>,
    %c0_23 = arith.constant 0 : index
    %c0_24 = arith.constant 0 : index
    %c0_25 = arith.constant 0 : index
    %c2 = arith.constant 2 : index
    %30 = vector.load %arg4[%c0_23, %c0_24, %c0_25, %c2] : memref<1x1x1x128xbf16, #tpu.memory_space<vmem>>, vector<1x1x1x16xbf16>
    %31 = vector.shape_cast %30 : vector<1x1x1x16xbf16> to vector<1x16xbf16>
    %c2_26 = arith.constant 2 : index
    %c0_27 = arith.constant 0 : index
    %c0_28 = arith.constant 0 : index
    %32 = vector.load %arg3[%c2_26, %c0_27, %c0_28] : memref<15x128x1xbf16, #tpu.memory_space<vmem>>, vector<1x128x1xbf16>
    %33 = vector.shape_cast %32 : vector<1x128x1xbf16> to vector<128x1xbf16>
    %34 = arith.extf %33 : vector<128x1xbf16> to vector<128x1xf32>
    %35 = arith.extf %31 : vector<1x16xbf16> to vector<1x16xf32>
    %36 = vector.broadcast %34 : vector<128x1xf32> to vector<128x16xf32>
    %37 = vector.broadcast %35 : vector<1x16xf32> to vector<128x16xf32>
    %38 = arith.mulf %36, %37 : vector<128x16xf32>
    %c0_29 = arith.constant 0 : index
    %c0_30 = arith.constant 0 : index
    %c0_31 = arith.constant 0 : index
    %39 = vector.load %arg6[%c0_29, %c0_30, %c0_31] : memref<1x128x16xf32, #tpu.memory_space<vmem>>, vector<1x128x16xf32>
    %40 = vector.shape_cast %39 : vector<1x128x16xf32> to vector<128x16xf32>
    %41 = arith.addf %40, %38 : vector<128x16xf32>
    %c0_32 = arith.constant 0 : index
    %c0_33 = arith.constant 0 : index
    %c0_34 = arith.constant 0 : index
    %42 = vector.load %arg6[%c0_32, %c0_33, %c0_34] : memref<1x128x16xf32, #tpu.memory_space<vmem>>, vector<1x128x16xf32>
    %43 = vector.shape_cast %42 : vector<1x128x16xf32> to vector<128x16xf32>
    %44 = vector.shape_cast %41 : vector<128x16xf32> to vector<1x128x16xf32>
    tpu.vector_store %arg6[%c0_32, %c0_33, %c0_34], %44 {strides = array<i32>} : memref<1x128x16xf32, #tpu.memory_space<vmem>>, vector<1x128x16xf32>,
    %c0_35 = arith.constant 0 : index
    %c0_36 = arith.constant 0 : index
    %c0_37 = arith.constant 0 : index
    %c3 = arith.constant 3 : index
    %45 = vector.load %arg4[%c0_35, %c0_36, %c0_37, %c3] : memref<1x1x1x128xbf16, #tpu.memory_space<vmem>>, vector<1x1x1x16xbf16>
    %46 = vector.shape_cast %45 : vector<1x1x1x16xbf16> to vector<1x16xbf16>
    %c3_38 = arith.constant 3 : index
    %c0_39 = arith.constant 0 : index
    %c0_40 = arith.constant 0 : index
    %47 = vector.load %arg3[%c3_38, %c0_39, %c0_40] : memref<15x128x1xbf16, #tpu.memory_space<vmem>>, vector<1x128x1xbf16>
    %48 = vector.shape_cast %47 : vector<1x128x1xbf16> to vector<128x1xbf16>
    %49 = arith.extf %48 : vector<128x1xbf16> to vector<128x1xf32>
    %50 = arith.extf %46 : vector<1x16xbf16> to vector<1x16xf32>
    %51 = vector.broadcast %49 : vector<128x1xf32> to vector<128x16xf32>
    %52 = vector.broadcast %50 : vector<1x16xf32> to vector<128x16xf32>
    %53 = arith.mulf %51, %52 : vector<128x16xf32>
    %c0_41 = arith.constant 0 : index
    %c0_42 = arith.constant 0 : index
    %c0_43 = arith.constant 0 : index
    %54 = vector.load %arg6[%c0_41, %c0_42, %c0_43] : memref<1x128x16xf32, #tpu.memory_space<vmem>>, vector<1x128x16xf32>
    %55 = vector.shape_cast %54 : vector<1x128x16xf32> to vector<128x16xf32>
    %56 = arith.addf %55, %53 : vector<128x16xf32>
    %c0_44 = arith.constant 0 : index
    %c0_45 = arith.constant 0 : index
    %c0_46 = arith.constant 0 : index
    %57 = vector.load %arg6[%c0_44, %c0_45, %c0_46] : memref<1x128x16xf32, #tpu.memory_space<vmem>>, vector<1x128x16xf32>
    %58 = vector.shape_cast %57 : vector<1x128x16xf32> to vector<128x16xf32>
    %59 = vector.shape_cast %56 : vector<128x16xf32> to vector<1x128x16xf32>
    tpu.vector_store %arg6[%c0_44, %c0_45, %c0_46], %59 {strides = array<i32>} : memref<1x128x16xf32, #tpu.memory_space<vmem>>, vector<1x128x16xf32>,
    %c0_47 = arith.constant 0 : index
    %c0_48 = arith.constant 0 : index
    %c0_49 = arith.constant 0 : index
    %c4 = arith.constant 4 : index
    %60 = vector.load %arg4[%c0_47, %c0_48, %c0_49, %c4] : memref<1x1x1x128xbf16, #tpu.memory_space<vmem>>, vector<1x1x1x16xbf16>
    %61 = vector.shape_cast %60 : vector<1x1x1x16xbf16> to vector<1x16xbf16>
    %c4_50 = arith.constant 4 : index
    %c0_51 = arith.constant 0 : index
    %c0_52 = arith.constant 0 : index
    %62 = vector.load %arg3[%c4_50, %c0_51, %c0_52] : memref<15x128x1xbf16, #tpu.memory_space<vmem>>, vector<1x128x1xbf16>
    %63 = vector.shape_cast %62 : vector<1x128x1xbf16> to vector<128x1xbf16>
    %64 = arith.extf %63 : vector<128x1xbf16> to vector<128x1xf32>
    %65 = arith.extf %61 : vector<1x16xbf16> to vector<1x16xf32>
    %66 = vector.broadcast %64 : vector<128x1xf32> to vector<128x16xf32>
    %67 = vector.broadcast %65 : vector<1x16xf32> to vector<128x16xf32>
    %68 = arith.mulf %66, %67 : vector<128x16xf32>
    %c0_53 = arith.constant 0 : index
    %c0_54 = arith.constant 0 : index
    %c0_55 = arith.constant 0 : index
    %69 = vector.load %arg6[%c0_53, %c0_54, %c0_55] : memref<1x128x16xf32, #tpu.memory_space<vmem>>, vector<1x128x16xf32>
    %70 = vector.shape_cast %69 : vector<1x128x16xf32> to vector<128x16xf32>
    %71 = arith.addf %70, %68 : vector<128x16xf32>
    %c0_56 = arith.constant 0 : index
    %c0_57 = arith.constant 0 : index
    %c0_58 = arith.constant 0 : index
    %72 = vector.load %arg6[%c0_56, %c0_57, %c0_58] : memref<1x128x16xf32, #tpu.memory_space<vmem>>, vector<1x128x16xf32>
    %73 = vector.shape_cast %72 : vector<1x128x16xf32> to vector<128x16xf32>
    %74 = vector.shape_cast %71 : vector<128x16xf32> to vector<1x128x16xf32>
    tpu.vector_store %arg6[%c0_56, %c0_57, %c0_58], %74 {strides = array<i32>} : memref<1x128x16xf32, #tpu.memory_space<vmem>>, vector<1x128x16xf32>,
    %c0_59 = arith.constant 0 : index
    %c0_60 = arith.constant 0 : index
    %c0_61 = arith.constant 0 : index
    %c5 = arith.constant 5 : index
    %75 = vector.load %arg4[%c0_59, %c0_60, %c0_61, %c5] : memref<1x1x1x128xbf16, #tpu.memory_space<vmem>>, vector<1x1x1x16xbf16>
    %76 = vector.shape_cast %75 : vector<1x1x1x16xbf16> to vector<1x16xbf16>
    %c5_62 = arith.constant 5 : index
    %c0_63 = arith.constant 0 : index
    %c0_64 = arith.constant 0 : index
    %77 = vector.load %arg3[%c5_62, %c0_63, %c0_64] : memref<15x128x1xbf16, #tpu.memory_space<vmem>>, vector<1x128x1xbf16>
    %78 = vector.shape_cast %77 : vector<1x128x1xbf16> to vector<128x1xbf16>
    %79 = arith.extf %78 : vector<128x1xbf16> to vector<128x1xf32>
    %80 = arith.extf %76 : vector<1x16xbf16> to vector<1x16xf32>
    %81 = vector.broadcast %79 : vector<128x1xf32> to vector<128x16xf32>
    %82 = vector.broadcast %80 : vector<1x16xf32> to vector<128x16xf32>
    %83 = arith.mulf %81, %82 : vector<128x16xf32>
    %c0_65 = arith.constant 0 : index
    %c0_66 = arith.constant 0 : index
    %c0_67 = arith.constant 0 : index
    %84 = vector.load %arg6[%c0_65, %c0_66, %c0_67] : memref<1x128x16xf32, #tpu.memory_space<vmem>>, vector<1x128x16xf32>
    %85 = vector.shape_cast %84 : vector<1x128x16xf32> to vector<128x16xf32>
    %86 = arith.addf %85, %83 : vector<128x16xf32>
    %c0_68 = arith.constant 0 : index
    %c0_69 = arith.constant 0 : index
    %c0_70 = arith.constant 0 : index
    %87 = vector.load %arg6[%c0_68, %c0_69, %c0_70] : memref<1x128x16xf32, #tpu.memory_space<vmem>>, vector<1x128x16xf32>
    %88 = vector.shape_cast %87 : vector<1x128x16xf32> to vector<128x16xf32>
    %89 = vector.shape_cast %86 : vector<128x16xf32> to vector<1x128x16xf32>
    tpu.vector_store %arg6[%c0_68, %c0_69, %c0_70], %89 {strides = array<i32>} : memref<1x128x16xf32, #tpu.memory_space<vmem>>, vector<1x128x16xf32>,
    %c0_71 = arith.constant 0 : index
    %c0_72 = arith.constant 0 : index
    %c0_73 = arith.constant 0 : index
    %c6 = arith.constant 6 : index
    %90 = vector.load %arg4[%c0_71, %c0_72, %c0_73, %c6] : memref<1x1x1x128xbf16, #tpu.memory_space<vmem>>, vector<1x1x1x16xbf16>
    %91 = vector.shape_cast %90 : vector<1x1x1x16xbf16> to vector<1x16xbf16>
    %c6_74 = arith.constant 6 : index
    %c0_75 = arith.constant 0 : index
    %c0_76 = arith.constant 0 : index
    %92 = vector.load %arg3[%c6_74, %c0_75, %c0_76] : memref<15x128x1xbf16, #tpu.memory_space<vmem>>, vector<1x128x1xbf16>
    %93 = vector.shape_cast %92 : vector<1x128x1xbf16> to vector<128x1xbf16>
    %94 = arith.extf %93 : vector<128x1xbf16> to vector<128x1xf32>
    %95 = arith.extf %91 : vector<1x16xbf16> to vector<1x16xf32>
    %96 = vector.broadcast %94 : vector<128x1xf32> to vector<128x16xf32>
    %97 = vector.broadcast %95 : vector<1x16xf32> to vector<128x16xf32>
    %98 = arith.mulf %96, %97 : vector<128x16xf32>
    %c0_77 = arith.constant 0 : index
    %c0_78 = arith.constant 0 : index
    %c0_79 = arith.constant 0 : index
    %99 = vector.load %arg6[%c0_77, %c0_78, %c0_79] : memref<1x128x16xf32, #tpu.memory_space<vmem>>, vector<1x128x16xf32>
    %100 = vector.shape_cast %99 : vector<1x128x16xf32> to vector<128x16xf32>
    %101 = arith.addf %100, %98 : vector<128x16xf32>
    %c0_80 = arith.constant 0 : index
    %c0_81 = arith.constant 0 : index
    %c0_82 = arith.constant 0 : index
    %102 = vector.load %arg6[%c0_80, %c0_81, %c0_82] : memref<1x128x16xf32, #tpu.memory_space<vmem>>, vector<1x128x16xf32>
    %103 = vector.shape_cast %102 : vector<1x128x16xf32> to vector<128x16xf32>
    %104 = vector.shape_cast %101 : vector<128x16xf32> to vector<1x128x16xf32>
    tpu.vector_store %arg6[%c0_80, %c0_81, %c0_82], %104 {strides = array<i32>} : memref<1x128x16xf32, #tpu.memory_space<vmem>>, vector<1x128x16xf32>,
    %c0_83 = arith.constant 0 : index
    %c0_84 = arith.constant 0 : index
    %c0_85 = arith.constant 0 : index
    %c7 = arith.constant 7 : index
    %105 = vector.load %arg4[%c0_83, %c0_84, %c0_85, %c7] : memref<1x1x1x128xbf16, #tpu.memory_space<vmem>>, vector<1x1x1x16xbf16>
    %106 = vector.shape_cast %105 : vector<1x1x1x16xbf16> to vector<1x16xbf16>
    %c7_86 = arith.constant 7 : index
    %c0_87 = arith.constant 0 : index
    %c0_88 = arith.constant 0 : index
    %107 = vector.load %arg3[%c7_86, %c0_87, %c0_88] : memref<15x128x1xbf16, #tpu.memory_space<vmem>>, vector<1x128x1xbf16>
    %108 = vector.shape_cast %107 : vector<1x128x1xbf16> to vector<128x1xbf16>
    %109 = arith.extf %108 : vector<128x1xbf16> to vector<128x1xf32>
    %110 = arith.extf %106 : vector<1x16xbf16> to vector<1x16xf32>
    %111 = vector.broadcast %109 : vector<128x1xf32> to vector<128x16xf32>
    %112 = vector.broadcast %110 : vector<1x16xf32> to vector<128x16xf32>
    %113 = arith.mulf %111, %112 : vector<128x16xf32>
    %c0_89 = arith.constant 0 : index
    %c0_90 = arith.constant 0 : index
    %c0_91 = arith.constant 0 : index
    %114 = vector.load %arg6[%c0_89, %c0_90, %c0_91] : memref<1x128x16xf32, #tpu.memory_space<vmem>>, vector<1x128x16xf32>
    %115 = vector.shape_cast %114 : vector<1x128x16xf32> to vector<128x16xf32>
    %116 = arith.addf %115, %113 : vector<128x16xf32>
    %c0_92 = arith.constant 0 : index
    %c0_93 = arith.constant 0 : index
    %c0_94 = arith.constant 0 : index
    %117 = vector.load %arg6[%c0_92, %c0_93, %c0_94] : memref<1x128x16xf32, #tpu.memory_space<vmem>>, vector<1x128x16xf32>
    %118 = vector.shape_cast %117 : vector<1x128x16xf32> to vector<128x16xf32>
    %119 = vector.shape_cast %116 : vector<128x16xf32> to vector<1x128x16xf32>
    tpu.vector_store %arg6[%c0_92, %c0_93, %c0_94], %119 {strides = array<i32>} : memref<1x128x16xf32, #tpu.memory_space<vmem>>, vector<1x128x16xf32>,
    %c0_95 = arith.constant 0 : index
    %c0_96 = arith.constant 0 : index
    %c0_97 = arith.constant 0 : index
    %c8 = arith.constant 8 : index
    %120 = vector.load %arg4[%c0_95, %c0_96, %c0_97, %c8] : memref<1x1x1x128xbf16, #tpu.memory_space<vmem>>, vector<1x1x1x16xbf16>
    %121 = vector.shape_cast %120 : vector<1x1x1x16xbf16> to vector<1x16xbf16>
    %c8_98 = arith.constant 8 : index
    %c0_99 = arith.constant 0 : index
    %c0_100 = arith.constant 0 : index
    %122 = vector.load %arg3[%c8_98, %c0_99, %c0_100] : memref<15x128x1xbf16, #tpu.memory_space<vmem>>, vector<1x128x1xbf16>
    %123 = vector.shape_cast %122 : vector<1x128x1xbf16> to vector<128x1xbf16>
    %124 = arith.extf %123 : vector<128x1xbf16> to vector<128x1xf32>
    %125 = arith.extf %121 : vector<1x16xbf16> to vector<1x16xf32>
    %126 = vector.broadcast %124 : vector<128x1xf32> to vector<128x16xf32>
    %127 = vector.broadcast %125 : vector<1x16xf32> to vector<128x16xf32>
    %128 = arith.mulf %126, %127 : vector<128x16xf32>
    %c0_101 = arith.constant 0 : index
    %c0_102 = arith.constant 0 : index
    %c0_103 = arith.constant 0 : index
    %129 = vector.load %arg6[%c0_101, %c0_102, %c0_103] : memref<1x128x16xf32, #tpu.memory_space<vmem>>, vector<1x128x16xf32>
    %130 = vector.shape_cast %129 : vector<1x128x16xf32> to vector<128x16xf32>
    %131 = arith.addf %130, %128 : vector<128x16xf32>
    %c0_104 = arith.constant 0 : index
    %c0_105 = arith.constant 0 : index
    %c0_106 = arith.constant 0 : index
    %132 = vector.load %arg6[%c0_104, %c0_105, %c0_106] : memref<1x128x16xf32, #tpu.memory_space<vmem>>, vector<1x128x16xf32>
    %133 = vector.shape_cast %132 : vector<1x128x16xf32> to vector<128x16xf32>
    %134 = vector.shape_cast %131 : vector<128x16xf32> to vector<1x128x16xf32>
    tpu.vector_store %arg6[%c0_104, %c0_105, %c0_106], %134 {strides = array<i32>} : memref<1x128x16xf32, #tpu.memory_space<vmem>>, vector<1x128x16xf32>,
    %c0_107 = arith.constant 0 : index
    %c0_108 = arith.constant 0 : index
    %c0_109 = arith.constant 0 : index
    %c9 = arith.constant 9 : index
    %135 = vector.load %arg4[%c0_107, %c0_108, %c0_109, %c9] : memref<1x1x1x128xbf16, #tpu.memory_space<vmem>>, vector<1x1x1x16xbf16>
    %136 = vector.shape_cast %135 : vector<1x1x1x16xbf16> to vector<1x16xbf16>
    %c9_110 = arith.constant 9 : index
    %c0_111 = arith.constant 0 : index
    %c0_112 = arith.constant 0 : index
    %137 = vector.load %arg3[%c9_110, %c0_111, %c0_112] : memref<15x128x1xbf16, #tpu.memory_space<vmem>>, vector<1x128x1xbf16>
    %138 = vector.shape_cast %137 : vector<1x128x1xbf16> to vector<128x1xbf16>
    %139 = arith.extf %138 : vector<128x1xbf16> to vector<128x1xf32>
    %140 = arith.extf %136 : vector<1x16xbf16> to vector<1x16xf32>
    %141 = vector.broadcast %139 : vector<128x1xf32> to vector<128x16xf32>
    %142 = vector.broadcast %140 : vector<1x16xf32> to vector<128x16xf32>
    %143 = arith.mulf %141, %142 : vector<128x16xf32>
    %c0_113 = arith.constant 0 : index
    %c0_114 = arith.constant 0 : index
    %c0_115 = arith.constant 0 : index
    %144 = vector.load %arg6[%c0_113, %c0_114, %c0_115] : memref<1x128x16xf32, #tpu.memory_space<vmem>>, vector<1x128x16xf32>
    %145 = vector.shape_cast %144 : vector<1x128x16xf32> to vector<128x16xf32>
    %146 = arith.addf %145, %143 : vector<128x16xf32>
    %c0_116 = arith.constant 0 : index
    %c0_117 = arith.constant 0 : index
    %c0_118 = arith.constant 0 : index
    %147 = vector.load %arg6[%c0_116, %c0_117, %c0_118] : memref<1x128x16xf32, #tpu.memory_space<vmem>>, vector<1x128x16xf32>
    %148 = vector.shape_cast %147 : vector<1x128x16xf32> to vector<128x16xf32>
    %149 = vector.shape_cast %146 : vector<128x16xf32> to vector<1x128x16xf32>
    tpu.vector_store %arg6[%c0_116, %c0_117, %c0_118], %149 {strides = array<i32>} : memref<1x128x16xf32, #tpu.memory_space<vmem>>, vector<1x128x16xf32>,
    %c0_119 = arith.constant 0 : index
    %c0_120 = arith.constant 0 : index
    %c0_121 = arith.constant 0 : index
    %c10 = arith.constant 10 : index
    %150 = vector.load %arg4[%c0_119, %c0_120, %c0_121, %c10] : memref<1x1x1x128xbf16, #tpu.memory_space<vmem>>, vector<1x1x1x16xbf16>
    %151 = vector.shape_cast %150 : vector<1x1x1x16xbf16> to vector<1x16xbf16>
    %c10_122 = arith.constant 10 : index
    %c0_123 = arith.constant 0 : index
    %c0_124 = arith.constant 0 : index
    %152 = vector.load %arg3[%c10_122, %c0_123, %c0_124] : memref<15x128x1xbf16, #tpu.memory_space<vmem>>, vector<1x128x1xbf16>
    %153 = vector.shape_cast %152 : vector<1x128x1xbf16> to vector<128x1xbf16>
    %154 = arith.extf %153 : vector<128x1xbf16> to vector<128x1xf32>
    %155 = arith.extf %151 : vector<1x16xbf16> to vector<1x16xf32>
    %156 = vector.broadcast %154 : vector<128x1xf32> to vector<128x16xf32>
    %157 = vector.broadcast %155 : vector<1x16xf32> to vector<128x16xf32>
    %158 = arith.mulf %156, %157 : vector<128x16xf32>
    %c0_125 = arith.constant 0 : index
    %c0_126 = arith.constant 0 : index
    %c0_127 = arith.constant 0 : index
    %159 = vector.load %arg6[%c0_125, %c0_126, %c0_127] : memref<1x128x16xf32, #tpu.memory_space<vmem>>, vector<1x128x16xf32>
    %160 = vector.shape_cast %159 : vector<1x128x16xf32> to vector<128x16xf32>
    %161 = arith.addf %160, %158 : vector<128x16xf32>
    %c0_128 = arith.constant 0 : index
    %c0_129 = arith.constant 0 : index
    %c0_130 = arith.constant 0 : index
    %162 = vector.load %arg6[%c0_128, %c0_129, %c0_130] : memref<1x128x16xf32, #tpu.memory_space<vmem>>, vector<1x128x16xf32>
    %163 = vector.shape_cast %162 : vector<1x128x16xf32> to vector<128x16xf32>
    %164 = vector.shape_cast %161 : vector<128x16xf32> to vector<1x128x16xf32>
    tpu.vector_store %arg6[%c0_128, %c0_129, %c0_130], %164 {strides = array<i32>} : memref<1x128x16xf32, #tpu.memory_space<vmem>>, vector<1x128x16xf32>,
    %c0_131 = arith.constant 0 : index
    %c0_132 = arith.constant 0 : index
    %c0_133 = arith.constant 0 : index
    %c11 = arith.constant 11 : index
    %165 = vector.load %arg4[%c0_131, %c0_132, %c0_133, %c11] : memref<1x1x1x128xbf16, #tpu.memory_space<vmem>>, vector<1x1x1x16xbf16>
    %166 = vector.shape_cast %165 : vector<1x1x1x16xbf16> to vector<1x16xbf16>
    %c11_134 = arith.constant 11 : index
    %c0_135 = arith.constant 0 : index
    %c0_136 = arith.constant 0 : index
    %167 = vector.load %arg3[%c11_134, %c0_135, %c0_136] : memref<15x128x1xbf16, #tpu.memory_space<vmem>>, vector<1x128x1xbf16>
    %168 = vector.shape_cast %167 : vector<1x128x1xbf16> to vector<128x1xbf16>
    %169 = arith.extf %168 : vector<128x1xbf16> to vector<128x1xf32>
    %170 = arith.extf %166 : vector<1x16xbf16> to vector<1x16xf32>
    %171 = vector.broadcast %169 : vector<128x1xf32> to vector<128x16xf32>
    %172 = vector.broadcast %170 : vector<1x16xf32> to vector<128x16xf32>
    %173 = arith.mulf %171, %172 : vector<128x16xf32>
    %c0_137 = arith.constant 0 : index
    %c0_138 = arith.constant 0 : index
    %c0_139 = arith.constant 0 : index
    %174 = vector.load %arg6[%c0_137, %c0_138, %c0_139] : memref<1x128x16xf32, #tpu.memory_space<vmem>>, vector<1x128x16xf32>
    %175 = vector.shape_cast %174 : vector<1x128x16xf32> to vector<128x16xf32>
    %176 = arith.addf %175, %173 : vector<128x16xf32>
    %c0_140 = arith.constant 0 : index
    %c0_141 = arith.constant 0 : index
    %c0_142 = arith.constant 0 : index
    %177 = vector.load %arg6[%c0_140, %c0_141, %c0_142] : memref<1x128x16xf32, #tpu.memory_space<vmem>>, vector<1x128x16xf32>
    %178 = vector.shape_cast %177 : vector<1x128x16xf32> to vector<128x16xf32>
    %179 = vector.shape_cast %176 : vector<128x16xf32> to vector<1x128x16xf32>
    tpu.vector_store %arg6[%c0_140, %c0_141, %c0_142], %179 {strides = array<i32>} : memref<1x128x16xf32, #tpu.memory_space<vmem>>, vector<1x128x16xf32>,
    %c0_143 = arith.constant 0 : index
    %c0_144 = arith.constant 0 : index
    %c0_145 = arith.constant 0 : index
    %c12 = arith.constant 12 : index
    %180 = vector.load %arg4[%c0_143, %c0_144, %c0_145, %c12] : memref<1x1x1x128xbf16, #tpu.memory_space<vmem>>, vector<1x1x1x16xbf16>
    %181 = vector.shape_cast %180 : vector<1x1x1x16xbf16> to vector<1x16xbf16>
    %c12_146 = arith.constant 12 : index
    %c0_147 = arith.constant 0 : index
    %c0_148 = arith.constant 0 : index
    %182 = vector.load %arg3[%c12_146, %c0_147, %c0_148] : memref<15x128x1xbf16, #tpu.memory_space<vmem>>, vector<1x128x1xbf16>
    %183 = vector.shape_cast %182 : vector<1x128x1xbf16> to vector<128x1xbf16>
    %184 = arith.extf %183 : vector<128x1xbf16> to vector<128x1xf32>
    %185 = arith.extf %181 : vector<1x16xbf16> to vector<1x16xf32>
    %186 = vector.broadcast %184 : vector<128x1xf32> to vector<128x16xf32>
    %187 = vector.broadcast %185 : vector<1x16xf32> to vector<128x16xf32>
    %188 = arith.mulf %186, %187 : vector<128x16xf32>
    %c0_149 = arith.constant 0 : index
    %c0_150 = arith.constant 0 : index
    %c0_151 = arith.constant 0 : index
    %189 = vector.load %arg6[%c0_149, %c0_150, %c0_151] : memref<1x128x16xf32, #tpu.memory_space<vmem>>, vector<1x128x16xf32>
    %190 = vector.shape_cast %189 : vector<1x128x16xf32> to vector<128x16xf32>
    %191 = arith.addf %190, %188 : vector<128x16xf32>
    %c0_152 = arith.constant 0 : index
    %c0_153 = arith.constant 0 : index
    %c0_154 = arith.constant 0 : index
    %192 = vector.load %arg6[%c0_152, %c0_153, %c0_154] : memref<1x128x16xf32, #tpu.memory_space<vmem>>, vector<1x128x16xf32>
    %193 = vector.shape_cast %192 : vector<1x128x16xf32> to vector<128x16xf32>
    %194 = vector.shape_cast %191 : vector<128x16xf32> to vector<1x128x16xf32>
    tpu.vector_store %arg6[%c0_152, %c0_153, %c0_154], %194 {strides = array<i32>} : memref<1x128x16xf32, #tpu.memory_space<vmem>>, vector<1x128x16xf32>,
    %c0_155 = arith.constant 0 : index
    %c0_156 = arith.constant 0 : index
    %c0_157 = arith.constant 0 : index
    %c13 = arith.constant 13 : index
    %195 = vector.load %arg4[%c0_155, %c0_156, %c0_157, %c13] : memref<1x1x1x128xbf16, #tpu.memory_space<vmem>>, vector<1x1x1x16xbf16>
    %196 = vector.shape_cast %195 : vector<1x1x1x16xbf16> to vector<1x16xbf16>
    %c13_158 = arith.constant 13 : index
    %c0_159 = arith.constant 0 : index
    %c0_160 = arith.constant 0 : index
    %197 = vector.load %arg3[%c13_158, %c0_159, %c0_160] : memref<15x128x1xbf16, #tpu.memory_space<vmem>>, vector<1x128x1xbf16>
    %198 = vector.shape_cast %197 : vector<1x128x1xbf16> to vector<128x1xbf16>
    %199 = arith.extf %198 : vector<128x1xbf16> to vector<128x1xf32>
    %200 = arith.extf %196 : vector<1x16xbf16> to vector<1x16xf32>
    %201 = vector.broadcast %199 : vector<128x1xf32> to vector<128x16xf32>
    %202 = vector.broadcast %200 : vector<1x16xf32> to vector<128x16xf32>
    %203 = arith.mulf %201, %202 : vector<128x16xf32>
    %c0_161 = arith.constant 0 : index
    %c0_162 = arith.constant 0 : index
    %c0_163 = arith.constant 0 : index
    %204 = vector.load %arg6[%c0_161, %c0_162, %c0_163] : memref<1x128x16xf32, #tpu.memory_space<vmem>>, vector<1x128x16xf32>
    %205 = vector.shape_cast %204 : vector<1x128x16xf32> to vector<128x16xf32>
    %206 = arith.addf %205, %203 : vector<128x16xf32>
    %c0_164 = arith.constant 0 : index
    %c0_165 = arith.constant 0 : index
    %c0_166 = arith.constant 0 : index
    %207 = vector.load %arg6[%c0_164, %c0_165, %c0_166] : memref<1x128x16xf32, #tpu.memory_space<vmem>>, vector<1x128x16xf32>
    %208 = vector.shape_cast %207 : vector<1x128x16xf32> to vector<128x16xf32>
    %209 = vector.shape_cast %206 : vector<128x16xf32> to vector<1x128x16xf32>
    tpu.vector_store %arg6[%c0_164, %c0_165, %c0_166], %209 {strides = array<i32>} : memref<1x128x16xf32, #tpu.memory_space<vmem>>, vector<1x128x16xf32>,
    %c0_167 = arith.constant 0 : index
    %c0_168 = arith.constant 0 : index
    %c0_169 = arith.constant 0 : index
    %c14 = arith.constant 14 : index
    %210 = vector.load %arg4[%c0_167, %c0_168, %c0_169, %c14] : memref<1x1x1x128xbf16, #tpu.memory_space<vmem>>, vector<1x1x1x16xbf16>
    %211 = vector.shape_cast %210 : vector<1x1x1x16xbf16> to vector<1x16xbf16>
    %c14_170 = arith.constant 14 : index
    %c0_171 = arith.constant 0 : index
    %c0_172 = arith.constant 0 : index
    %212 = vector.load %arg3[%c14_170, %c0_171, %c0_172] : memref<15x128x1xbf16, #tpu.memory_space<vmem>>, vector<1x128x1xbf16>
    %213 = vector.shape_cast %212 : vector<1x128x1xbf16> to vector<128x1xbf16>
    %214 = arith.extf %213 : vector<128x1xbf16> to vector<128x1xf32>
    %215 = arith.extf %211 : vector<1x16xbf16> to vector<1x16xf32>
    %216 = vector.broadcast %214 : vector<128x1xf32> to vector<128x16xf32>
    %217 = vector.broadcast %215 : vector<1x16xf32> to vector<128x16xf32>
    %218 = arith.mulf %216, %217 : vector<128x16xf32>
    %c0_173 = arith.constant 0 : index
    %c0_174 = arith.constant 0 : index
    %c0_175 = arith.constant 0 : index
    %219 = vector.load %arg6[%c0_173, %c0_174, %c0_175] : memref<1x128x16xf32, #tpu.memory_space<vmem>>, vector<1x128x16xf32>
    %220 = vector.shape_cast %219 : vector<1x128x16xf32> to vector<128x16xf32>
    %221 = arith.addf %220, %218 : vector<128x16xf32>
    %c0_176 = arith.constant 0 : index
    %c0_177 = arith.constant 0 : index
    %c0_178 = arith.constant 0 : index
    %222 = vector.load %arg6[%c0_176, %c0_177, %c0_178] : memref<1x128x16xf32, #tpu.memory_space<vmem>>, vector<1x128x16xf32>
    %223 = vector.shape_cast %222 : vector<1x128x16xf32> to vector<128x16xf32>
    %224 = vector.shape_cast %221 : vector<128x16xf32> to vector<1x128x16xf32>
    tpu.vector_store %arg6[%c0_176, %c0_177, %c0_178], %224 {strides = array<i32>} : memref<1x128x16xf32, #tpu.memory_space<vmem>>, vector<1x128x16xf32>,
    %c0_179 = arith.constant 0 : index
    %c0_180 = arith.constant 0 : index
    %c0_181 = arith.constant 0 : index
    %225 = vector.load %arg6[%c0_179, %c0_180, %c0_181] : memref<1x128x16xf32, #tpu.memory_space<vmem>>, vector<1x128x16xf32>
    %226 = vector.shape_cast %225 : vector<1x128x16xf32> to vector<128x16xf32>
    %cst = arith.constant 0.000000e+00 : f32
    %227 = vector.broadcast %cst : f32 to vector<128x16xf32>
    %228 = arith.cmpf ogt, %226, %227 : vector<128x16xf32>
    %cst_182 = arith.constant 1.000000e-01 : f32
    %229 = vector.broadcast %cst_182 : f32 to vector<128x16xf32>
    %230 = arith.mulf %229, %226 : vector<128x16xf32>
    %231 = arith.select %228, %226, %230 : vector<128x16xi1>, vector<128x16xf32>
    %c0_183 = arith.constant 0 : index
    %c0_184 = arith.constant 0 : index
    %c0_185 = arith.constant 0 : index
    %232 = vector.load %arg7[%c0_183, %c0_184, %c0_185] : memref<1x128x16xf32, #tpu.memory_space<vmem>>, vector<1x128x16xf32>
    %233 = vector.shape_cast %232 : vector<1x128x16xf32> to vector<128x16xf32>
    %234 = vector.shape_cast %231 : vector<128x16xf32> to vector<1x128x16xf32>
    tpu.vector_store %arg7[%c0_183, %c0_184, %c0_185], %234 {strides = array<i32>} : memref<1x128x16xf32, #tpu.memory_space<vmem>>, vector<1x128x16xf32>,
    return
  }
  func.func @transform_0(%arg0: i32, %arg1: i32, %arg2: i32) -> (i32, i32, i32) {
    %c0_i32 = arith.constant 0 : i32
    %c0_i32_0 = arith.constant 0 : i32
    %c0_i32_1 = arith.constant 0 : i32
    return %c0_i32, %arg0, %c0_i32_0 : i32, i32, i32
  }
  func.func @transform_1(%arg0: i32, %arg1: i32, %arg2: i32) -> (i32, i32, i32, i32) {
    %c0_i32 = arith.constant 0 : i32
    %c0_i32_0 = arith.constant 0 : i32
    %c0_i32_1 = arith.constant 0 : i32
    %c0_i32_2 = arith.constant 0 : i32
    return %arg1, %c0_i32, %c0_i32_0, %c0_i32_1 : i32, i32, i32, i32
  }
  func.func @transform_2(%arg0: i32, %arg1: i32, %arg2: i32) -> (i32, i32) {
    %c0_i32 = arith.constant 0 : i32
    %c0_i32_0 = arith.constant 0 : i32
    return %arg0, %c0_i32 : i32, i32
  }
  func.func @transform_3(%arg0: i32, %arg1: i32, %arg2: i32) -> (i32, i32, i32) {
    %c0_i32 = arith.constant 0 : i32
    return %arg1, %arg0, %arg2 : i32, i32, i32
  }
  func.func @transform_4(%arg0: i32, %arg1: i32, %arg2: i32) -> (i32, i32, i32) {
    %c0_i32 = arith.constant 0 : i32
    return %arg1, %arg0, %arg2 : i32, i32, i32
  }
}

</mosaic_0001>

<bundles_post_ra>
// kernel: tpu_custom_call.1
= control target key start
LH: loop header
LB: loop body
LE: loop exit
PB: predicated region body
PF: predicated region fallthrough
CT: control target
= control target key end

     0   :  { %s5831_s15 = smov 0   ;;  %s5833_s16 = smov 0   ;;  %s7529_s0 = inlined_call_operand.vmem [shape: bf16[15,128,1], index: 0, kind: input, shape index: {}]   ;;  %s7530_s1 = inlined_call_operand.vmem [shape: bf16[2,1,1,128], index: 1, kind: input, shape index: {}]   ;;  %s7531_s2 = inlined_call_operand.vmem [shape: f32[128,1], index: 2, kind: input, shape index: {}]   ;;  %s7532_s3 = inlined_call_operand.vmem [shape: f32[2,128,16], index: 3, kind: output, shape index: {0}]   ;;  %s7533_s4 = inlined_call_operand.vmem [shape: f32[2,128,16], index: 4, kind: output, shape index: {1}]  }
   0x1   :  { %s5835_s17 = smov 0  }
   0x2 LB: > { %s30_s18 = sadd.s32 1, %s5785_s16  ;;  %p4294_p0 = scmp.ge.s32.totalorder %s5789_s17, 1  ;;  %s5789_s17 = sphi %s5835_s17, %s15_s17   ;;  %s5785_s16 = sphi %s5833_s16, %s7535_s16   ;;  %s5781_s15 = sphi %s5831_s15, %s7534_s15  }
   0x3   : > { %p32_p1 = scmp.ge.s32.totalorder %s30_s18, 2  ;;  %p212_p2 = scmp.lt.s32.totalorder %s5789_s17, 3 }
   0x5   : > { %s7537_s18 = smov (%p32_p1, %s30_s18), 0  ;;  %p213_p3 = pnand %p4294_p0, %p212_p2 }
   0x6   : > { %v5008_v0 = vld [vmem:[%s7529_s0 + $0x10] sm:$0xff] (!%p213_p3)   ;;  %v4528_v1 = vld [vmem:[%s7529_s0] sm:$0xff] (!%p213_p3)   ;;  %v5009_v2 = vld [vmem:[%s7529_s0 + $0x18] sm:$0xff] (!%p213_p3)   ;;  %v5791_v3 = vmov (!%p213_p3), 0   ;;  %p271_p4 = scmp.lt.s32.totalorder (!%p213_p3), %s5781_s15, 1  ;;  %vm552_vm0 = vcmask (!%p213_p3), 130048  }
   0x7   : > { %216 = sbr.rel (%p213_p3) target bundleno = 2217 (0x8a9), region = 32  ;;  %5176 = vset.pattern.permute.xlu1 (!%p213_p3), %v5791_v3  ;;  %5165 = vset.pattern.permute.xlu0 (!%p213_p3), %v5791_v3  ;;  %v4537_v4 = vunpack.c.l.bf16 (!%p213_p3), %v5008_v0  ;;  %v4538_v5 = vunpack.c.h.bf16 (!%p213_p3), %v5008_v0  ;;  %v4529_v6 = vunpack.c.l.bf16 (!%p213_p3), %v4528_v1  ;;  %v4530_v7 = vunpack.c.h.bf16 (!%p213_p3), %v4528_v1  ;;  %v5007_v8 = vld [vmem:[%s7529_s0 + $0x8] sm:$0xff] (!%p213_p3)   ;;  %v5010_v14 = vld [vmem:[%s7529_s0 + $0x20] sm:$0xff] (!%p213_p3)   ;;  %v5013_v23 = vld [vmem:[%s7529_s0 + $0x38] sm:$0xff] (!%p213_p3)   ;;  %s5792_s14 = smov (!%p213_p3), 127  }
   0x8   : > { %v5011_v9 = vld [vmem:[%s7529_s0 + $0x28] sm:$0xff] (!%p213_p3)   ;;  %v4541_v10 = vunpack.c.l.bf16 (!%p213_p3), %v5009_v2  ;;  %v4542_v11 = vunpack.c.h.bf16 (!%p213_p3), %v5009_v2  ;;  %v4533_v12 = vunpack.c.l.bf16 (!%p213_p3), %v5007_v8  ;;  %v4534_v13 = vunpack.c.h.bf16 (!%p213_p3), %v5007_v8  ;;  %v5012_v24 = vld [vmem:[%s7529_s0 + $0x30] sm:$0xff] (!%p213_p3)   ;;  %v440_v34 = vld [vmem:[%s7531_s2] sm:$0xff] (!%p213_p3)  ;;  %s5793_s19 = smov (!%p213_p3), 126   ;;  %s5794_s12 = smov (!%p213_p3), 125  }
   0x9   : > { %v5177_v15 = vpack.i.bf16 (!%p213_p3), %v4538_v5, %v4537_v4  ;;  %v5166_v16 = vpack.i.bf16 (!%p213_p3), %v4530_v7, %v4529_v6  ;;  %v4549_v17 = vunpack.c.l.bf16 (!%p213_p3), %v5011_v9  ;;  %v4550_v18 = vunpack.c.h.bf16 (!%p213_p3), %v5011_v9  ;;  %v441_v33 = vld [vmem:[%s7531_s2 + $0x8] sm:$0xff] (!%p213_p3)  ;;  %v443_v35 = vld [vmem:[%s7531_s2 + $0x18] sm:$0xff] (!%p213_p3)  ;;  %v442_v36 = vld [vmem:[%s7531_s2 + $0x10] sm:$0xff] (!%p213_p3)  ;;  %s5795_s8 = smov (!%p213_p3), 124   ;;  %s5796_s6 = smov (!%p213_p3), 123  }
   0xa   : > { %v5182_v19 = vpack.i.bf16 (!%p213_p3), %v4542_v11, %v4541_v10  ;;  %v5171_v20 = vpack.i.bf16 (!%p213_p3), %v4534_v13, %v4533_v12  ;;  %v4545_v21 = vunpack.c.l.bf16 (!%p213_p3), %v5010_v14  ;;  %v4546_v22 = vunpack.c.h.bf16 (!%p213_p3), %v5010_v14  ;;  %v445_v37 = vld [vmem:[%s7531_s2 + $0x28] sm:$0xff] (!%p213_p3)  ;;  %v444_v38 = vld [vmem:[%s7531_s2 + $0x20] sm:$0xff] (!%p213_p3)  ;;  %v447_v39 = vld [vmem:[%s7531_s2 + $0x38] sm:$0xff] (!%p213_p3)  ;;  %s5797_s30 = smov (!%p213_p3), 122   ;;  %s5798_s28 = smov (!%p213_p3), 121  }
   0xb   : > { %5178 = vperm.xlu1 (!%p213_p3), %5176, %v5177_v15   ;;  %5167 = vperm.xlu0 (!%p213_p3), %5165, %v5166_v16   ;;  %v5192_v25 = vpack.i.bf16 (!%p213_p3), %v4550_v18, %v4549_v17  ;;  %v4557_v26 = vunpack.c.l.bf16 (!%p213_p3), %v5013_v23  ;;  %v4558_v28 = vunpack.c.h.bf16 (!%p213_p3), %v5013_v23  ;;  %v4553_v29 = vunpack.c.l.bf16 (!%p213_p3), %v5012_v24  ;;  %v446_v40 = vld [vmem:[%s7531_s2 + $0x30] sm:$0xff] (!%p213_p3)  ;;  %v449_v41 = vld [vmem:[%s7531_s2 + $0x48] sm:$0xff] (!%p213_p3)  ;;  %v448_v42 = vld [vmem:[%s7531_s2 + $0x40] sm:$0xff] (!%p213_p3)  ;;  %s5799_s26 = smov (!%p213_p3), 120   ;;  %s5800_s24 = smov (!%p213_p3), 119  }
   0xc   : > { %v5187_v27 = vpack.i.bf16 (!%p213_p3), %v4546_v22, %v4545_v21  ;;  %v4554_v30 = vunpack.c.h.bf16 (!%p213_p3), %v5012_v24  ;;  %v451_v43 = vld [vmem:[%s7531_s2 + $0x58] sm:$0xff] (!%p213_p3)  ;;  %v450_v44 = vld [vmem:[%s7531_s2 + $0x50] sm:$0xff] (!%p213_p3)  ;;  %v453_v45 = vld [vmem:[%s7531_s2 + $0x68] sm:$0xff] (!%p213_p3)  ;;  %s5801_s22 = smov (!%p213_p3), 118   ;;  %s5802_s20 = smov (!%p213_p3), 117  }
   0xd   : > { %v5202_v31 = vpack.i.bf16 (!%p213_p3), %v4558_v28, %v4557_v26  ;;  %v452_v46 = vld [vmem:[%s7531_s2 + $0x60] sm:$0xff] (!%p213_p3)  ;;  %v5015_v47 = vld [vmem:[%s7529_s0 + $0x48] sm:$0xff] (!%p213_p3)   ;;  %v5017_v53 = vld [vmem:[%s7529_s0 + $0x58] sm:$0xff] (!%p213_p3)  }
   0xe   : > { %v5197_v32 = vpack.i.bf16 %v4554_v30, %v4553_v29  ;;  %v5014_v48 = vld [vmem:[%s7529_s0 + $0x40] sm:$0xff]   ;;  %v4565_v49 = vunpack.c.l.bf16 %v5015_v47  ;;  %v4566_v50 = vunpack.c.h.bf16 %v5015_v47  ;;  %v455_v54 = vld [vmem:[%s7531_s2 + $0x78] sm:$0xff]  ;;  %v454_v55 = vld [vmem:[%s7531_s2 + $0x70] sm:$0xff]  ;;  %v4573_v57 = vunpack.c.l.bf16 %v5017_v53  ;;  %s7539_s15 = smov (!%p271_p4, %s5781_s15), 1 }
   0xf   : > { %5183 = vperm.xlu1 %5176, %v5182_v19   ;;  %5172 = vperm.xlu0 %5165, %v5171_v20   ;;  %v4561_v51 = vunpack.c.l.bf16 %v5014_v48  ;;  %v4562_v52 = vunpack.c.h.bf16 %v5014_v48  ;;  %v5016_v56 = vld [vmem:[%s7529_s0 + $0x50] sm:$0xff]   ;;  %v4574_v58 = vunpack.c.h.bf16 %v5017_v53  ;;  %v5019_v63 = vld [vmem:[%s7529_s0 + $0x68] sm:$0xff]   ;;  %v5018_v0 = vld [vmem:[%s7529_s0 + $0x60] sm:$0xff]   ;;  %s5979_s9 = scalar_lea.vmem %s7530_s1, %s7539_s15  ;;  %s4525_s10 = sshll.u32 %s7539_s15, 7 }
  0x10   : > { %v5212_v59 = vpack.i.bf16 %v4566_v50, %v4565_v49  ;;  %v4569_v61 = vunpack.c.l.bf16 %v5016_v56  ;;  %v4570_v62 = vunpack.c.h.bf16 %v5016_v56  ;;  %v4581_v1 = vunpack.c.l.bf16 %v5019_v63  ;;  %v5021_v7 = vld [vmem:[%s7529_s0 + $0x78] sm:$0xff]   ;;  %v5020_v8 = vld [vmem:[%s7529_s0 + $0x70] sm:$0xff]   ;;  %v5023_v15 = vld [vmem:[%s7529_s0 + $0x88] sm:$0xff]   ;;  %s6001_s13 = scalar_lea.vmem %s7532_s3, %s4525_s10  ;;  %s7438_s11 = scalar_lea.vmem %s7533_s4, %s4525_s10 }
  0x11   : > { %v5207_v60 = vpack.i.bf16 %v4562_v52, %v4561_v51  ;;  %v4582_v2 = vunpack.c.h.bf16 %v5019_v63  ;;  %v5222_v3 = vpack.i.bf16 %v4574_v58, %v4573_v57  ;;  %v4577_v5 = vunpack.c.l.bf16 %v5018_v0  ;;  %v5022_v16 = vld [vmem:[%s7529_s0 + $0x80] sm:$0xff]   ;;  %v5025_v23 = vld [vmem:[%s7529_s0 + $0x98] sm:$0xff]   ;;  %v5024_v24 = vld [vmem:[%s7529_s0 + $0x90] sm:$0xff]  }
  0x12   : > { %v5217_v4 = vpack.i.bf16 %v4570_v62, %v4569_v61  ;;  %v4578_v6 = vunpack.c.h.bf16 %v5018_v0  ;;  %v4589_v10 = vunpack.c.l.bf16 %v5021_v7  ;;  %v4590_v12 = vunpack.c.h.bf16 %v5021_v7 }
  0x13   : > { %5193 = vperm.xlu1 %5176, %v5192_v25   ;;  %5188 = vperm.xlu0 %5165, %v5187_v27   ;;  %v5232_v9 = vpack.i.bf16 %v4582_v2, %v4581_v1  ;;  %v4585_v13 = vunpack.c.l.bf16 %v5020_v8  ;;  %v4586_v14 = vunpack.c.h.bf16 %v5020_v8  ;;  %v4597_v17 = vunpack.c.l.bf16 %v5023_v15 }
  0x14   : > { %v5227_v11 = vpack.i.bf16 %v4578_v6, %v4577_v5  ;;  %v4598_v18 = vunpack.c.h.bf16 %v5023_v15  ;;  %v5242_v19 = vpack.i.bf16 %v4590_v12, %v4589_v10  ;;  %v4593_v21 = vunpack.c.l.bf16 %v5022_v16 }
  0x15   : > { %v5237_v20 = vpack.i.bf16 %v4586_v14, %v4585_v13  ;;  %v4594_v22 = vunpack.c.h.bf16 %v5022_v16  ;;  %v4605_v26 = vunpack.c.l.bf16 %v5025_v23  ;;  %v4606_v28 = vunpack.c.h.bf16 %v5025_v23 }
  0x16   : > { %v5252_v25 = vpack.i.bf16 %v4598_v18, %v4597_v17  ;;  %v4601_v29 = vunpack.c.l.bf16 %v5024_v24  ;;  %v4602_v30 = vunpack.c.h.bf16 %v5024_v24  ;;  %v420_v49 = vlaneseq }
  0x17   : > { %5203 = vperm.xlu1 %5176, %v5202_v31   ;;  %5198 = vperm.xlu0 %5165, %v5197_v32   ;;  %v5247_v27 = vpack.i.bf16 %v4594_v22, %v4593_v21  ;;  %v5027_v31 = vld [vmem:[%s7529_s0 + $0xa8] sm:$0xff]   ;;  %v5026_v32 = vld [vmem:[%s7529_s0 + $0xa0] sm:$0xff]  }
  0x18   : > { %v421_v52 = vshrl.u32 %v420_v49, 7 }
  0x1a   : > { %v5982_v56 = vsub.s32 0, %v421_v52 }
  0x1b   : > { %463 = vperm.xlu1 %5176, %v441_v33   ;;  %458 = vperm.xlu0 %5165, %v440_v34   ;;  %v4613_v33 = vunpack.c.l.bf16 %v5027_v31  ;;  %v4614_v34 = vunpack.c.h.bf16 %v5027_v31 }
  0x1f   : > { %473 = vperm.xlu1 %5176, %v443_v35   ;;  %468 = vperm.xlu0 %5165, %v442_v36   ;;  %v5262_v35 = vpack.i.bf16 %v4606_v28, %v4605_v26  ;;  %v5257_v36 = vpack.i.bf16 %v4602_v30, %v4601_v29 }
  0x23   : > { %483 = vperm.xlu1 %5176, %v445_v37   ;;  %478 = vperm.xlu0 %5165, %v444_v38   ;;  %v4609_v37 = vunpack.c.l.bf16 %v5026_v32  ;;  %v4610_v38 = vunpack.c.h.bf16 %v5026_v32 }
  0x27   : > { %493 = vperm.xlu1 %5176, %v447_v39   ;;  %488 = vperm.xlu0 %5165, %v446_v40   ;;  %v5029_v39 = vld [vmem:[%s7529_s0 + $0xb8] sm:$0xff]   ;;  %v5028_v40 = vld [vmem:[%s7529_s0 + $0xb0] sm:$0xff]  }
  0x2b   : > { %503 = vperm.xlu1 %5176, %v449_v41   ;;  %498 = vperm.xlu0 %5165, %v448_v42   ;;  %v5272_v41 = vpack.i.bf16 %v4614_v34, %v4613_v33  ;;  %v4621_v42 = vunpack.c.l.bf16 %v5029_v39 }
  0x2f   : > { %513 = vperm.xlu1 %5176, %v451_v43   ;;  %508 = vperm.xlu0 %5165, %v450_v44   ;;  %v5267_v43 = vpack.i.bf16 %v4610_v38, %v4609_v37  ;;  %v4622_v44 = vunpack.c.h.bf16 %v5029_v39 }
  0x31   : > { %v5282_v47 = vpack.i.bf16 %v4622_v44, %v4621_v42 }
  0x33   : > { %523 = vperm.xlu1 %5176, %v453_v45   ;;  %518 = vperm.xlu0 %5165, %v452_v46   ;;  %v4617_v45 = vunpack.c.l.bf16 %v5028_v40  ;;  %v4618_v46 = vunpack.c.h.bf16 %v5028_v40 }
  0x35   : > { %v5277_v48 = vpack.i.bf16 %v4618_v46, %v4617_v45 }
  0x37   : > { %533 = vperm.xlu1 %5176, %v455_v54   ;;  %528 = vperm.xlu0 %5165, %v454_v55   ;;  %v306_v55 = vld [vmem:[%s5979_s9] sm:$0x1] }
  0x38   : > { %v339_v57 = vunpack.c.l.bf16 %v306_v55  ;;  %v569_v55 = vld [vmem:[%s5979_s9] sm:$0x1] }
  0x3a   : > { %v5987_v62 = vrot.slane %v339_v57, %v5982_v56 }
  0x3b   : > { %5213 = vperm.xlu1 %5176, %v5212_v59   ;;  %5208 = vperm.xlu0 %5165, %v5207_v60  }
  0x3f   : > { %5223 = vperm.xlu1 %5176, %v5222_v3   ;;  %5218 = vperm.xlu0 %5165, %v5217_v4  }
  0x43   : > { %5233 = vperm.xlu1 %5176, %v5232_v9   ;;  %5228 = vperm.xlu0 %5165, %v5227_v11  }
  0x47   : > { %5243 = vperm.xlu1 %5176, %v5242_v19   ;;  %5238 = vperm.xlu0 %5165, %v5237_v20  }
  0x4b   : > { %5253 = vperm.xlu1 %5176, %v5252_v25   ;;  %5248 = vperm.xlu0 %5165, %v5247_v27  }
  0x4f   : > { %5263 = vperm.xlu1 %5176, %v5262_v35   ;;  %5258 = vperm.xlu0 %5165, %v5257_v36  }
  0x53   : > { %5273 = vperm.xlu1 %5176, %v5272_v41   ;;  %5268 = vperm.xlu0 %5165, %v5267_v43  }
  0x57   : > { %5283 = vperm.xlu1 %5176, %v5282_v47   ;;  %5278 = vperm.xlu0 %5165, %v5277_v48  }
  0x8a   : > { %v5179_v50 = vpop.permute.xlu1 %5178  ;;  %v5168_v51 = vpop.permute.xlu0 %5167 }
  0x8b   : > { %v5170_v60 = vunpack.i.h.bf16 %v5168_v51  ;;  %v5169_v61 = vunpack.i.l.bf16 %v5168_v51  ;;  %v5181_v9 = vunpack.i.h.bf16 %v5179_v50  ;;  %v5180_v10 = vunpack.i.l.bf16 %v5179_v50 }
  0x8d   : > { %v425_v3 = vmul.f32 %v5170_v60, %v5987_v62  ;;  %v424_v4 = vmul.f32 %v5169_v61, %v5987_v62  ;;  %v429_v19 = vmul.f32 %v5181_v9, %v5987_v62  ;;  %v428_v20 = vmul.f32 %v5180_v10, %v5987_v62 }
  0x8e   : > { %v5184_v53 = vpop.permute.xlu1 %5183  ;;  %v5173_v54 = vpop.permute.xlu0 %5172  ;;  %v603_v61 = vunpack.c.l.bf16 %v569_v55 }
  0x8f   : > { %v5175_v1 = vunpack.i.h.bf16 %v5173_v54  ;;  %v5174_v2 = vunpack.i.l.bf16 %v5173_v54  ;;  %v5186_v17 = vunpack.i.h.bf16 %v5184_v53  ;;  %v5185_v18 = vunpack.i.l.bf16 %v5184_v53 }
  0x91   : > { %v427_v11 = vmul.f32 %v5175_v1, %v5987_v62  ;;  %v426_v12 = vmul.f32 %v5174_v2, %v5987_v62  ;;  %v431_v27 = vmul.f32 %v5186_v17, %v5987_v62  ;;  %v430_v28 = vmul.f32 %v5185_v18, %v5987_v62 }
  0x92   : > { %v5984_v58 = vpop.permute.xlu1 %5193  ;;  %v5189_v59 = vpop.permute.xlu0 %5188 }
  0x93   : > { %v5191_v25 = vunpack.i.h.bf16 %v5189_v59  ;;  %v5190_v26 = vunpack.i.l.bf16 %v5189_v59  ;;  %v5196_v33 = vunpack.i.h.bf16 %v5984_v58  ;;  %v5195_v34 = vunpack.i.l.bf16 %v5984_v58 }
  0x95   : > { %v433_v35 = vmul.f32 %v5191_v25, %v5987_v62  ;;  %v432_v36 = vmul.f32 %v5190_v26, %v5987_v62  ;;  %v435_v43 = vmul.f32 %v5196_v33, %v5987_v62  ;;  %v434_v44 = vmul.f32 %v5195_v34, %v5987_v62 }
  0x96   : > { %v5989_v63 = vpop.permute.xlu1 %5203  ;;  %v5991_v0 = vpop.permute.xlu0 %5198 }
  0x97   : > { %v5201_v41 = vunpack.i.h.bf16 %v5991_v0  ;;  %v5200_v42 = vunpack.i.l.bf16 %v5991_v0  ;;  %v5206_v49 = vunpack.i.h.bf16 %v5989_v63  ;;  %v5205_v50 = vunpack.i.l.bf16 %v5989_v63 }
  0x99   : > { %v437_v51 = vmul.f32 %v5201_v41, %v5987_v62  ;;  %v436_v52 = vmul.f32 %v5200_v42, %v5987_v62  ;;  %v439_v59 = vmul.f32 %v5206_v49, %v5987_v62  ;;  %v438_v60 = vmul.f32 %v5205_v50, %v5987_v62 }
  0x9a   : > { %v464_v5 = vpop.permute.xlu1 %463  ;;  %v459_v6 = vpop.permute.xlu0 %458 }
  0x9b   : > { %v537_v7 = vadd.f32 %v464_v5, %v425_v3  ;;  %v536_v8 = vadd.f32 %v459_v6, %v424_v4  ;;  %v687_v3 = vrot.slane %v603_v61, %v5982_v56 }
  0x9d   : > { %554 = vst.msk [vmem:[%s6001_s13 + $0x8] sm:$0xff] %vm552_vm0, %v537_v7  ;;  %553 = vst.msk [vmem:[%s6001_s13] sm:$0xff] %vm552_vm0, %v536_v8 }
  0x9e   : > { %v474_v13 = vpop.permute.xlu1 %473  ;;  %v469_v14 = vpop.permute.xlu0 %468 }
  0x9f   : > { %v539_v15 = vadd.f32 %v474_v13, %v427_v11  ;;  %v538_v16 = vadd.f32 %v469_v14, %v426_v12 }
  0xa1   : > { %556 = vst.msk [vmem:[%s6001_s13 + $0x18] sm:$0xff] %vm552_vm0, %v539_v15  ;;  %555 = vst.msk [vmem:[%s6001_s13 + $0x10] sm:$0xff] %vm552_vm0, %v538_v16 }
  0xa2   : > { %v484_v21 = vpop.permute.xlu1 %483  ;;  %v479_v22 = vpop.permute.xlu0 %478 }
  0xa3   : > { %v541_v23 = vadd.f32 %v484_v21, %v429_v19  ;;  %v540_v24 = vadd.f32 %v479_v22, %v428_v20 }
  0xa5   : > { %558 = vst.msk [vmem:[%s6001_s13 + $0x28] sm:$0xff] %vm552_vm0, %v541_v23  ;;  %557 = vst.msk [vmem:[%s6001_s13 + $0x20] sm:$0xff] %vm552_vm0, %v540_v24 }
  0xa6   : > { %v494_v29 = vpop.permute.xlu1 %493  ;;  %v489_v30 = vpop.permute.xlu0 %488 }
  0xa7   : > { %v543_v31 = vadd.f32 %v494_v29, %v431_v27  ;;  %v542_v32 = vadd.f32 %v489_v30, %v430_v28 }
  0xa9   : > { %560 = vst.msk [vmem:[%s6001_s13 + $0x38] sm:$0xff] %vm552_vm0, %v543_v31  ;;  %559 = vst.msk [vmem:[%s6001_s13 + $0x30] sm:$0xff] %vm552_vm0, %v542_v32 }
  0xaa   : > { %v504_v37 = vpop.permute.xlu1 %503  ;;  %v499_v38 = vpop.permute.xlu0 %498 }
  0xab   : > { %v545_v39 = vadd.f32 %v504_v37, %v433_v35  ;;  %v544_v40 = vadd.f32 %v499_v38, %v432_v36  ;;  %v816_v36 = vld [vmem:[%s5979_s9] sm:$0x1] }
  0xac   : > { %v850_v38 = vunpack.c.l.bf16 %v816_v36 }
  0xad   : > { %562 = vst.msk [vmem:[%s6001_s13 + $0x48] sm:$0xff] %vm552_vm0, %v545_v39  ;;  %561 = vst.msk [vmem:[%s6001_s13 + $0x40] sm:$0xff] %vm552_vm0, %v544_v40 }
  0xae   : > { %v514_v45 = vpop.permute.xlu1 %513  ;;  %v509_v46 = vpop.permute.xlu0 %508 }
  0xaf   : > { %v547_v47 = vadd.f32 %v514_v45, %v435_v43  ;;  %v546_v48 = vadd.f32 %v509_v46, %v434_v44  ;;  %v6073_v44 = vrot.slane %v850_v38, %v5982_v56  ;;  %v5034_v38 = vld [vmem:[%s7529_s0 + $0xe0] sm:$0xff]  }
  0xb1   : > { %564 = vst.msk [vmem:[%s6001_s13 + $0x58] sm:$0xff] %vm552_vm0, %v547_v47  ;;  %563 = vst.msk [vmem:[%s6001_s13 + $0x50] sm:$0xff] %vm552_vm0, %v546_v48 }
  0xb2   : > { %v524_v53 = vpop.permute.xlu1 %523  ;;  %v519_v54 = vpop.permute.xlu0 %518 }
  0xb3   : > { %v549_v57 = vadd.f32 %v524_v53, %v437_v51  ;;  %v548_v58 = vadd.f32 %v519_v54, %v436_v52 }
  0xb5   : > { %566 = vst.msk [vmem:[%s6001_s13 + $0x68] sm:$0xff] %vm552_vm0, %v549_v57  ;;  %565 = vst.msk [vmem:[%s6001_s13 + $0x60] sm:$0xff] %vm552_vm0, %v548_v58 }
  0xb6   : > { %v534_v63 = vpop.permute.xlu1 %533  ;;  %v529_v0 = vpop.permute.xlu0 %528 }
  0xb7   : > { %v551_v1 = vadd.f32 %v534_v63, %v439_v59  ;;  %v550_v2 = vadd.f32 %v529_v0, %v438_v60 }
  0xb9   : > { %568 = vst.msk [vmem:[%s6001_s13 + $0x78] sm:$0xff] %vm552_vm0, %v551_v1  ;;  %567 = vst.msk [vmem:[%s6001_s13 + $0x70] sm:$0xff] %vm552_vm0, %v550_v2 }
  0xba   : > { %v5214_v4 = vpop.permute.xlu1 %5213  ;;  %v5209_v5 = vpop.permute.xlu0 %5208 }
  0xbb   : > { %v5211_v6 = vunpack.i.h.bf16 %v5209_v5  ;;  %v5210_v7 = vunpack.i.l.bf16 %v5209_v5  ;;  %v5216_v8 = vunpack.i.h.bf16 %v5214_v4  ;;  %v5215_v9 = vunpack.i.l.bf16 %v5214_v4 }
  0xbd   : > { %v689_v10 = vmul.f32 %v5211_v6, %v687_v3  ;;  %v688_v11 = vmul.f32 %v5210_v7, %v687_v3  ;;  %v691_v14 = vmul.f32 %v5216_v8, %v687_v3  ;;  %v690_v15 = vmul.f32 %v5215_v9, %v687_v3 }
  0xbe   : > { %v5219_v62 = vpop.permute.xlu0 %5218  ;;  %v5224_v16 = vpop.permute.xlu1 %5223 }
  0xbf   : > { %738 = vrot.lane.b32.xlu1 %v689_v10, %s5792_s14  ;;  %736 = vrot.lane.b32.xlu0 %v688_v11, %s5792_s14  ;;  %v5221_v12 = vunpack.i.h.bf16 %v5219_v62  ;;  %v5220_v13 = vunpack.i.l.bf16 %v5219_v62  ;;  %v5226_v17 = vunpack.i.h.bf16 %v5224_v16  ;;  %v5225_v18 = vunpack.i.l.bf16 %v5224_v16 }
  0xc1   : > { %v693_v19 = vmul.f32 %v5221_v12, %v687_v3  ;;  %v692_v20 = vmul.f32 %v5220_v13, %v687_v3  ;;  %v695_v24 = vmul.f32 %v5226_v17, %v687_v3  ;;  %v694_v25 = vmul.f32 %v5225_v18, %v687_v3  ;;  %v5031_v17 = vld [vmem:[%s7529_s0 + $0xc8] sm:$0xff]   ;;  %v5030_v18 = vld [vmem:[%s7529_s0 + $0xc0] sm:$0xff]  }
  0xc2   : > { %v5229_v21 = vpop.permute.xlu0 %5228  ;;  %v5234_v26 = vpop.permute.xlu1 %5233 }
  0xc3   : > { %742 = vrot.lane.b32.xlu1 %v691_v14, %s5792_s14  ;;  %740 = vrot.lane.b32.xlu0 %v690_v15, %s5792_s14  ;;  %v5231_v22 = vunpack.i.h.bf16 %v5229_v21  ;;  %v5230_v23 = vunpack.i.l.bf16 %v5229_v21  ;;  %v5236_v27 = vunpack.i.h.bf16 %v5234_v26  ;;  %v5235_v28 = vunpack.i.l.bf16 %v5234_v26 }
  0xc4   : > { %v4626_v26 = vunpack.c.h.bf16 %v5030_v18 }
  0xc5   : > { %v697_v29 = vmul.f32 %v5231_v22, %v687_v3  ;;  %v696_v30 = vmul.f32 %v5230_v23, %v687_v3  ;;  %v699_v34 = vmul.f32 %v5236_v27, %v687_v3  ;;  %v698_v35 = vmul.f32 %v5235_v28, %v687_v3  ;;  %v5033_v27 = vld [vmem:[%s7529_s0 + $0xd8] sm:$0xff]   ;;  %v5032_v28 = vld [vmem:[%s7529_s0 + $0xd0] sm:$0xff]  }
  0xc6   : > { %v5239_v31 = vpop.permute.xlu0 %5238  ;;  %v5244_v37 = vpop.permute.xlu1 %5243  ;;  %v4629_v23 = vunpack.c.l.bf16 %v5031_v17  ;;  %v4634_v36 = vunpack.c.h.bf16 %v5032_v28 }
  0xc7   : > { %746 = vrot.lane.b32.xlu1 %v693_v19, %s5792_s14  ;;  %744 = vrot.lane.b32.xlu0 %v692_v20, %s5792_s14  ;;  %v5241_v32 = vunpack.i.h.bf16 %v5239_v31  ;;  %v5240_v33 = vunpack.i.l.bf16 %v5239_v31  ;;  %v5246_v39 = vunpack.i.h.bf16 %v5244_v37  ;;  %v5245_v40 = vunpack.i.l.bf16 %v5244_v37  ;;  %v5035_v37 = vld [vmem:[%s7529_s0 + $0xe8] sm:$0xff]  }
  0xc9   : > { %v701_v41 = vmul.f32 %v5241_v32, %v687_v3  ;;  %v700_v42 = vmul.f32 %v5240_v33, %v687_v3  ;;  %v703_v47 = vmul.f32 %v5246_v39, %v687_v3  ;;  %v702_v48 = vmul.f32 %v5245_v40, %v687_v3 }
  0xca   : > { %v5249_v43 = vpop.permute.xlu0 %5248  ;;  %v5254_v49 = vpop.permute.xlu1 %5253  ;;  %v4637_v33 = vunpack.c.l.bf16 %v5033_v27  ;;  %v4645_v39 = vunpack.c.l.bf16 %v5035_v37  ;;  %v4646_v40 = vunpack.c.h.bf16 %v5035_v37  ;;  %v718_v37 = vld [vmem:[%s6001_s13 + $0x70] sm:$0xff] }
  0xcb   : > { %750 = vrot.lane.b32.xlu1 %v695_v24, %s5792_s14  ;;  %748 = vrot.lane.b32.xlu0 %v694_v25, %s5792_s14  ;;  %v5251_v45 = vunpack.i.h.bf16 %v5249_v43  ;;  %v5250_v46 = vunpack.i.l.bf16 %v5249_v43  ;;  %v5256_v50 = vunpack.i.h.bf16 %v5254_v49  ;;  %v5255_v51 = vunpack.i.l.bf16 %v5254_v49 }
  0xcc   : > { %v4630_v24 = vunpack.c.h.bf16 %v5031_v17  ;;  %v4625_v25 = vunpack.c.l.bf16 %v5030_v18  ;;  %v713_v17 = vld [vmem:[%s6001_s13 + $0x48] sm:$0xff] }
  0xcd   : > { %v936_v52 = vmul.f32 %v5251_v45, %v6073_v44  ;;  %v935_v53 = vmul.f32 %v5250_v46, %v6073_v44  ;;  %v938_v58 = vmul.f32 %v5256_v50, %v6073_v44  ;;  %v937_v59 = vmul.f32 %v5255_v51, %v6073_v44  ;;  %v5037_v45 = vld [vmem:[%s7529_s0 + $0xf8] sm:$0xff]   ;;  %v5036_v46 = vld [vmem:[%s7529_s0 + $0xf0] sm:$0xff]  }
  0xce   : > { %v5259_v54 = vpop.permute.xlu0 %5258  ;;  %v5264_v60 = vpop.permute.xlu1 %5263  ;;  %v5292_v31 = vpack.i.bf16 %v4630_v24, %v4629_v23  ;;  %v5287_v32 = vpack.i.bf16 %v4626_v26, %v4625_v25  ;;  %v4653_v49 = vunpack.c.l.bf16 %v5037_v45  ;;  %v4654_v50 = vunpack.c.h.bf16 %v5037_v45  ;;  %v715_v23 = vld [vmem:[%s6001_s13 + $0x58] sm:$0xff]  ;;  %v714_v25 = vld [vmem:[%s6001_s13 + $0x50] sm:$0xff] }
  0xcf   : > { %754 = vrot.lane.b32.xlu1 %v697_v29, %s5792_s14  ;;  %752 = vrot.lane.b32.xlu0 %v696_v30, %s5792_s14  ;;  %v5261_v55 = vunpack.i.h.bf16 %v5259_v54  ;;  %v5260_v57 = vunpack.i.l.bf16 %v5259_v54  ;;  %v5266_v61 = vunpack.i.h.bf16 %v5264_v60  ;;  %v5265_v63 = vunpack.i.l.bf16 %v5264_v60 }
  0xd0   : > { %v4649_v51 = vunpack.c.l.bf16 %v5036_v46 }
  0xd1   : > { %v940_v0 = vmul.f32 %v5261_v55, %v6073_v44  ;;  %v939_v1 = vmul.f32 %v5260_v57, %v6073_v44  ;;  %v942_v5 = vmul.f32 %v5266_v61, %v6073_v44  ;;  %v941_v6 = vmul.f32 %v5265_v63, %v6073_v44  ;;  %v705_v57 = vld [vmem:[%s6001_s13 + $0x8] sm:$0xff] }
  0xd2   : > { %v5269_v2 = vpop.permute.xlu0 %5268  ;;  %v5274_v7 = vpop.permute.xlu1 %5273 }
  0xd3   : > { %758 = vrot.lane.b32.xlu1 %v699_v34, %s5792_s14  ;;  %756 = vrot.lane.b32.xlu0 %v698_v35, %s5792_s14  ;;  %v5271_v3 = vunpack.i.h.bf16 %v5269_v2  ;;  %v5270_v4 = vunpack.i.l.bf16 %v5269_v2  ;;  %v5276_v8 = vunpack.i.h.bf16 %v5274_v7  ;;  %v5275_v9 = vunpack.i.l.bf16 %v5274_v7  ;;  %v706_v2 = vld [vmem:[%s6001_s13 + $0x10] sm:$0xff] }
  0xd4   : > { %v4638_v34 = vunpack.c.h.bf16 %v5033_v27  ;;  %v4633_v35 = vunpack.c.l.bf16 %v5032_v28 }
  0xd5   : > { %v944_v10 = vmul.f32 %v5271_v3, %v6073_v44  ;;  %v943_v11 = vmul.f32 %v5270_v4, %v6073_v44  ;;  %v946_v14 = vmul.f32 %v5276_v8, %v6073_v44  ;;  %v945_v15 = vmul.f32 %v5275_v9, %v6073_v44  ;;  %v708_v8 = vld [vmem:[%s6001_s13 + $0x20] sm:$0xff] }
  0xd6   : > { %v5279_v62 = vpop.permute.xlu0 %5278  ;;  %v5284_v16 = vpop.permute.xlu1 %5283  ;;  %v5302_v43 = vpack.i.bf16 %v4638_v34, %v4637_v33 }
  0xd7   : > { %762 = vrot.lane.b32.xlu1 %v701_v41, %s5792_s14  ;;  %760 = vrot.lane.b32.xlu0 %v700_v42, %s5792_s14  ;;  %v5281_v12 = vunpack.i.h.bf16 %v5279_v62  ;;  %v5280_v13 = vunpack.i.l.bf16 %v5279_v62  ;;  %v5286_v19 = vunpack.i.h.bf16 %v5284_v16  ;;  %v5285_v20 = vunpack.i.l.bf16 %v5284_v16  ;;  %v711_v62 = vld [vmem:[%s6001_s13 + $0x38] sm:$0xff] }
  0xd8   : > { %v4641_v41 = vunpack.c.l.bf16 %v5034_v38  ;;  %v4642_v42 = vunpack.c.h.bf16 %v5034_v38 }
  0xd9   : > { %v948_v21 = vmul.f32 %v5281_v12, %v6073_v44  ;;  %v947_v22 = vmul.f32 %v5280_v13, %v6073_v44  ;;  %v950_v29 = vmul.f32 %v5286_v19, %v6073_v44  ;;  %v949_v30 = vmul.f32 %v5285_v20, %v6073_v44  ;;  %v710_v13 = vld [vmem:[%s6001_s13 + $0x30] sm:$0xff]  ;;  %v712_v19 = vld [vmem:[%s6001_s13 + $0x40] sm:$0xff] }
  0xda   : > { %v5297_v44 = vpack.i.bf16 %v4634_v36, %v4633_v35  ;;  %v719_v35 = vld [vmem:[%s6001_s13 + $0x78] sm:$0xff] }
  0xdb   : > { %766 = vrot.lane.b32.xlu1 %v703_v47, %s5792_s14  ;;  %764 = vrot.lane.b32.xlu0 %v702_v48, %s5792_s14  ;;  %v5312_v47 = vpack.i.bf16 %v4646_v40, %v4645_v39  ;;  %v5307_v48 = vpack.i.bf16 %v4642_v42, %v4641_v41  ;;  %s5803_s14 = smov 116  }
  0xdf   : > { %985 = vrot.lane.b32.xlu1 %v936_v52, %s5793_s19  ;;  %983 = vrot.lane.b32.xlu0 %v935_v53, %s5793_s19  ;;  %v4650_v52 = vunpack.c.h.bf16 %v5036_v46  ;;  %v5322_v53 = vpack.i.bf16 %v4654_v50, %v4653_v49 }
  0xe1   : > { %v5317_v54 = vpack.i.bf16 %v4650_v52, %v4649_v51 }
  0xe3   : > { %989 = vrot.lane.b32.xlu1 %v938_v58, %s5793_s19  ;;  %987 = vrot.lane.b32.xlu0 %v937_v59, %s5793_s19  ;;  %v704_v59 = vld [vmem:[%s6001_s13] sm:$0xff] }
  0xe7   : > { %993 = vrot.lane.b32.xlu1 %v940_v0, %s5793_s19  ;;  %991 = vrot.lane.b32.xlu0 %v939_v1, %s5793_s19  ;;  %v707_v0 = vld [vmem:[%s6001_s13 + $0x18] sm:$0xff] }
  0xeb   : > { %997 = vrot.lane.b32.xlu1 %v942_v5, %s5793_s19  ;;  %995 = vrot.lane.b32.xlu0 %v941_v6, %s5793_s19  ;;  %v709_v6 = vld [vmem:[%s6001_s13 + $0x28] sm:$0xff] }
  0xef   : > { %1001 = vrot.lane.b32.xlu1 %v944_v10, %s5793_s19  ;;  %999 = vrot.lane.b32.xlu0 %v943_v11, %s5793_s19 }
  0xf3   : > { %1005 = vrot.lane.b32.xlu1 %v946_v14, %s5793_s19  ;;  %1003 = vrot.lane.b32.xlu0 %v945_v15, %s5793_s19 }
  0xf7   : > { %1009 = vrot.lane.b32.xlu1 %v948_v21, %s5793_s19  ;;  %1007 = vrot.lane.b32.xlu0 %v947_v22, %s5793_s19 }
  0xfb   : > { %1013 = vrot.lane.b32.xlu1 %v950_v29, %s5793_s19  ;;  %1011 = vrot.lane.b32.xlu0 %v949_v30, %s5793_s19  ;;  %v717_v29 = vld [vmem:[%s6001_s13 + $0x68] sm:$0xff] }
  0xff   : > { %5293 = vperm.xlu1 %5176, %v5292_v31   ;;  %5288 = vperm.xlu0 %5165, %v5287_v32   ;;  %v716_v31 = vld [vmem:[%s6001_s13 + $0x60] sm:$0xff] }
 0x103   : > { %5303 = vperm.xlu1 %5176, %v5302_v43   ;;  %5298 = vperm.xlu0 %5165, %v5297_v44  }
 0x107   : > { %5313 = vperm.xlu1 %5176, %v5312_v47   ;;  %5308 = vperm.xlu0 %5165, %v5307_v48  }
 0x10b   : > { %5323 = vperm.xlu1 %5176, %v5322_v53   ;;  %5318 = vperm.xlu0 %5165, %v5317_v54  }
 0x131   : > { %v739_v55 = vpop.permute.xlu1 %738  ;;  %v737_v58 = vpop.permute.xlu0 %736 }
 0x132   : > { %v785_v60 = vadd.f32 %v739_v55, %v705_v57  ;;  %v784_v61 = vadd.f32 %v737_v58, %v704_v59 }
 0x134   : > { %801 = vst.msk [vmem:[%s6001_s13 + $0x8] sm:$0xff] %vm552_vm0, %v785_v60  ;;  %800 = vst.msk [vmem:[%s6001_s13] sm:$0xff] %vm552_vm0, %v784_v61 }
 0x135   : > { %v743_v63 = vpop.permute.xlu1 %742  ;;  %v741_v1 = vpop.permute.xlu0 %740 }
 0x136   : > { %v787_v3 = vadd.f32 %v743_v63, %v707_v0  ;;  %v786_v4 = vadd.f32 %v741_v1, %v706_v2 }
 0x138   : > { %803 = vst.msk [vmem:[%s6001_s13 + $0x18] sm:$0xff] %vm552_vm0, %v787_v3  ;;  %802 = vst.msk [vmem:[%s6001_s13 + $0x10] sm:$0xff] %vm552_vm0, %v786_v4 }
 0x139   : > { %v747_v5 = vpop.permute.xlu1 %746  ;;  %v745_v7 = vpop.permute.xlu0 %744 }
 0x13a   : > { %v789_v9 = vadd.f32 %v747_v5, %v709_v6  ;;  %v788_v10 = vadd.f32 %v745_v7, %v708_v8 }
 0x13b   : > { %v952_v41 = vld [vmem:[%s6001_s13 + $0x8] sm:$0xff]  ;;  %v951_v43 = vld [vmem:[%s6001_s13] sm:$0xff] }
 0x13c   : > { %805 = vst.msk [vmem:[%s6001_s13 + $0x28] sm:$0xff] %vm552_vm0, %v789_v9  ;;  %804 = vst.msk [vmem:[%s6001_s13 + $0x20] sm:$0xff] %vm552_vm0, %v788_v10 }
 0x13d   : > { %v751_v11 = vpop.permute.xlu1 %750  ;;  %v749_v12 = vpop.permute.xlu0 %748 }
 0x13e   : > { %v791_v14 = vadd.f32 %v751_v11, %v711_v62  ;;  %v790_v15 = vadd.f32 %v749_v12, %v710_v13 }
 0x13f   : > { %v954_v47 = vld [vmem:[%s6001_s13 + $0x18] sm:$0xff]  ;;  %v953_v49 = vld [vmem:[%s6001_s13 + $0x10] sm:$0xff] }
 0x140   : > { %807 = vst.msk [vmem:[%s6001_s13 + $0x38] sm:$0xff] %vm552_vm0, %v791_v14  ;;  %806 = vst.msk [vmem:[%s6001_s13 + $0x30] sm:$0xff] %vm552_vm0, %v790_v15 }
 0x141   : > { %v755_v16 = vpop.permute.xlu1 %754  ;;  %v753_v18 = vpop.permute.xlu0 %752 }
 0x142   : > { %v793_v20 = vadd.f32 %v755_v16, %v713_v17  ;;  %v792_v21 = vadd.f32 %v753_v18, %v712_v19 }
 0x143   : > { %v956_v53 = vld [vmem:[%s6001_s13 + $0x28] sm:$0xff]  ;;  %v955_v55 = vld [vmem:[%s6001_s13 + $0x20] sm:$0xff] }
 0x144   : > { %809 = vst.msk [vmem:[%s6001_s13 + $0x48] sm:$0xff] %vm552_vm0, %v793_v20  ;;  %808 = vst.msk [vmem:[%s6001_s13 + $0x40] sm:$0xff] %vm552_vm0, %v792_v21 }
 0x145   : > { %v759_v22 = vpop.permute.xlu1 %758  ;;  %v757_v24 = vpop.permute.xlu0 %756 }
 0x146   : > { %v795_v26 = vadd.f32 %v759_v22, %v715_v23  ;;  %v794_v27 = vadd.f32 %v757_v24, %v714_v25  ;;  %v1063_v25 = vld [vmem:[%s5979_s9] sm:$0x1] }
 0x147   : > { %v958_v60 = vld [vmem:[%s6001_s13 + $0x38] sm:$0xff]  ;;  %v957_v63 = vld [vmem:[%s6001_s13 + $0x30] sm:$0xff] }
 0x148   : > { %811 = vst.msk [vmem:[%s6001_s13 + $0x58] sm:$0xff] %vm552_vm0, %v795_v26  ;;  %810 = vst.msk [vmem:[%s6001_s13 + $0x50] sm:$0xff] %vm552_vm0, %v794_v27  ;;  %v1097_v26 = vunpack.c.l.bf16 %v1063_v25 }
 0x149   : > { %v763_v28 = vpop.permute.xlu1 %762  ;;  %v761_v30 = vpop.permute.xlu0 %760 }
 0x14a   : > { %v797_v32 = vadd.f32 %v763_v28, %v717_v29  ;;  %v796_v33 = vadd.f32 %v761_v30, %v716_v31  ;;  %v6231_v27 = vrot.slane %v1097_v26, %v5982_v56 }
 0x14b   : > { %v960_v3 = vld [vmem:[%s6001_s13 + $0x48] sm:$0xff]  ;;  %v959_v5 = vld [vmem:[%s6001_s13 + $0x40] sm:$0xff] }
 0x14c   : > { %813 = vst.msk [vmem:[%s6001_s13 + $0x68] sm:$0xff] %vm552_vm0, %v797_v32  ;;  %812 = vst.msk [vmem:[%s6001_s13 + $0x60] sm:$0xff] %vm552_vm0, %v796_v33 }
 0x14d   : > { %v767_v34 = vpop.permute.xlu1 %766  ;;  %v765_v36 = vpop.permute.xlu0 %764 }
 0x14e   : > { %v799_v38 = vadd.f32 %v767_v34, %v719_v35  ;;  %v798_v39 = vadd.f32 %v765_v36, %v718_v37 }
 0x14f   : > { %v962_v9 = vld [vmem:[%s6001_s13 + $0x58] sm:$0xff]  ;;  %v961_v11 = vld [vmem:[%s6001_s13 + $0x50] sm:$0xff] }
 0x150   : > { %815 = vst.msk [vmem:[%s6001_s13 + $0x78] sm:$0xff] %vm552_vm0, %v799_v38  ;;  %814 = vst.msk [vmem:[%s6001_s13 + $0x70] sm:$0xff] %vm552_vm0, %v798_v39 }
 0x151   : > { %v986_v40 = vpop.permute.xlu1 %985  ;;  %v984_v42 = vpop.permute.xlu0 %983 }
 0x152   : > { %v1032_v44 = vadd.f32 %v986_v40, %v952_v41  ;;  %v1031_v45 = vadd.f32 %v984_v42, %v951_v43 }
 0x153   : > { %v964_v14 = vld [vmem:[%s6001_s13 + $0x68] sm:$0xff]  ;;  %v963_v16 = vld [vmem:[%s6001_s13 + $0x60] sm:$0xff] }
 0x154   : > { %1048 = vst.msk [vmem:[%s6001_s13 + $0x8] sm:$0xff] %vm552_vm0, %v1032_v44  ;;  %1047 = vst.msk [vmem:[%s6001_s13] sm:$0xff] %vm552_vm0, %v1031_v45 }
 0x155   : > { %v990_v46 = vpop.permute.xlu1 %989  ;;  %v988_v48 = vpop.permute.xlu0 %987 }
 0x156   : > { %v1034_v50 = vadd.f32 %v990_v46, %v954_v47  ;;  %v1033_v51 = vadd.f32 %v988_v48, %v953_v49 }
 0x157   : > { %v966_v20 = vld [vmem:[%s6001_s13 + $0x78] sm:$0xff]  ;;  %v965_v22 = vld [vmem:[%s6001_s13 + $0x70] sm:$0xff] }
 0x158   : > { %1050 = vst.msk [vmem:[%s6001_s13 + $0x18] sm:$0xff] %vm552_vm0, %v1034_v50  ;;  %1049 = vst.msk [vmem:[%s6001_s13 + $0x10] sm:$0xff] %vm552_vm0, %v1033_v51 }
 0x159   : > { %v994_v52 = vpop.permute.xlu1 %993  ;;  %v992_v54 = vpop.permute.xlu0 %991 }
 0x15a   : > { %v1036_v57 = vadd.f32 %v994_v52, %v956_v53  ;;  %v1035_v58 = vadd.f32 %v992_v54, %v955_v55 }
 0x15c   : > { %1052 = vst.msk [vmem:[%s6001_s13 + $0x28] sm:$0xff] %vm552_vm0, %v1036_v57  ;;  %1051 = vst.msk [vmem:[%s6001_s13 + $0x20] sm:$0xff] %vm552_vm0, %v1035_v58 }
 0x15d   : > { %v998_v59 = vpop.permute.xlu1 %997  ;;  %v996_v61 = vpop.permute.xlu0 %995 }
 0x15e   : > { %v1038_v0 = vadd.f32 %v998_v59, %v958_v60  ;;  %v1037_v1 = vadd.f32 %v996_v61, %v957_v63 }
 0x160   : > { %1054 = vst.msk [vmem:[%s6001_s13 + $0x38] sm:$0xff] %vm552_vm0, %v1038_v0  ;;  %1053 = vst.msk [vmem:[%s6001_s13 + $0x30] sm:$0xff] %vm552_vm0, %v1037_v1  ;;  %v5039_v0 = vld [vmem:[%s7529_s0 + $0x108] sm:$0xff]   ;;  %v5038_v1 = vld [vmem:[%s7529_s0 + $0x100] sm:$0xff]  }
 0x161   : > { %v1002_v2 = vpop.permute.xlu1 %1001  ;;  %v1000_v4 = vpop.permute.xlu0 %999 }
 0x162   : > { %v1040_v6 = vadd.f32 %v1002_v2, %v960_v3  ;;  %v1039_v7 = vadd.f32 %v1000_v4, %v959_v5 }
 0x164   : > { %1056 = vst.msk [vmem:[%s6001_s13 + $0x48] sm:$0xff] %vm552_vm0, %v1040_v6  ;;  %1055 = vst.msk [vmem:[%s6001_s13 + $0x40] sm:$0xff] %vm552_vm0, %v1039_v7  ;;  %v4661_v6 = vunpack.c.l.bf16 %v5039_v0  ;;  %v4662_v7 = vunpack.c.h.bf16 %v5039_v0 }
 0x165   : > { %v1006_v8 = vpop.permute.xlu1 %1005  ;;  %v1004_v10 = vpop.permute.xlu0 %1003 }
 0x166   : > { %v1042_v62 = vadd.f32 %v1006_v8, %v962_v9  ;;  %v1041_v12 = vadd.f32 %v1004_v10, %v961_v11  ;;  %v4657_v8 = vunpack.c.l.bf16 %v5038_v1  ;;  %v4658_v9 = vunpack.c.h.bf16 %v5038_v1  ;;  %v5041_v10 = vld [vmem:[%s7529_s0 + $0x118] sm:$0xff]   ;;  %v5040_v11 = vld [vmem:[%s7529_s0 + $0x110] sm:$0xff]  }
 0x168   : > { %1058 = vst.msk [vmem:[%s6001_s13 + $0x58] sm:$0xff] %vm552_vm0, %v1042_v62  ;;  %1057 = vst.msk [vmem:[%s6001_s13 + $0x50] sm:$0xff] %vm552_vm0, %v1041_v12 }
 0x169   : > { %v1010_v13 = vpop.permute.xlu1 %1009  ;;  %v1008_v15 = vpop.permute.xlu0 %1007 }
 0x16a   : > { %v1044_v17 = vadd.f32 %v1010_v13, %v964_v14  ;;  %v1043_v18 = vadd.f32 %v1008_v15, %v963_v16  ;;  %v5332_v13 = vpack.i.bf16 %v4662_v7, %v4661_v6  ;;  %v5327_v14 = vpack.i.bf16 %v4658_v9, %v4657_v8 }
 0x16b   : > { %v4669_v15 = vunpack.c.l.bf16 %v5041_v10  ;;  %v4670_v16 = vunpack.c.h.bf16 %v5041_v10  ;;  %v1207_v0 = vld [vmem:[%s6001_s13 + $0x48] sm:$0xff] }
 0x16c   : > { %1060 = vst.msk [vmem:[%s6001_s13 + $0x68] sm:$0xff] %vm552_vm0, %v1044_v17  ;;  %1059 = vst.msk [vmem:[%s6001_s13 + $0x60] sm:$0xff] %vm552_vm0, %v1043_v18  ;;  %v4665_v17 = vunpack.c.l.bf16 %v5040_v11  ;;  %v4666_v18 = vunpack.c.h.bf16 %v5040_v11 }
 0x16d   : > { %v1014_v19 = vpop.permute.xlu1 %1013  ;;  %v1012_v21 = vpop.permute.xlu0 %1011  ;;  %v5342_v25 = vpack.i.bf16 %v4670_v16, %v4669_v15 }
 0x16e   : > { %v1046_v23 = vadd.f32 %v1014_v19, %v966_v20  ;;  %v1045_v24 = vadd.f32 %v1012_v21, %v965_v22  ;;  %v5043_v19 = vld [vmem:[%s7529_s0 + $0x128] sm:$0xff]   ;;  %v5042_v20 = vld [vmem:[%s7529_s0 + $0x120] sm:$0xff]   ;;  %v5337_v26 = vpack.i.bf16 %v4666_v18, %v4665_v17 }
 0x16f   : > { %v4677_v21 = vunpack.c.l.bf16 %v5043_v19  ;;  %v4678_v22 = vunpack.c.h.bf16 %v5043_v19  ;;  %v1209_v6 = vld [vmem:[%s6001_s13 + $0x58] sm:$0xff]  ;;  %v1208_v8 = vld [vmem:[%s6001_s13 + $0x50] sm:$0xff] }
 0x170   : > { %1062 = vst.msk [vmem:[%s6001_s13 + $0x78] sm:$0xff] %vm552_vm0, %v1046_v23  ;;  %1061 = vst.msk [vmem:[%s6001_s13 + $0x70] sm:$0xff] %vm552_vm0, %v1045_v24  ;;  %v4673_v23 = vunpack.c.l.bf16 %v5042_v20  ;;  %v4674_v24 = vunpack.c.h.bf16 %v5042_v20 }
 0x177   : > { %v1213_v17 = vld [vmem:[%s6001_s13 + $0x78] sm:$0xff]  ;;  %v1212_v19 = vld [vmem:[%s6001_s13 + $0x70] sm:$0xff] }
 0x17e   : > { %v5294_v28 = vpop.permute.xlu1 %5293  ;;  %v5289_v29 = vpop.permute.xlu0 %5288 }
 0x17f   : > { %v5291_v30 = vunpack.i.h.bf16 %v5289_v29  ;;  %v5290_v31 = vunpack.i.l.bf16 %v5289_v29  ;;  %v5296_v32 = vunpack.i.h.bf16 %v5294_v28  ;;  %v5295_v33 = vunpack.i.l.bf16 %v5294_v28  ;;  %v5044_v28 = vld [vmem:[%s7529_s0 + $0x130] sm:$0xff]  }
 0x180   : > { %v5352_v29 = vpack.i.bf16 %v4678_v22, %v4677_v21  ;;  %v1310_v22 = vld [vmem:[%s5979_s9] sm:$0x1] }
 0x181   : > { %v1183_v34 = vmul.f32 %v5291_v30, %v6231_v27  ;;  %v1182_v35 = vmul.f32 %v5290_v31, %v6231_v27  ;;  %v1185_v39 = vmul.f32 %v5296_v32, %v6231_v27  ;;  %v1184_v40 = vmul.f32 %v5295_v33, %v6231_v27 }
 0x182   : > { %v5299_v36 = vpop.permute.xlu0 %5298  ;;  %v5304_v41 = vpop.permute.xlu1 %5303  ;;  %v5347_v30 = vpack.i.bf16 %v4674_v24, %v4673_v23  ;;  %v4681_v33 = vunpack.c.l.bf16 %v5044_v28  ;;  %v1344_v23 = vunpack.c.l.bf16 %v1310_v22 }
 0x183   : > { %1232 = vrot.lane.b32.xlu1 %v1183_v34, %s5794_s12  ;;  %1230 = vrot.lane.b32.xlu0 %v1182_v35, %s5794_s12  ;;  %v5301_v37 = vunpack.i.h.bf16 %v5299_v36  ;;  %v5300_v38 = vunpack.i.l.bf16 %v5299_v36  ;;  %v5306_v42 = vunpack.i.h.bf16 %v5304_v41  ;;  %v5305_v43 = vunpack.i.l.bf16 %v5304_v41 }
 0x184   : > { %v4682_v34 = vunpack.c.h.bf16 %v5044_v28  ;;  %v6339_v24 = vrot.slane %v1344_v23, %v5982_v56 }
 0x185   : > { %v1187_v44 = vmul.f32 %v5301_v37, %v6231_v27  ;;  %v1186_v45 = vmul.f32 %v5300_v38, %v6231_v27  ;;  %v1189_v49 = vmul.f32 %v5306_v42, %v6231_v27  ;;  %v1188_v50 = vmul.f32 %v5305_v43, %v6231_v27  ;;  %v1199_v38 = vld [vmem:[%s6001_s13 + $0x8] sm:$0xff] }
 0x186   : > { %v5309_v46 = vpop.permute.xlu0 %5308  ;;  %v5314_v51 = vpop.permute.xlu1 %5313  ;;  %v5357_v36 = vpack.i.bf16 %v4682_v34, %v4681_v33 }
 0x187   : > { %1236 = vrot.lane.b32.xlu1 %v1185_v39, %s5794_s12  ;;  %1234 = vrot.lane.b32.xlu0 %v1184_v40, %s5794_s12  ;;  %v5311_v47 = vunpack.i.h.bf16 %v5309_v46  ;;  %v5310_v48 = vunpack.i.l.bf16 %v5309_v46  ;;  %v5316_v52 = vunpack.i.h.bf16 %v5314_v51  ;;  %v5315_v53 = vunpack.i.l.bf16 %v5314_v51  ;;  %v1198_v40 = vld [vmem:[%s6001_s13] sm:$0xff]  ;;  %v1200_v46 = vld [vmem:[%s6001_s13 + $0x10] sm:$0xff] }
 0x189   : > { %v1191_v54 = vmul.f32 %v5311_v47, %v6231_v27  ;;  %v1190_v55 = vmul.f32 %v5310_v48, %v6231_v27  ;;  %v1193_v60 = vmul.f32 %v5316_v52, %v6231_v27  ;;  %v1192_v61 = vmul.f32 %v5315_v53, %v6231_v27  ;;  %v1202_v52 = vld [vmem:[%s6001_s13 + $0x20] sm:$0xff] }
 0x18a   : > { %v5319_v57 = vpop.permute.xlu0 %5318  ;;  %v5324_v63 = vpop.permute.xlu1 %5323 }
 0x18b   : > { %1240 = vrot.lane.b32.xlu1 %v1187_v44, %s5794_s12  ;;  %1238 = vrot.lane.b32.xlu0 %v1186_v45, %s5794_s12  ;;  %v5321_v58 = vunpack.i.h.bf16 %v5319_v57  ;;  %v5320_v59 = vunpack.i.l.bf16 %v5319_v57  ;;  %v5326_v2 = vunpack.i.h.bf16 %v5324_v63  ;;  %v5325_v3 = vunpack.i.l.bf16 %v5324_v63  ;;  %v1201_v44 = vld [vmem:[%s6001_s13 + $0x18] sm:$0xff] }
 0x18c   : > { %v1205_v57 = vld [vmem:[%s6001_s13 + $0x38] sm:$0xff] }
 0x18d   : > { %v1195_v4 = vmul.f32 %v5321_v58, %v6231_v27  ;;  %v1194_v5 = vmul.f32 %v5320_v59, %v6231_v27  ;;  %v1197_v62 = vmul.f32 %v5326_v2, %v6231_v27  ;;  %v1196_v12 = vmul.f32 %v5325_v3, %v6231_v27  ;;  %v5045_v27 = vld [vmem:[%s7529_s0 + $0x138] sm:$0xff]   ;;  %v1204_v59 = vld [vmem:[%s6001_s13 + $0x30] sm:$0xff]  ;;  %v1206_v2 = vld [vmem:[%s6001_s13 + $0x40] sm:$0xff] }
 0x18e   : > { %v4685_v31 = vunpack.c.l.bf16 %v5045_v27  ;;  %v4686_v32 = vunpack.c.h.bf16 %v5045_v27 }
 0x18f   : > { %1244 = vrot.lane.b32.xlu1 %v1189_v49, %s5794_s12  ;;  %1242 = vrot.lane.b32.xlu0 %v1188_v50, %s5794_s12  ;;  %v1203_v50 = vld [vmem:[%s6001_s13 + $0x28] sm:$0xff] }
 0x190   : > { %v5362_v35 = vpack.i.bf16 %v4686_v32, %v4685_v31 }
 0x193   : > { %1248 = vrot.lane.b32.xlu1 %v1191_v54, %s5794_s12  ;;  %1246 = vrot.lane.b32.xlu0 %v1190_v55, %s5794_s12 }
 0x197   : > { %1252 = vrot.lane.b32.xlu1 %v1193_v60, %s5794_s12  ;;  %1250 = vrot.lane.b32.xlu0 %v1192_v61, %s5794_s12 }
 0x19b   : > { %1256 = vrot.lane.b32.xlu1 %v1195_v4, %s5794_s12  ;;  %1254 = vrot.lane.b32.xlu0 %v1194_v5, %s5794_s12 }
 0x19f   : > { %1260 = vrot.lane.b32.xlu1 %v1197_v62, %s5794_s12  ;;  %1258 = vrot.lane.b32.xlu0 %v1196_v12, %s5794_s12  ;;  %v1211_v62 = vld [vmem:[%s6001_s13 + $0x68] sm:$0xff] }
 0x1a3   : > { %5333 = vperm.xlu1 %5176, %v5332_v13   ;;  %5328 = vperm.xlu0 %5165, %v5327_v14   ;;  %v1210_v13 = vld [vmem:[%s6001_s13 + $0x60] sm:$0xff] }
 0x1a7   : > { %5343 = vperm.xlu1 %5176, %v5342_v25   ;;  %5338 = vperm.xlu0 %5165, %v5337_v26  }
 0x1ab   : > { %5353 = vperm.xlu1 %5176, %v5352_v29   ;;  %5348 = vperm.xlu0 %5165, %v5347_v30  }
 0x1af   : > { %5363 = vperm.xlu1 %5176, %v5362_v35   ;;  %5358 = vperm.xlu0 %5165, %v5357_v36  }
 0x1f5   : > { %v1233_v37 = vpop.permute.xlu1 %1232  ;;  %v1231_v39 = vpop.permute.xlu0 %1230 }
 0x1f6   : > { %v1279_v41 = vadd.f32 %v1233_v37, %v1199_v38  ;;  %v1278_v42 = vadd.f32 %v1231_v39, %v1198_v40 }
 0x1f8   : > { %1295 = vst.msk [vmem:[%s6001_s13 + $0x8] sm:$0xff] %vm552_vm0, %v1279_v41  ;;  %1294 = vst.msk [vmem:[%s6001_s13] sm:$0xff] %vm552_vm0, %v1278_v42 }
 0x1f9   : > { %v1237_v43 = vpop.permute.xlu1 %1236  ;;  %v1235_v45 = vpop.permute.xlu0 %1234 }
 0x1fa   : > { %v1281_v47 = vadd.f32 %v1237_v43, %v1201_v44  ;;  %v1280_v48 = vadd.f32 %v1235_v45, %v1200_v46 }
 0x1fc   : > { %1297 = vst.msk [vmem:[%s6001_s13 + $0x18] sm:$0xff] %vm552_vm0, %v1281_v47  ;;  %1296 = vst.msk [vmem:[%s6001_s13 + $0x10] sm:$0xff] %vm552_vm0, %v1280_v48 }
 0x1fd   : > { %v1241_v49 = vpop.permute.xlu1 %1240  ;;  %v1239_v51 = vpop.permute.xlu0 %1238 }
 0x1fe   : > { %v1283_v53 = vadd.f32 %v1241_v49, %v1203_v50  ;;  %v1282_v54 = vadd.f32 %v1239_v51, %v1202_v52 }
 0x200   : > { %1299 = vst.msk [vmem:[%s6001_s13 + $0x28] sm:$0xff] %vm552_vm0, %v1283_v53  ;;  %1298 = vst.msk [vmem:[%s6001_s13 + $0x20] sm:$0xff] %vm552_vm0, %v1282_v54 }
 0x201   : > { %v1245_v55 = vpop.permute.xlu1 %1244  ;;  %v1243_v58 = vpop.permute.xlu0 %1242 }
 0x202   : > { %v1285_v60 = vadd.f32 %v1245_v55, %v1205_v57  ;;  %v1284_v61 = vadd.f32 %v1243_v58, %v1204_v59 }
 0x204   : > { %1301 = vst.msk [vmem:[%s6001_s13 + $0x38] sm:$0xff] %vm552_vm0, %v1285_v60  ;;  %1300 = vst.msk [vmem:[%s6001_s13 + $0x30] sm:$0xff] %vm552_vm0, %v1284_v61  ;;  %v5047_v60 = vld [vmem:[%s7529_s0 + $0x148] sm:$0xff]   ;;  %v5046_v61 = vld [vmem:[%s7529_s0 + $0x140] sm:$0xff]  }
 0x205   : > { %v1249_v63 = vpop.permute.xlu1 %1248  ;;  %v1247_v1 = vpop.permute.xlu0 %1246 }
 0x206   : > { %v1287_v3 = vadd.f32 %v1249_v63, %v1207_v0  ;;  %v1286_v4 = vadd.f32 %v1247_v1, %v1206_v2 }
 0x208   : > { %1303 = vst.msk [vmem:[%s6001_s13 + $0x48] sm:$0xff] %vm552_vm0, %v1287_v3  ;;  %1302 = vst.msk [vmem:[%s6001_s13 + $0x40] sm:$0xff] %vm552_vm0, %v1286_v4  ;;  %v4693_v3 = vunpack.c.l.bf16 %v5047_v60  ;;  %v4694_v4 = vunpack.c.h.bf16 %v5047_v60 }
 0x209   : > { %v1253_v5 = vpop.permute.xlu1 %1252  ;;  %v1251_v7 = vpop.permute.xlu0 %1250 }
 0x20a   : > { %v1289_v9 = vadd.f32 %v1253_v5, %v1209_v6  ;;  %v1288_v10 = vadd.f32 %v1251_v7, %v1208_v8  ;;  %v4689_v5 = vunpack.c.l.bf16 %v5046_v61  ;;  %v4690_v6 = vunpack.c.h.bf16 %v5046_v61  ;;  %v5049_v7 = vld [vmem:[%s7529_s0 + $0x158] sm:$0xff]   ;;  %v5048_v8 = vld [vmem:[%s7529_s0 + $0x150] sm:$0xff]  }
 0x20c   : > { %1305 = vst.msk [vmem:[%s6001_s13 + $0x58] sm:$0xff] %vm552_vm0, %v1289_v9  ;;  %1304 = vst.msk [vmem:[%s6001_s13 + $0x50] sm:$0xff] %vm552_vm0, %v1288_v10 }
 0x20d   : > { %v1257_v11 = vpop.permute.xlu1 %1256  ;;  %v1255_v12 = vpop.permute.xlu0 %1254 }
 0x20e   : > { %v1291_v14 = vadd.f32 %v1257_v11, %v1211_v62  ;;  %v1290_v15 = vadd.f32 %v1255_v12, %v1210_v13  ;;  %v5372_v11 = vpack.i.bf16 %v4694_v4, %v4693_v3  ;;  %v5367_v62 = vpack.i.bf16 %v4690_v6, %v4689_v5 }
 0x20f   : > { %v4701_v12 = vunpack.c.l.bf16 %v5049_v7  ;;  %v4702_v13 = vunpack.c.h.bf16 %v5049_v7  ;;  %v1454_v60 = vld [vmem:[%s6001_s13 + $0x48] sm:$0xff] }
 0x210   : > { %1307 = vst.msk [vmem:[%s6001_s13 + $0x68] sm:$0xff] %vm552_vm0, %v1291_v14  ;;  %1306 = vst.msk [vmem:[%s6001_s13 + $0x60] sm:$0xff] %vm552_vm0, %v1290_v15  ;;  %v4697_v14 = vunpack.c.l.bf16 %v5048_v8  ;;  %v4698_v15 = vunpack.c.h.bf16 %v5048_v8 }
 0x211   : > { %v1261_v16 = vpop.permute.xlu1 %1260  ;;  %v1259_v18 = vpop.permute.xlu0 %1258  ;;  %v5382_v22 = vpack.i.bf16 %v4702_v13, %v4701_v12 }
 0x212   : > { %v1293_v20 = vadd.f32 %v1261_v16, %v1213_v17  ;;  %v1292_v21 = vadd.f32 %v1259_v18, %v1212_v19  ;;  %v5051_v16 = vld [vmem:[%s7529_s0 + $0x168] sm:$0xff]   ;;  %v5050_v17 = vld [vmem:[%s7529_s0 + $0x160] sm:$0xff]   ;;  %v5377_v23 = vpack.i.bf16 %v4698_v15, %v4697_v14 }
 0x213   : > { %v4709_v18 = vunpack.c.l.bf16 %v5051_v16  ;;  %v4710_v19 = vunpack.c.h.bf16 %v5051_v16  ;;  %v1456_v3 = vld [vmem:[%s6001_s13 + $0x58] sm:$0xff]  ;;  %v1455_v5 = vld [vmem:[%s6001_s13 + $0x50] sm:$0xff] }
 0x214   : > { %1309 = vst.msk [vmem:[%s6001_s13 + $0x78] sm:$0xff] %vm552_vm0, %v1293_v20  ;;  %1308 = vst.msk [vmem:[%s6001_s13 + $0x70] sm:$0xff] %vm552_vm0, %v1292_v21  ;;  %v4705_v20 = vunpack.c.l.bf16 %v5050_v17  ;;  %v4706_v21 = vunpack.c.h.bf16 %v5050_v17 }
 0x21b   : > { %v1460_v14 = vld [vmem:[%s6001_s13 + $0x78] sm:$0xff]  ;;  %v1459_v16 = vld [vmem:[%s6001_s13 + $0x70] sm:$0xff] }
 0x222   : > { %v5334_v25 = vpop.permute.xlu1 %5333  ;;  %v5329_v26 = vpop.permute.xlu0 %5328 }
 0x223   : > { %v5331_v27 = vunpack.i.h.bf16 %v5329_v26  ;;  %v5330_v28 = vunpack.i.l.bf16 %v5329_v26  ;;  %v5336_v29 = vunpack.i.h.bf16 %v5334_v25  ;;  %v5335_v30 = vunpack.i.l.bf16 %v5334_v25  ;;  %v5052_v25 = vld [vmem:[%s7529_s0 + $0x170] sm:$0xff]  }
 0x224   : > { %v5392_v26 = vpack.i.bf16 %v4710_v19, %v4709_v18  ;;  %v1557_v19 = vld [vmem:[%s5979_s9] sm:$0x1] }
 0x225   : > { %v1430_v31 = vmul.f32 %v5331_v27, %v6339_v24  ;;  %v1429_v32 = vmul.f32 %v5330_v28, %v6339_v24  ;;  %v1432_v34 = vmul.f32 %v5336_v29, %v6339_v24  ;;  %v1431_v35 = vmul.f32 %v5335_v30, %v6339_v24 }
 0x226   : > { %v5339_v33 = vpop.permute.xlu0 %5338  ;;  %v5344_v38 = vpop.permute.xlu1 %5343  ;;  %v5387_v27 = vpack.i.bf16 %v4706_v21, %v4705_v20  ;;  %v4713_v30 = vunpack.c.l.bf16 %v5052_v25  ;;  %v1591_v20 = vunpack.c.l.bf16 %v1557_v19 }
 0x227   : > { %1479 = vrot.lane.b32.xlu1 %v1430_v31, %s5795_s8  ;;  %1477 = vrot.lane.b32.xlu0 %v1429_v32, %s5795_s8  ;;  %v5341_v36 = vunpack.i.h.bf16 %v5339_v33  ;;  %v5340_v37 = vunpack.i.l.bf16 %v5339_v33  ;;  %v5346_v39 = vunpack.i.h.bf16 %v5344_v38  ;;  %v5345_v40 = vunpack.i.l.bf16 %v5344_v38 }
 0x228   : > { %v4714_v31 = vunpack.c.h.bf16 %v5052_v25  ;;  %v6447_v21 = vrot.slane %v1591_v20, %v5982_v56 }
 0x229   : > { %v1434_v41 = vmul.f32 %v5341_v36, %v6339_v24  ;;  %v1433_v42 = vmul.f32 %v5340_v37, %v6339_v24  ;;  %v1436_v44 = vmul.f32 %v5346_v39, %v6339_v24  ;;  %v1435_v45 = vmul.f32 %v5345_v40, %v6339_v24  ;;  %v1445_v37 = vld [vmem:[%s6001_s13] sm:$0xff] }
 0x22a   : > { %v5349_v43 = vpop.permute.xlu0 %5348  ;;  %v5354_v48 = vpop.permute.xlu1 %5353  ;;  %v5397_v33 = vpack.i.bf16 %v4714_v31, %v4713_v30 }
 0x22b   : > { %1483 = vrot.lane.b32.xlu1 %v1432_v34, %s5795_s8  ;;  %1481 = vrot.lane.b32.xlu0 %v1431_v35, %s5795_s8  ;;  %v5351_v46 = vunpack.i.h.bf16 %v5349_v43  ;;  %v5350_v47 = vunpack.i.l.bf16 %v5349_v43  ;;  %v5356_v49 = vunpack.i.h.bf16 %v5354_v48  ;;  %v5355_v50 = vunpack.i.l.bf16 %v5354_v48  ;;  %v1446_v35 = vld [vmem:[%s6001_s13 + $0x8] sm:$0xff]  ;;  %v1447_v43 = vld [vmem:[%s6001_s13 + $0x10] sm:$0xff] }
 0x22d   : > { %v1438_v51 = vmul.f32 %v5351_v46, %v6339_v24  ;;  %v1437_v52 = vmul.f32 %v5350_v47, %v6339_v24  ;;  %v1440_v54 = vmul.f32 %v5356_v49, %v6339_v24  ;;  %v1439_v55 = vmul.f32 %v5355_v50, %v6339_v24  ;;  %v1450_v47 = vld [vmem:[%s6001_s13 + $0x28] sm:$0xff]  ;;  %v1449_v49 = vld [vmem:[%s6001_s13 + $0x20] sm:$0xff] }
 0x22e   : > { %v5359_v53 = vpop.permute.xlu0 %5358  ;;  %v5364_v59 = vpop.permute.xlu1 %5363 }
 0x22f   : > { %1487 = vrot.lane.b32.xlu1 %v1434_v41, %s5795_s8  ;;  %1485 = vrot.lane.b32.xlu0 %v1433_v42, %s5795_s8  ;;  %v5361_v57 = vunpack.i.h.bf16 %v5359_v53  ;;  %v5360_v58 = vunpack.i.l.bf16 %v5359_v53  ;;  %v5366_v63 = vunpack.i.h.bf16 %v5364_v59  ;;  %v5365_v0 = vunpack.i.l.bf16 %v5364_v59  ;;  %v1448_v41 = vld [vmem:[%s6001_s13 + $0x18] sm:$0xff] }
 0x230   : > { %v1452_v53 = vld [vmem:[%s6001_s13 + $0x38] sm:$0xff] }
 0x231   : > { %v1442_v1 = vmul.f32 %v5361_v57, %v6339_v24  ;;  %v1441_v2 = vmul.f32 %v5360_v58, %v6339_v24  ;;  %v1444_v9 = vmul.f32 %v5366_v63, %v6339_v24  ;;  %v1443_v10 = vmul.f32 %v5365_v0, %v6339_v24  ;;  %v5053_v24 = vld [vmem:[%s7529_s0 + $0x178] sm:$0xff]   ;;  %v1453_v63 = vld [vmem:[%s6001_s13 + $0x40] sm:$0xff] }
 0x232   : > { %v4717_v28 = vunpack.c.l.bf16 %v5053_v24  ;;  %v4718_v29 = vunpack.c.h.bf16 %v5053_v24 }
 0x233   : > { %1491 = vrot.lane.b32.xlu1 %v1436_v44, %s5795_s8  ;;  %1489 = vrot.lane.b32.xlu0 %v1435_v45, %s5795_s8 }
 0x234   : > { %v5402_v32 = vpack.i.bf16 %v4718_v29, %v4717_v28 }
 0x237   : > { %1495 = vrot.lane.b32.xlu1 %v1438_v51, %s5795_s8  ;;  %1493 = vrot.lane.b32.xlu0 %v1437_v52, %s5795_s8 }
 0x23b   : > { %1499 = vrot.lane.b32.xlu1 %v1440_v54, %s5795_s8  ;;  %1497 = vrot.lane.b32.xlu0 %v1439_v55, %s5795_s8  ;;  %v1451_v55 = vld [vmem:[%s6001_s13 + $0x30] sm:$0xff] }
 0x23f   : > { %1503 = vrot.lane.b32.xlu1 %v1442_v1, %s5795_s8  ;;  %1501 = vrot.lane.b32.xlu0 %v1441_v2, %s5795_s8 }
 0x243   : > { %1507 = vrot.lane.b32.xlu1 %v1444_v9, %s5795_s8  ;;  %1505 = vrot.lane.b32.xlu0 %v1443_v10, %s5795_s8  ;;  %v1458_v9 = vld [vmem:[%s6001_s13 + $0x68] sm:$0xff] }
 0x247   : > { %5373 = vperm.xlu1 %5176, %v5372_v11   ;;  %5368 = vperm.xlu0 %5165, %v5367_v62   ;;  %v1457_v11 = vld [vmem:[%s6001_s13 + $0x60] sm:$0xff] }
 0x24b   : > { %5383 = vperm.xlu1 %5176, %v5382_v22   ;;  %5378 = vperm.xlu0 %5165, %v5377_v23  }
 0x24f   : > { %5393 = vperm.xlu1 %5176, %v5392_v26   ;;  %5388 = vperm.xlu0 %5165, %v5387_v27  }
 0x253   : > { %5403 = vperm.xlu1 %5176, %v5402_v32   ;;  %5398 = vperm.xlu0 %5165, %v5397_v33  }
 0x299   : > { %v1480_v34 = vpop.permute.xlu1 %1479  ;;  %v1478_v36 = vpop.permute.xlu0 %1477 }
 0x29a   : > { %v1526_v38 = vadd.f32 %v1480_v34, %v1446_v35  ;;  %v1525_v39 = vadd.f32 %v1478_v36, %v1445_v37 }
 0x29c   : > { %1542 = vst.msk [vmem:[%s6001_s13 + $0x8] sm:$0xff] %vm552_vm0, %v1526_v38  ;;  %1541 = vst.msk [vmem:[%s6001_s13] sm:$0xff] %vm552_vm0, %v1525_v39 }
 0x29d   : > { %v1484_v40 = vpop.permute.xlu1 %1483  ;;  %v1482_v42 = vpop.permute.xlu0 %1481 }
 0x29e   : > { %v1528_v44 = vadd.f32 %v1484_v40, %v1448_v41  ;;  %v1527_v45 = vadd.f32 %v1482_v42, %v1447_v43 }
 0x2a0   : > { %1544 = vst.msk [vmem:[%s6001_s13 + $0x18] sm:$0xff] %vm552_vm0, %v1528_v44  ;;  %1543 = vst.msk [vmem:[%s6001_s13 + $0x10] sm:$0xff] %vm552_vm0, %v1527_v45 }
 0x2a1   : > { %v1488_v46 = vpop.permute.xlu1 %1487  ;;  %v1486_v48 = vpop.permute.xlu0 %1485 }
 0x2a2   : > { %v1530_v50 = vadd.f32 %v1488_v46, %v1450_v47  ;;  %v1529_v51 = vadd.f32 %v1486_v48, %v1449_v49 }
 0x2a4   : > { %1546 = vst.msk [vmem:[%s6001_s13 + $0x28] sm:$0xff] %vm552_vm0, %v1530_v50  ;;  %1545 = vst.msk [vmem:[%s6001_s13 + $0x20] sm:$0xff] %vm552_vm0, %v1529_v51 }
 0x2a5   : > { %v1492_v52 = vpop.permute.xlu1 %1491  ;;  %v1490_v54 = vpop.permute.xlu0 %1489 }
 0x2a6   : > { %v1532_v57 = vadd.f32 %v1492_v52, %v1452_v53  ;;  %v1531_v58 = vadd.f32 %v1490_v54, %v1451_v55 }
 0x2a8   : > { %1548 = vst.msk [vmem:[%s6001_s13 + $0x38] sm:$0xff] %vm552_vm0, %v1532_v57  ;;  %1547 = vst.msk [vmem:[%s6001_s13 + $0x30] sm:$0xff] %vm552_vm0, %v1531_v58  ;;  %v5055_v57 = vld [vmem:[%s7529_s0 + $0x188] sm:$0xff]   ;;  %v5054_v58 = vld [vmem:[%s7529_s0 + $0x180] sm:$0xff]  }
 0x2a9   : > { %v1496_v59 = vpop.permute.xlu1 %1495  ;;  %v1494_v61 = vpop.permute.xlu0 %1493 }
 0x2aa   : > { %v1534_v0 = vadd.f32 %v1496_v59, %v1454_v60  ;;  %v1533_v1 = vadd.f32 %v1494_v61, %v1453_v63 }
 0x2ac   : > { %1550 = vst.msk [vmem:[%s6001_s13 + $0x48] sm:$0xff] %vm552_vm0, %v1534_v0  ;;  %1549 = vst.msk [vmem:[%s6001_s13 + $0x40] sm:$0xff] %vm552_vm0, %v1533_v1  ;;  %v4725_v0 = vunpack.c.l.bf16 %v5055_v57  ;;  %v4726_v1 = vunpack.c.h.bf16 %v5055_v57 }
 0x2ad   : > { %v1500_v2 = vpop.permute.xlu1 %1499  ;;  %v1498_v4 = vpop.permute.xlu0 %1497 }
 0x2ae   : > { %v1536_v6 = vadd.f32 %v1500_v2, %v1456_v3  ;;  %v1535_v7 = vadd.f32 %v1498_v4, %v1455_v5  ;;  %v4721_v2 = vunpack.c.l.bf16 %v5054_v58  ;;  %v4722_v3 = vunpack.c.h.bf16 %v5054_v58  ;;  %v5057_v4 = vld [vmem:[%s7529_s0 + $0x198] sm:$0xff]   ;;  %v5056_v5 = vld [vmem:[%s7529_s0 + $0x190] sm:$0xff]  }
 0x2b0   : > { %1552 = vst.msk [vmem:[%s6001_s13 + $0x58] sm:$0xff] %vm552_vm0, %v1536_v6  ;;  %1551 = vst.msk [vmem:[%s6001_s13 + $0x50] sm:$0xff] %vm552_vm0, %v1535_v7 }
 0x2b1   : > { %v1504_v8 = vpop.permute.xlu1 %1503  ;;  %v1502_v10 = vpop.permute.xlu0 %1501 }
 0x2b2   : > { %v1538_v62 = vadd.f32 %v1504_v8, %v1458_v9  ;;  %v1537_v12 = vadd.f32 %v1502_v10, %v1457_v11  ;;  %v5412_v8 = vpack.i.bf16 %v4726_v1, %v4725_v0  ;;  %v5407_v9 = vpack.i.bf16 %v4722_v3, %v4721_v2 }
 0x2b3   : > { %v4733_v10 = vunpack.c.l.bf16 %v5057_v4  ;;  %v4734_v11 = vunpack.c.h.bf16 %v5057_v4  ;;  %v1701_v57 = vld [vmem:[%s6001_s13 + $0x48] sm:$0xff] }
 0x2b4   : > { %1554 = vst.msk [vmem:[%s6001_s13 + $0x68] sm:$0xff] %vm552_vm0, %v1538_v62  ;;  %1553 = vst.msk [vmem:[%s6001_s13 + $0x60] sm:$0xff] %vm552_vm0, %v1537_v12  ;;  %v4729_v62 = vunpack.c.l.bf16 %v5056_v5  ;;  %v4730_v12 = vunpack.c.h.bf16 %v5056_v5 }
 0x2b5   : > { %v1508_v13 = vpop.permute.xlu1 %1507  ;;  %v1506_v15 = vpop.permute.xlu0 %1505  ;;  %v5422_v19 = vpack.i.bf16 %v4734_v11, %v4733_v10 }
 0x2b6   : > { %v1540_v17 = vadd.f32 %v1508_v13, %v1460_v14  ;;  %v1539_v18 = vadd.f32 %v1506_v15, %v1459_v16  ;;  %v5059_v13 = vld [vmem:[%s7529_s0 + $0x1a8] sm:$0xff]   ;;  %v5058_v14 = vld [vmem:[%s7529_s0 + $0x1a0] sm:$0xff]   ;;  %v5417_v20 = vpack.i.bf16 %v4730_v12, %v4729_v62 }
 0x2b7   : > { %v4741_v15 = vunpack.c.l.bf16 %v5059_v13  ;;  %v4742_v16 = vunpack.c.h.bf16 %v5059_v13  ;;  %v1703_v0 = vld [vmem:[%s6001_s13 + $0x58] sm:$0xff]  ;;  %v1702_v2 = vld [vmem:[%s6001_s13 + $0x50] sm:$0xff] }
 0x2b8   : > { %1556 = vst.msk [vmem:[%s6001_s13 + $0x78] sm:$0xff] %vm552_vm0, %v1540_v17  ;;  %1555 = vst.msk [vmem:[%s6001_s13 + $0x70] sm:$0xff] %vm552_vm0, %v1539_v18  ;;  %v4737_v17 = vunpack.c.l.bf16 %v5058_v14  ;;  %v4738_v18 = vunpack.c.h.bf16 %v5058_v14 }
 0x2bf   : > { %v1707_v62 = vld [vmem:[%s6001_s13 + $0x78] sm:$0xff]  ;;  %v1706_v13 = vld [vmem:[%s6001_s13 + $0x70] sm:$0xff] }
 0x2c6   : > { %v5374_v22 = vpop.permute.xlu1 %5373  ;;  %v5369_v23 = vpop.permute.xlu0 %5368 }
 0x2c7   : > { %v5371_v24 = vunpack.i.h.bf16 %v5369_v23  ;;  %v5370_v25 = vunpack.i.l.bf16 %v5369_v23  ;;  %v5376_v26 = vunpack.i.h.bf16 %v5374_v22  ;;  %v5375_v27 = vunpack.i.l.bf16 %v5374_v22  ;;  %v5060_v22 = vld [vmem:[%s7529_s0 + $0x1b0] sm:$0xff]  }
 0x2c8   : > { %v5432_v23 = vpack.i.bf16 %v4742_v16, %v4741_v15  ;;  %v1804_v16 = vld [vmem:[%s5979_s9] sm:$0x1] }
 0x2c9   : > { %v1677_v28 = vmul.f32 %v5371_v24, %v6447_v21  ;;  %v1676_v29 = vmul.f32 %v5370_v25, %v6447_v21  ;;  %v1679_v31 = vmul.f32 %v5376_v26, %v6447_v21  ;;  %v1678_v32 = vmul.f32 %v5375_v27, %v6447_v21 }
 0x2ca   : > { %v5379_v30 = vpop.permute.xlu0 %5378  ;;  %v5384_v35 = vpop.permute.xlu1 %5383  ;;  %v5427_v24 = vpack.i.bf16 %v4738_v18, %v4737_v17  ;;  %v4745_v27 = vunpack.c.l.bf16 %v5060_v22  ;;  %v1838_v17 = vunpack.c.l.bf16 %v1804_v16 }
 0x2cb   : > { %1726 = vrot.lane.b32.xlu1 %v1677_v28, %s5796_s6  ;;  %1724 = vrot.lane.b32.xlu0 %v1676_v29, %s5796_s6  ;;  %v5381_v33 = vunpack.i.h.bf16 %v5379_v30  ;;  %v5380_v34 = vunpack.i.l.bf16 %v5379_v30  ;;  %v5386_v36 = vunpack.i.h.bf16 %v5384_v35  ;;  %v5385_v37 = vunpack.i.l.bf16 %v5384_v35 }
 0x2cc   : > { %v4746_v28 = vunpack.c.h.bf16 %v5060_v22  ;;  %v6555_v18 = vrot.slane %v1838_v17, %v5982_v56 }
 0x2cd   : > { %v1681_v38 = vmul.f32 %v5381_v33, %v6447_v21  ;;  %v1680_v39 = vmul.f32 %v5380_v34, %v6447_v21  ;;  %v1683_v41 = vmul.f32 %v5386_v36, %v6447_v21  ;;  %v1682_v42 = vmul.f32 %v5385_v37, %v6447_v21  ;;  %v1692_v34 = vld [vmem:[%s6001_s13] sm:$0xff] }
 0x2ce   : > { %v5389_v40 = vpop.permute.xlu0 %5388  ;;  %v5394_v45 = vpop.permute.xlu1 %5393  ;;  %v5437_v30 = vpack.i.bf16 %v4746_v28, %v4745_v27 }
 0x2cf   : > { %1730 = vrot.lane.b32.xlu1 %v1679_v31, %s5796_s6  ;;  %1728 = vrot.lane.b32.xlu0 %v1678_v32, %s5796_s6  ;;  %v5391_v43 = vunpack.i.h.bf16 %v5389_v40  ;;  %v5390_v44 = vunpack.i.l.bf16 %v5389_v40  ;;  %v5396_v46 = vunpack.i.h.bf16 %v5394_v45  ;;  %v5395_v47 = vunpack.i.l.bf16 %v5394_v45  ;;  %v1693_v32 = vld [vmem:[%s6001_s13 + $0x8] sm:$0xff]  ;;  %v1694_v40 = vld [vmem:[%s6001_s13 + $0x10] sm:$0xff] }
 0x2d1   : > { %v1685_v48 = vmul.f32 %v5391_v43, %v6447_v21  ;;  %v1684_v49 = vmul.f32 %v5390_v44, %v6447_v21  ;;  %v1687_v51 = vmul.f32 %v5396_v46, %v6447_v21  ;;  %v1686_v52 = vmul.f32 %v5395_v47, %v6447_v21  ;;  %v1697_v44 = vld [vmem:[%s6001_s13 + $0x28] sm:$0xff]  ;;  %v1696_v46 = vld [vmem:[%s6001_s13 + $0x20] sm:$0xff] }
 0x2d2   : > { %v5399_v50 = vpop.permute.xlu0 %5398  ;;  %v5404_v55 = vpop.permute.xlu1 %5403 }
 0x2d3   : > { %1734 = vrot.lane.b32.xlu1 %v1681_v38, %s5796_s6  ;;  %1732 = vrot.lane.b32.xlu0 %v1680_v39, %s5796_s6  ;;  %v5401_v53 = vunpack.i.h.bf16 %v5399_v50  ;;  %v5400_v54 = vunpack.i.l.bf16 %v5399_v50  ;;  %v5406_v59 = vunpack.i.h.bf16 %v5404_v55  ;;  %v5405_v60 = vunpack.i.l.bf16 %v5404_v55  ;;  %v1695_v38 = vld [vmem:[%s6001_s13 + $0x18] sm:$0xff] }
 0x2d4   : > { %v1699_v50 = vld [vmem:[%s6001_s13 + $0x38] sm:$0xff] }
 0x2d5   : > { %v1689_v61 = vmul.f32 %v5401_v53, %v6447_v21  ;;  %v1688_v63 = vmul.f32 %v5400_v54, %v6447_v21  ;;  %v1691_v6 = vmul.f32 %v5406_v59, %v6447_v21  ;;  %v1690_v7 = vmul.f32 %v5405_v60, %v6447_v21  ;;  %v5061_v21 = vld [vmem:[%s7529_s0 + $0x1b8] sm:$0xff]   ;;  %v1700_v59 = vld [vmem:[%s6001_s13 + $0x40] sm:$0xff] }
 0x2d6   : > { %v4749_v25 = vunpack.c.l.bf16 %v5061_v21  ;;  %v4750_v26 = vunpack.c.h.bf16 %v5061_v21 }
 0x2d7   : > { %1738 = vrot.lane.b32.xlu1 %v1683_v41, %s5796_s6  ;;  %1736 = vrot.lane.b32.xlu0 %v1682_v42, %s5796_s6 }
 0x2d8   : > { %v5442_v29 = vpack.i.bf16 %v4750_v26, %v4749_v25 }
 0x2db   : > { %1742 = vrot.lane.b32.xlu1 %v1685_v48, %s5796_s6  ;;  %1740 = vrot.lane.b32.xlu0 %v1684_v49, %s5796_s6 }
 0x2df   : > { %1746 = vrot.lane.b32.xlu1 %v1687_v51, %s5796_s6  ;;  %1744 = vrot.lane.b32.xlu0 %v1686_v52, %s5796_s6  ;;  %v1698_v52 = vld [vmem:[%s6001_s13 + $0x30] sm:$0xff] }
 0x2e3   : > { %1750 = vrot.lane.b32.xlu1 %v1689_v61, %s5796_s6  ;;  %1748 = vrot.lane.b32.xlu0 %v1688_v63, %s5796_s6 }
 0x2e7   : > { %1754 = vrot.lane.b32.xlu1 %v1691_v6, %s5796_s6  ;;  %1752 = vrot.lane.b32.xlu0 %v1690_v7, %s5796_s6  ;;  %v1705_v6 = vld [vmem:[%s6001_s13 + $0x68] sm:$0xff]  ;;  %s5804_s6 = smov 115  }
 0x2eb   : > { %5413 = vperm.xlu1 %5176, %v5412_v8   ;;  %5408 = vperm.xlu0 %5165, %v5407_v9   ;;  %v1704_v8 = vld [vmem:[%s6001_s13 + $0x60] sm:$0xff] }
 0x2ef   : > { %5423 = vperm.xlu1 %5176, %v5422_v19   ;;  %5418 = vperm.xlu0 %5165, %v5417_v20  }
 0x2f3   : > { %5433 = vperm.xlu1 %5176, %v5432_v23   ;;  %5428 = vperm.xlu0 %5165, %v5427_v24  }
 0x2f7   : > { %5443 = vperm.xlu1 %5176, %v5442_v29   ;;  %5438 = vperm.xlu0 %5165, %v5437_v30  }
 0x33d   : > { %v1727_v31 = vpop.permute.xlu1 %1726  ;;  %v1725_v33 = vpop.permute.xlu0 %1724 }
 0x33e   : > { %v1773_v35 = vadd.f32 %v1727_v31, %v1693_v32  ;;  %v1772_v36 = vadd.f32 %v1725_v33, %v1692_v34 }
 0x340   : > { %1789 = vst.msk [vmem:[%s6001_s13 + $0x8] sm:$0xff] %vm552_vm0, %v1773_v35  ;;  %1788 = vst.msk [vmem:[%s6001_s13] sm:$0xff] %vm552_vm0, %v1772_v36 }
 0x341   : > { %v1731_v37 = vpop.permute.xlu1 %1730  ;;  %v1729_v39 = vpop.permute.xlu0 %1728 }
 0x342   : > { %v1775_v41 = vadd.f32 %v1731_v37, %v1695_v38  ;;  %v1774_v42 = vadd.f32 %v1729_v39, %v1694_v40 }
 0x344   : > { %1791 = vst.msk [vmem:[%s6001_s13 + $0x18] sm:$0xff] %vm552_vm0, %v1775_v41  ;;  %1790 = vst.msk [vmem:[%s6001_s13 + $0x10] sm:$0xff] %vm552_vm0, %v1774_v42 }
 0x345   : > { %v1735_v43 = vpop.permute.xlu1 %1734  ;;  %v1733_v45 = vpop.permute.xlu0 %1732 }
 0x346   : > { %v1777_v47 = vadd.f32 %v1735_v43, %v1697_v44  ;;  %v1776_v48 = vadd.f32 %v1733_v45, %v1696_v46 }
 0x348   : > { %1793 = vst.msk [vmem:[%s6001_s13 + $0x28] sm:$0xff] %vm552_vm0, %v1777_v47  ;;  %1792 = vst.msk [vmem:[%s6001_s13 + $0x20] sm:$0xff] %vm552_vm0, %v1776_v48 }
 0x349   : > { %v1739_v49 = vpop.permute.xlu1 %1738  ;;  %v1737_v51 = vpop.permute.xlu0 %1736 }
 0x34a   : > { %v1779_v53 = vadd.f32 %v1739_v49, %v1699_v50  ;;  %v1778_v54 = vadd.f32 %v1737_v51, %v1698_v52 }
 0x34c   : > { %1795 = vst.msk [vmem:[%s6001_s13 + $0x38] sm:$0xff] %vm552_vm0, %v1779_v53  ;;  %1794 = vst.msk [vmem:[%s6001_s13 + $0x30] sm:$0xff] %vm552_vm0, %v1778_v54  ;;  %v5063_v53 = vld [vmem:[%s7529_s0 + $0x1c8] sm:$0xff]   ;;  %v5062_v54 = vld [vmem:[%s7529_s0 + $0x1c0] sm:$0xff]  }
 0x34d   : > { %v1743_v55 = vpop.permute.xlu1 %1742  ;;  %v1741_v58 = vpop.permute.xlu0 %1740 }
 0x34e   : > { %v1781_v60 = vadd.f32 %v1743_v55, %v1701_v57  ;;  %v1780_v61 = vadd.f32 %v1741_v58, %v1700_v59 }
 0x350   : > { %1797 = vst.msk [vmem:[%s6001_s13 + $0x48] sm:$0xff] %vm552_vm0, %v1781_v60  ;;  %1796 = vst.msk [vmem:[%s6001_s13 + $0x40] sm:$0xff] %vm552_vm0, %v1780_v61  ;;  %v4757_v60 = vunpack.c.l.bf16 %v5063_v53  ;;  %v4758_v61 = vunpack.c.h.bf16 %v5063_v53 }
 0x351   : > { %v1747_v63 = vpop.permute.xlu1 %1746  ;;  %v1745_v1 = vpop.permute.xlu0 %1744 }
 0x352   : > { %v1783_v3 = vadd.f32 %v1747_v63, %v1703_v0  ;;  %v1782_v4 = vadd.f32 %v1745_v1, %v1702_v2  ;;  %v4753_v63 = vunpack.c.l.bf16 %v5062_v54  ;;  %v4754_v0 = vunpack.c.h.bf16 %v5062_v54  ;;  %v5065_v1 = vld [vmem:[%s7529_s0 + $0x1d8] sm:$0xff]   ;;  %v5064_v2 = vld [vmem:[%s7529_s0 + $0x1d0] sm:$0xff]  }
 0x354   : > { %1799 = vst.msk [vmem:[%s6001_s13 + $0x58] sm:$0xff] %vm552_vm0, %v1783_v3  ;;  %1798 = vst.msk [vmem:[%s6001_s13 + $0x50] sm:$0xff] %vm552_vm0, %v1782_v4 }
 0x355   : > { %v1751_v5 = vpop.permute.xlu1 %1750  ;;  %v1749_v7 = vpop.permute.xlu0 %1748 }
 0x356   : > { %v1785_v9 = vadd.f32 %v1751_v5, %v1705_v6  ;;  %v1784_v10 = vadd.f32 %v1749_v7, %v1704_v8  ;;  %v5452_v5 = vpack.i.bf16 %v4758_v61, %v4757_v60  ;;  %v5447_v6 = vpack.i.bf16 %v4754_v0, %v4753_v63 }
 0x357   : > { %v4765_v7 = vunpack.c.l.bf16 %v5065_v1  ;;  %v4766_v8 = vunpack.c.h.bf16 %v5065_v1  ;;  %v1948_v53 = vld [vmem:[%s6001_s13 + $0x48] sm:$0xff] }
 0x358   : > { %1801 = vst.msk [vmem:[%s6001_s13 + $0x68] sm:$0xff] %vm552_vm0, %v1785_v9  ;;  %1800 = vst.msk [vmem:[%s6001_s13 + $0x60] sm:$0xff] %vm552_vm0, %v1784_v10  ;;  %v4761_v9 = vunpack.c.l.bf16 %v5064_v2  ;;  %v4762_v10 = vunpack.c.h.bf16 %v5064_v2 }
 0x359   : > { %v1755_v11 = vpop.permute.xlu1 %1754  ;;  %v1753_v12 = vpop.permute.xlu0 %1752  ;;  %v5462_v16 = vpack.i.bf16 %v4766_v8, %v4765_v7 }
 0x35a   : > { %v1787_v14 = vadd.f32 %v1755_v11, %v1707_v62  ;;  %v1786_v15 = vadd.f32 %v1753_v12, %v1706_v13  ;;  %v5067_v11 = vld [vmem:[%s7529_s0 + $0x1e8] sm:$0xff]   ;;  %v5066_v62 = vld [vmem:[%s7529_s0 + $0x1e0] sm:$0xff]   ;;  %v5457_v17 = vpack.i.bf16 %v4762_v10, %v4761_v9 }
 0x35b   : > { %v4773_v12 = vunpack.c.l.bf16 %v5067_v11  ;;  %v4774_v13 = vunpack.c.h.bf16 %v5067_v11  ;;  %v1950_v60 = vld [vmem:[%s6001_s13 + $0x58] sm:$0xff]  ;;  %v1949_v63 = vld [vmem:[%s6001_s13 + $0x50] sm:$0xff] }
 0x35c   : > { %1803 = vst.msk [vmem:[%s6001_s13 + $0x78] sm:$0xff] %vm552_vm0, %v1787_v14  ;;  %1802 = vst.msk [vmem:[%s6001_s13 + $0x70] sm:$0xff] %vm552_vm0, %v1786_v15  ;;  %v4769_v14 = vunpack.c.l.bf16 %v5066_v62  ;;  %v4770_v15 = vunpack.c.h.bf16 %v5066_v62 }
 0x363   : > { %v1954_v9 = vld [vmem:[%s6001_s13 + $0x78] sm:$0xff]  ;;  %v1953_v11 = vld [vmem:[%s6001_s13 + $0x70] sm:$0xff] }
 0x36a   : > { %v5414_v19 = vpop.permute.xlu1 %5413  ;;  %v5409_v20 = vpop.permute.xlu0 %5408 }
 0x36b   : > { %v5411_v21 = vunpack.i.h.bf16 %v5409_v20  ;;  %v5410_v22 = vunpack.i.l.bf16 %v5409_v20  ;;  %v5416_v23 = vunpack.i.h.bf16 %v5414_v19  ;;  %v5415_v24 = vunpack.i.l.bf16 %v5414_v19  ;;  %v5068_v19 = vld [vmem:[%s7529_s0 + $0x1f0] sm:$0xff]  }
 0x36c   : > { %v5472_v20 = vpack.i.bf16 %v4774_v13, %v4773_v12  ;;  %v2051_v13 = vld [vmem:[%s5979_s9] sm:$0x1] }
 0x36d   : > { %v1924_v25 = vmul.f32 %v5411_v21, %v6555_v18  ;;  %v1923_v26 = vmul.f32 %v5410_v22, %v6555_v18  ;;  %v1926_v28 = vmul.f32 %v5416_v23, %v6555_v18  ;;  %v1925_v29 = vmul.f32 %v5415_v24, %v6555_v18 }
 0x36e   : > { %v5419_v27 = vpop.permute.xlu0 %5418  ;;  %v5424_v32 = vpop.permute.xlu1 %5423  ;;  %v5467_v21 = vpack.i.bf16 %v4770_v15, %v4769_v14  ;;  %v4777_v24 = vunpack.c.l.bf16 %v5068_v19  ;;  %v2085_v14 = vunpack.c.l.bf16 %v2051_v13 }
 0x36f   : > { %1973 = vrot.lane.b32.xlu1 %v1924_v25, %s5797_s30  ;;  %1971 = vrot.lane.b32.xlu0 %v1923_v26, %s5797_s30  ;;  %v5421_v30 = vunpack.i.h.bf16 %v5419_v27  ;;  %v5420_v31 = vunpack.i.l.bf16 %v5419_v27  ;;  %v5426_v33 = vunpack.i.h.bf16 %v5424_v32  ;;  %v5425_v34 = vunpack.i.l.bf16 %v5424_v32 }
 0x370   : > { %v4778_v25 = vunpack.c.h.bf16 %v5068_v19  ;;  %v6663_v15 = vrot.slane %v2085_v14, %v5982_v56 }
 0x371   : > { %v1928_v35 = vmul.f32 %v5421_v30, %v6555_v18  ;;  %v1927_v36 = vmul.f32 %v5420_v31, %v6555_v18  ;;  %v1930_v38 = vmul.f32 %v5426_v33, %v6555_v18  ;;  %v1929_v39 = vmul.f32 %v5425_v34, %v6555_v18  ;;  %v1939_v31 = vld [vmem:[%s6001_s13] sm:$0xff] }
 0x372   : > { %v5429_v37 = vpop.permute.xlu0 %5428  ;;  %v5434_v42 = vpop.permute.xlu1 %5433  ;;  %v5477_v27 = vpack.i.bf16 %v4778_v25, %v4777_v24 }
 0x373   : > { %1977 = vrot.lane.b32.xlu1 %v1926_v28, %s5797_s30  ;;  %1975 = vrot.lane.b32.xlu0 %v1925_v29, %s5797_s30  ;;  %v5431_v40 = vunpack.i.h.bf16 %v5429_v37  ;;  %v5430_v41 = vunpack.i.l.bf16 %v5429_v37  ;;  %v5436_v43 = vunpack.i.h.bf16 %v5434_v42  ;;  %v5435_v44 = vunpack.i.l.bf16 %v5434_v42  ;;  %v1940_v29 = vld [vmem:[%s6001_s13 + $0x8] sm:$0xff]  ;;  %v1941_v37 = vld [vmem:[%s6001_s13 + $0x10] sm:$0xff] }
 0x375   : > { %v1932_v45 = vmul.f32 %v5431_v40, %v6555_v18  ;;  %v1931_v46 = vmul.f32 %v5430_v41, %v6555_v18  ;;  %v1934_v48 = vmul.f32 %v5436_v43, %v6555_v18  ;;  %v1933_v49 = vmul.f32 %v5435_v44, %v6555_v18  ;;  %v1944_v41 = vld [vmem:[%s6001_s13 + $0x28] sm:$0xff]  ;;  %v1943_v43 = vld [vmem:[%s6001_s13 + $0x20] sm:$0xff] }
 0x376   : > { %v5439_v47 = vpop.permute.xlu0 %5438  ;;  %v5444_v52 = vpop.permute.xlu1 %5443 }
 0x377   : > { %1981 = vrot.lane.b32.xlu1 %v1928_v35, %s5797_s30  ;;  %1979 = vrot.lane.b32.xlu0 %v1927_v36, %s5797_s30  ;;  %v5441_v50 = vunpack.i.h.bf16 %v5439_v47  ;;  %v5440_v51 = vunpack.i.l.bf16 %v5439_v47  ;;  %v5446_v55 = vunpack.i.h.bf16 %v5444_v52  ;;  %v5445_v57 = vunpack.i.l.bf16 %v5444_v52  ;;  %v1942_v35 = vld [vmem:[%s6001_s13 + $0x18] sm:$0xff] }
 0x378   : > { %v1946_v47 = vld [vmem:[%s6001_s13 + $0x38] sm:$0xff] }
 0x379   : > { %v1936_v58 = vmul.f32 %v5441_v50, %v6555_v18  ;;  %v1935_v59 = vmul.f32 %v5440_v51, %v6555_v18  ;;  %v1938_v3 = vmul.f32 %v5446_v55, %v6555_v18  ;;  %v1937_v4 = vmul.f32 %v5445_v57, %v6555_v18  ;;  %v5069_v18 = vld [vmem:[%s7529_s0 + $0x1f8] sm:$0xff]   ;;  %v1947_v55 = vld [vmem:[%s6001_s13 + $0x40] sm:$0xff] }
 0x37a   : > { %v4781_v22 = vunpack.c.l.bf16 %v5069_v18  ;;  %v4782_v23 = vunpack.c.h.bf16 %v5069_v18 }
 0x37b   : > { %1985 = vrot.lane.b32.xlu1 %v1930_v38, %s5797_s30  ;;  %1983 = vrot.lane.b32.xlu0 %v1929_v39, %s5797_s30 }
 0x37c   : > { %v5482_v26 = vpack.i.bf16 %v4782_v23, %v4781_v22 }
 0x37f   : > { %1989 = vrot.lane.b32.xlu1 %v1932_v45, %s5797_s30  ;;  %1987 = vrot.lane.b32.xlu0 %v1931_v46, %s5797_s30 }
 0x383   : > { %1993 = vrot.lane.b32.xlu1 %v1934_v48, %s5797_s30  ;;  %1991 = vrot.lane.b32.xlu0 %v1933_v49, %s5797_s30  ;;  %v1945_v49 = vld [vmem:[%s6001_s13 + $0x30] sm:$0xff] }
 0x387   : > { %1997 = vrot.lane.b32.xlu1 %v1936_v58, %s5797_s30  ;;  %1995 = vrot.lane.b32.xlu0 %v1935_v59, %s5797_s30 }
 0x38b   : > { %2001 = vrot.lane.b32.xlu1 %v1938_v3, %s5797_s30  ;;  %1999 = vrot.lane.b32.xlu0 %v1937_v4, %s5797_s30  ;;  %v1952_v3 = vld [vmem:[%s6001_s13 + $0x68] sm:$0xff] }
 0x38f   : > { %5453 = vperm.xlu1 %5176, %v5452_v5   ;;  %5448 = vperm.xlu0 %5165, %v5447_v6   ;;  %v1951_v5 = vld [vmem:[%s6001_s13 + $0x60] sm:$0xff] }
 0x393   : > { %5463 = vperm.xlu1 %5176, %v5462_v16   ;;  %5458 = vperm.xlu0 %5165, %v5457_v17  }
 0x397   : > { %5473 = vperm.xlu1 %5176, %v5472_v20   ;;  %5468 = vperm.xlu0 %5165, %v5467_v21  }
 0x39b   : > { %5483 = vperm.xlu1 %5176, %v5482_v26   ;;  %5478 = vperm.xlu0 %5165, %v5477_v27  }
 0x3e1   : > { %v1974_v28 = vpop.permute.xlu1 %1973  ;;  %v1972_v30 = vpop.permute.xlu0 %1971 }
 0x3e2   : > { %v2020_v32 = vadd.f32 %v1974_v28, %v1940_v29  ;;  %v2019_v33 = vadd.f32 %v1972_v30, %v1939_v31 }
 0x3e4   : > { %2036 = vst.msk [vmem:[%s6001_s13 + $0x8] sm:$0xff] %vm552_vm0, %v2020_v32  ;;  %2035 = vst.msk [vmem:[%s6001_s13] sm:$0xff] %vm552_vm0, %v2019_v33 }
 0x3e5   : > { %v1978_v34 = vpop.permute.xlu1 %1977  ;;  %v1976_v36 = vpop.permute.xlu0 %1975 }
 0x3e6   : > { %v2022_v38 = vadd.f32 %v1978_v34, %v1942_v35  ;;  %v2021_v39 = vadd.f32 %v1976_v36, %v1941_v37 }
 0x3e8   : > { %2038 = vst.msk [vmem:[%s6001_s13 + $0x18] sm:$0xff] %vm552_vm0, %v2022_v38  ;;  %2037 = vst.msk [vmem:[%s6001_s13 + $0x10] sm:$0xff] %vm552_vm0, %v2021_v39 }
 0x3e9   : > { %v1982_v40 = vpop.permute.xlu1 %1981  ;;  %v1980_v42 = vpop.permute.xlu0 %1979 }
 0x3ea   : > { %v2024_v44 = vadd.f32 %v1982_v40, %v1944_v41  ;;  %v2023_v45 = vadd.f32 %v1980_v42, %v1943_v43 }
 0x3ec   : > { %2040 = vst.msk [vmem:[%s6001_s13 + $0x28] sm:$0xff] %vm552_vm0, %v2024_v44  ;;  %2039 = vst.msk [vmem:[%s6001_s13 + $0x20] sm:$0xff] %vm552_vm0, %v2023_v45 }
 0x3ed   : > { %v1986_v46 = vpop.permute.xlu1 %1985  ;;  %v1984_v48 = vpop.permute.xlu0 %1983 }
 0x3ee   : > { %v2026_v50 = vadd.f32 %v1986_v46, %v1946_v47  ;;  %v2025_v51 = vadd.f32 %v1984_v48, %v1945_v49 }
 0x3f0   : > { %2042 = vst.msk [vmem:[%s6001_s13 + $0x38] sm:$0xff] %vm552_vm0, %v2026_v50  ;;  %2041 = vst.msk [vmem:[%s6001_s13 + $0x30] sm:$0xff] %vm552_vm0, %v2025_v51  ;;  %v5071_v50 = vld [vmem:[%s7529_s0 + $0x208] sm:$0xff]   ;;  %v5070_v51 = vld [vmem:[%s7529_s0 + $0x200] sm:$0xff]  }
 0x3f1   : > { %v1990_v52 = vpop.permute.xlu1 %1989  ;;  %v1988_v54 = vpop.permute.xlu0 %1987 }
 0x3f2   : > { %v2028_v57 = vadd.f32 %v1990_v52, %v1948_v53  ;;  %v2027_v58 = vadd.f32 %v1988_v54, %v1947_v55 }
 0x3f4   : > { %2044 = vst.msk [vmem:[%s6001_s13 + $0x48] sm:$0xff] %vm552_vm0, %v2028_v57  ;;  %2043 = vst.msk [vmem:[%s6001_s13 + $0x40] sm:$0xff] %vm552_vm0, %v2027_v58  ;;  %v4789_v57 = vunpack.c.l.bf16 %v5071_v50  ;;  %v4790_v58 = vunpack.c.h.bf16 %v5071_v50 }
 0x3f5   : > { %v1994_v59 = vpop.permute.xlu1 %1993  ;;  %v1992_v61 = vpop.permute.xlu0 %1991 }
 0x3f6   : > { %v2030_v0 = vadd.f32 %v1994_v59, %v1950_v60  ;;  %v2029_v1 = vadd.f32 %v1992_v61, %v1949_v63  ;;  %v4785_v59 = vunpack.c.l.bf16 %v5070_v51  ;;  %v4786_v60 = vunpack.c.h.bf16 %v5070_v51  ;;  %v5073_v61 = vld [vmem:[%s7529_s0 + $0x218] sm:$0xff]   ;;  %v5072_v63 = vld [vmem:[%s7529_s0 + $0x210] sm:$0xff]  }
 0x3f8   : > { %2046 = vst.msk [vmem:[%s6001_s13 + $0x58] sm:$0xff] %vm552_vm0, %v2030_v0  ;;  %2045 = vst.msk [vmem:[%s6001_s13 + $0x50] sm:$0xff] %vm552_vm0, %v2029_v1 }
 0x3f9   : > { %v1998_v2 = vpop.permute.xlu1 %1997  ;;  %v1996_v4 = vpop.permute.xlu0 %1995 }
 0x3fa   : > { %v2032_v6 = vadd.f32 %v1998_v2, %v1952_v3  ;;  %v2031_v7 = vadd.f32 %v1996_v4, %v1951_v5  ;;  %v5492_v2 = vpack.i.bf16 %v4790_v58, %v4789_v57  ;;  %v5487_v3 = vpack.i.bf16 %v4786_v60, %v4785_v59 }
 0x3fb   : > { %v4797_v4 = vunpack.c.l.bf16 %v5073_v61  ;;  %v4798_v5 = vunpack.c.h.bf16 %v5073_v61  ;;  %v2195_v50 = vld [vmem:[%s6001_s13 + $0x48] sm:$0xff] }
 0x3fc   : > { %2048 = vst.msk [vmem:[%s6001_s13 + $0x68] sm:$0xff] %vm552_vm0, %v2032_v6  ;;  %2047 = vst.msk [vmem:[%s6001_s13 + $0x60] sm:$0xff] %vm552_vm0, %v2031_v7  ;;  %v4793_v6 = vunpack.c.l.bf16 %v5072_v63  ;;  %v4794_v7 = vunpack.c.h.bf16 %v5072_v63 }
 0x3fd   : > { %v2002_v8 = vpop.permute.xlu1 %2001  ;;  %v2000_v10 = vpop.permute.xlu0 %1999  ;;  %v5502_v13 = vpack.i.bf16 %v4798_v5, %v4797_v4 }
 0x3fe   : > { %v2034_v62 = vadd.f32 %v2002_v8, %v1954_v9  ;;  %v2033_v12 = vadd.f32 %v2000_v10, %v1953_v11  ;;  %v5075_v8 = vld [vmem:[%s7529_s0 + $0x228] sm:$0xff]   ;;  %v5074_v9 = vld [vmem:[%s7529_s0 + $0x220] sm:$0xff]   ;;  %v5497_v14 = vpack.i.bf16 %v4794_v7, %v4793_v6 }
 0x3ff   : > { %v4805_v10 = vunpack.c.l.bf16 %v5075_v8  ;;  %v4806_v11 = vunpack.c.h.bf16 %v5075_v8  ;;  %v2197_v57 = vld [vmem:[%s6001_s13 + $0x58] sm:$0xff]  ;;  %v2196_v59 = vld [vmem:[%s6001_s13 + $0x50] sm:$0xff] }
 0x400   : > { %2050 = vst.msk [vmem:[%s6001_s13 + $0x78] sm:$0xff] %vm552_vm0, %v2034_v62  ;;  %2049 = vst.msk [vmem:[%s6001_s13 + $0x70] sm:$0xff] %vm552_vm0, %v2033_v12  ;;  %v4801_v62 = vunpack.c.l.bf16 %v5074_v9  ;;  %v4802_v12 = vunpack.c.h.bf16 %v5074_v9 }
 0x407   : > { %v2201_v6 = vld [vmem:[%s6001_s13 + $0x78] sm:$0xff]  ;;  %v2200_v8 = vld [vmem:[%s6001_s13 + $0x70] sm:$0xff] }
 0x40e   : > { %v5454_v16 = vpop.permute.xlu1 %5453  ;;  %v5449_v17 = vpop.permute.xlu0 %5448 }
 0x40f   : > { %v5451_v18 = vunpack.i.h.bf16 %v5449_v17  ;;  %v5450_v19 = vunpack.i.l.bf16 %v5449_v17  ;;  %v5456_v20 = vunpack.i.h.bf16 %v5454_v16  ;;  %v5455_v21 = vunpack.i.l.bf16 %v5454_v16  ;;  %v5076_v16 = vld [vmem:[%s7529_s0 + $0x230] sm:$0xff]  }
 0x410   : > { %v5512_v17 = vpack.i.bf16 %v4806_v11, %v4805_v10  ;;  %v2298_v11 = vld [vmem:[%s5979_s9] sm:$0x1] }
 0x411   : > { %v2171_v22 = vmul.f32 %v5451_v18, %v6663_v15  ;;  %v2170_v23 = vmul.f32 %v5450_v19, %v6663_v15  ;;  %v2173_v25 = vmul.f32 %v5456_v20, %v6663_v15  ;;  %v2172_v26 = vmul.f32 %v5455_v21, %v6663_v15 }
 0x412   : > { %v5459_v24 = vpop.permute.xlu0 %5458  ;;  %v5464_v29 = vpop.permute.xlu1 %5463  ;;  %v5507_v18 = vpack.i.bf16 %v4802_v12, %v4801_v62  ;;  %v4809_v21 = vunpack.c.l.bf16 %v5076_v16  ;;  %v2332_v62 = vunpack.c.l.bf16 %v2298_v11 }
 0x413   : > { %2220 = vrot.lane.b32.xlu1 %v2171_v22, %s5798_s28  ;;  %2218 = vrot.lane.b32.xlu0 %v2170_v23, %s5798_s28  ;;  %v5461_v27 = vunpack.i.h.bf16 %v5459_v24  ;;  %v5460_v28 = vunpack.i.l.bf16 %v5459_v24  ;;  %v5466_v30 = vunpack.i.h.bf16 %v5464_v29  ;;  %v5465_v31 = vunpack.i.l.bf16 %v5464_v29 }
 0x414   : > { %v4810_v22 = vunpack.c.h.bf16 %v5076_v16  ;;  %v6771_v12 = vrot.slane %v2332_v62, %v5982_v56 }
 0x415   : > { %v2175_v32 = vmul.f32 %v5461_v27, %v6663_v15  ;;  %v2174_v33 = vmul.f32 %v5460_v28, %v6663_v15  ;;  %v2177_v35 = vmul.f32 %v5466_v30, %v6663_v15  ;;  %v2176_v36 = vmul.f32 %v5465_v31, %v6663_v15  ;;  %v2186_v28 = vld [vmem:[%s6001_s13] sm:$0xff] }
 0x416   : > { %v5469_v34 = vpop.permute.xlu0 %5468  ;;  %v5474_v39 = vpop.permute.xlu1 %5473  ;;  %v5517_v24 = vpack.i.bf16 %v4810_v22, %v4809_v21 }
 0x417   : > { %2224 = vrot.lane.b32.xlu1 %v2173_v25, %s5798_s28  ;;  %2222 = vrot.lane.b32.xlu0 %v2172_v26, %s5798_s28  ;;  %v5471_v37 = vunpack.i.h.bf16 %v5469_v34  ;;  %v5470_v38 = vunpack.i.l.bf16 %v5469_v34  ;;  %v5476_v40 = vunpack.i.h.bf16 %v5474_v39  ;;  %v5475_v41 = vunpack.i.l.bf16 %v5474_v39  ;;  %v2187_v26 = vld [vmem:[%s6001_s13 + $0x8] sm:$0xff]  ;;  %v2188_v34 = vld [vmem:[%s6001_s13 + $0x10] sm:$0xff] }
 0x419   : > { %v2179_v42 = vmul.f32 %v5471_v37, %v6663_v15  ;;  %v2178_v43 = vmul.f32 %v5470_v38, %v6663_v15  ;;  %v2181_v45 = vmul.f32 %v5476_v40, %v6663_v15  ;;  %v2180_v46 = vmul.f32 %v5475_v41, %v6663_v15  ;;  %v2191_v38 = vld [vmem:[%s6001_s13 + $0x28] sm:$0xff]  ;;  %v2190_v40 = vld [vmem:[%s6001_s13 + $0x20] sm:$0xff] }
 0x41a   : > { %v5479_v44 = vpop.permute.xlu0 %5478  ;;  %v5484_v49 = vpop.permute.xlu1 %5483 }
 0x41b   : > { %2228 = vrot.lane.b32.xlu1 %v2175_v32, %s5798_s28  ;;  %2226 = vrot.lane.b32.xlu0 %v2174_v33, %s5798_s28  ;;  %v5481_v47 = vunpack.i.h.bf16 %v5479_v44  ;;  %v5480_v48 = vunpack.i.l.bf16 %v5479_v44  ;;  %v5486_v52 = vunpack.i.h.bf16 %v5484_v49  ;;  %v5485_v53 = vunpack.i.l.bf16 %v5484_v49  ;;  %v2189_v32 = vld [vmem:[%s6001_s13 + $0x18] sm:$0xff] }
 0x41c   : > { %v2193_v44 = vld [vmem:[%s6001_s13 + $0x38] sm:$0xff] }
 0x41d   : > { %v2183_v54 = vmul.f32 %v5481_v47, %v6663_v15  ;;  %v2182_v55 = vmul.f32 %v5480_v48, %v6663_v15  ;;  %v2185_v0 = vmul.f32 %v5486_v52, %v6663_v15  ;;  %v2184_v1 = vmul.f32 %v5485_v53, %v6663_v15  ;;  %v5077_v15 = vld [vmem:[%s7529_s0 + $0x238] sm:$0xff]   ;;  %v2194_v52 = vld [vmem:[%s6001_s13 + $0x40] sm:$0xff] }
 0x41e   : > { %v4813_v19 = vunpack.c.l.bf16 %v5077_v15  ;;  %v4814_v20 = vunpack.c.h.bf16 %v5077_v15 }
 0x41f   : > { %2232 = vrot.lane.b32.xlu1 %v2177_v35, %s5798_s28  ;;  %2230 = vrot.lane.b32.xlu0 %v2176_v36, %s5798_s28 }
 0x420   : > { %v5522_v23 = vpack.i.bf16 %v4814_v20, %v4813_v19 }
 0x423   : > { %2236 = vrot.lane.b32.xlu1 %v2179_v42, %s5798_s28  ;;  %2234 = vrot.lane.b32.xlu0 %v2178_v43, %s5798_s28 }
 0x427   : > { %2240 = vrot.lane.b32.xlu1 %v2181_v45, %s5798_s28  ;;  %2238 = vrot.lane.b32.xlu0 %v2180_v46, %s5798_s28  ;;  %v2192_v46 = vld [vmem:[%s6001_s13 + $0x30] sm:$0xff] }
 0x42b   : > { %2244 = vrot.lane.b32.xlu1 %v2183_v54, %s5798_s28  ;;  %2242 = vrot.lane.b32.xlu0 %v2182_v55, %s5798_s28 }
 0x42f   : > { %2248 = vrot.lane.b32.xlu1 %v2185_v0, %s5798_s28  ;;  %2246 = vrot.lane.b32.xlu0 %v2184_v1, %s5798_s28  ;;  %v2199_v0 = vld [vmem:[%s6001_s13 + $0x68] sm:$0xff] }
 0x433   : > { %5493 = vperm.xlu1 %5176, %v5492_v2   ;;  %5488 = vperm.xlu0 %5165, %v5487_v3   ;;  %v2198_v2 = vld [vmem:[%s6001_s13 + $0x60] sm:$0xff] }
 0x437   : > { %5503 = vperm.xlu1 %5176, %v5502_v13   ;;  %5498 = vperm.xlu0 %5165, %v5497_v14  }
 0x43b   : > { %5513 = vperm.xlu1 %5176, %v5512_v17   ;;  %5508 = vperm.xlu0 %5165, %v5507_v18  }
 0x43f   : > { %5523 = vperm.xlu1 %5176, %v5522_v23   ;;  %5518 = vperm.xlu0 %5165, %v5517_v24  }
 0x485   : > { %v2221_v25 = vpop.permute.xlu1 %2220  ;;  %v2219_v27 = vpop.permute.xlu0 %2218 }
 0x486   : > { %v2267_v29 = vadd.f32 %v2221_v25, %v2187_v26  ;;  %v2266_v30 = vadd.f32 %v2219_v27, %v2186_v28 }
 0x488   : > { %2283 = vst.msk [vmem:[%s6001_s13 + $0x8] sm:$0xff] %vm552_vm0, %v2267_v29  ;;  %2282 = vst.msk [vmem:[%s6001_s13] sm:$0xff] %vm552_vm0, %v2266_v30 }
 0x489   : > { %v2225_v31 = vpop.permute.xlu1 %2224  ;;  %v2223_v33 = vpop.permute.xlu0 %2222 }
 0x48a   : > { %v2269_v35 = vadd.f32 %v2225_v31, %v2189_v32  ;;  %v2268_v36 = vadd.f32 %v2223_v33, %v2188_v34 }
 0x48c   : > { %2285 = vst.msk [vmem:[%s6001_s13 + $0x18] sm:$0xff] %vm552_vm0, %v2269_v35  ;;  %2284 = vst.msk [vmem:[%s6001_s13 + $0x10] sm:$0xff] %vm552_vm0, %v2268_v36 }
 0x48d   : > { %v2229_v37 = vpop.permute.xlu1 %2228  ;;  %v2227_v39 = vpop.permute.xlu0 %2226 }
 0x48e   : > { %v2271_v41 = vadd.f32 %v2229_v37, %v2191_v38  ;;  %v2270_v42 = vadd.f32 %v2227_v39, %v2190_v40 }
 0x490   : > { %2287 = vst.msk [vmem:[%s6001_s13 + $0x28] sm:$0xff] %vm552_vm0, %v2271_v41  ;;  %2286 = vst.msk [vmem:[%s6001_s13 + $0x20] sm:$0xff] %vm552_vm0, %v2270_v42 }
 0x491   : > { %v2233_v43 = vpop.permute.xlu1 %2232  ;;  %v2231_v45 = vpop.permute.xlu0 %2230 }
 0x492   : > { %v2273_v47 = vadd.f32 %v2233_v43, %v2193_v44  ;;  %v2272_v48 = vadd.f32 %v2231_v45, %v2192_v46 }
 0x494   : > { %2289 = vst.msk [vmem:[%s6001_s13 + $0x38] sm:$0xff] %vm552_vm0, %v2273_v47  ;;  %2288 = vst.msk [vmem:[%s6001_s13 + $0x30] sm:$0xff] %vm552_vm0, %v2272_v48  ;;  %v5079_v47 = vld [vmem:[%s7529_s0 + $0x248] sm:$0xff]   ;;  %v5078_v48 = vld [vmem:[%s7529_s0 + $0x240] sm:$0xff]  }
 0x495   : > { %v2237_v49 = vpop.permute.xlu1 %2236  ;;  %v2235_v51 = vpop.permute.xlu0 %2234 }
 0x496   : > { %v2275_v53 = vadd.f32 %v2237_v49, %v2195_v50  ;;  %v2274_v54 = vadd.f32 %v2235_v51, %v2194_v52 }
 0x498   : > { %2291 = vst.msk [vmem:[%s6001_s13 + $0x48] sm:$0xff] %vm552_vm0, %v2275_v53  ;;  %2290 = vst.msk [vmem:[%s6001_s13 + $0x40] sm:$0xff] %vm552_vm0, %v2274_v54  ;;  %v4821_v53 = vunpack.c.l.bf16 %v5079_v47  ;;  %v4822_v54 = vunpack.c.h.bf16 %v5079_v47 }
 0x499   : > { %v2241_v55 = vpop.permute.xlu1 %2240  ;;  %v2239_v58 = vpop.permute.xlu0 %2238 }
 0x49a   : > { %v2277_v60 = vadd.f32 %v2241_v55, %v2197_v57  ;;  %v2276_v61 = vadd.f32 %v2239_v58, %v2196_v59  ;;  %v4817_v55 = vunpack.c.l.bf16 %v5078_v48  ;;  %v4818_v57 = vunpack.c.h.bf16 %v5078_v48  ;;  %v5081_v58 = vld [vmem:[%s7529_s0 + $0x258] sm:$0xff]   ;;  %v5080_v59 = vld [vmem:[%s7529_s0 + $0x250] sm:$0xff]  }
 0x49c   : > { %2293 = vst.msk [vmem:[%s6001_s13 + $0x58] sm:$0xff] %vm552_vm0, %v2277_v60  ;;  %2292 = vst.msk [vmem:[%s6001_s13 + $0x50] sm:$0xff] %vm552_vm0, %v2276_v61 }
 0x49d   : > { %v2245_v63 = vpop.permute.xlu1 %2244  ;;  %v2243_v1 = vpop.permute.xlu0 %2242 }
 0x49e   : > { %v2279_v3 = vadd.f32 %v2245_v63, %v2199_v0  ;;  %v2278_v4 = vadd.f32 %v2243_v1, %v2198_v2  ;;  %v5532_v63 = vpack.i.bf16 %v4822_v54, %v4821_v53  ;;  %v5527_v0 = vpack.i.bf16 %v4818_v57, %v4817_v55 }
 0x49f   : > { %v4829_v1 = vunpack.c.l.bf16 %v5081_v58  ;;  %v4830_v2 = vunpack.c.h.bf16 %v5081_v58  ;;  %v2442_v47 = vld [vmem:[%s6001_s13 + $0x48] sm:$0xff] }
 0x4a0   : > { %2295 = vst.msk [vmem:[%s6001_s13 + $0x68] sm:$0xff] %vm552_vm0, %v2279_v3  ;;  %2294 = vst.msk [vmem:[%s6001_s13 + $0x60] sm:$0xff] %vm552_vm0, %v2278_v4  ;;  %v4825_v3 = vunpack.c.l.bf16 %v5080_v59  ;;  %v4826_v4 = vunpack.c.h.bf16 %v5080_v59 }
 0x4a1   : > { %v2249_v5 = vpop.permute.xlu1 %2248  ;;  %v2247_v7 = vpop.permute.xlu0 %2246  ;;  %v5542_v11 = vpack.i.bf16 %v4830_v2, %v4829_v1 }
 0x4a2   : > { %v2281_v9 = vadd.f32 %v2249_v5, %v2201_v6  ;;  %v2280_v10 = vadd.f32 %v2247_v7, %v2200_v8  ;;  %v5083_v5 = vld [vmem:[%s7529_s0 + $0x268] sm:$0xff]   ;;  %v5082_v6 = vld [vmem:[%s7529_s0 + $0x260] sm:$0xff]   ;;  %v5537_v62 = vpack.i.bf16 %v4826_v4, %v4825_v3 }
 0x4a3   : > { %v4837_v7 = vunpack.c.l.bf16 %v5083_v5  ;;  %v4838_v8 = vunpack.c.h.bf16 %v5083_v5  ;;  %v2444_v53 = vld [vmem:[%s6001_s13 + $0x58] sm:$0xff]  ;;  %v2443_v55 = vld [vmem:[%s6001_s13 + $0x50] sm:$0xff] }
 0x4a4   : > { %2297 = vst.msk [vmem:[%s6001_s13 + $0x78] sm:$0xff] %vm552_vm0, %v2281_v9  ;;  %2296 = vst.msk [vmem:[%s6001_s13 + $0x70] sm:$0xff] %vm552_vm0, %v2280_v10  ;;  %v4833_v9 = vunpack.c.l.bf16 %v5082_v6  ;;  %v4834_v10 = vunpack.c.h.bf16 %v5082_v6 }
 0x4ab   : > { %v2448_v3 = vld [vmem:[%s6001_s13 + $0x78] sm:$0xff]  ;;  %v2447_v5 = vld [vmem:[%s6001_s13 + $0x70] sm:$0xff] }
 0x4b2   : > { %v5494_v13 = vpop.permute.xlu1 %5493  ;;  %v5489_v14 = vpop.permute.xlu0 %5488 }
 0x4b3   : > { %v5491_v15 = vunpack.i.h.bf16 %v5489_v14  ;;  %v5490_v16 = vunpack.i.l.bf16 %v5489_v14  ;;  %v5496_v17 = vunpack.i.h.bf16 %v5494_v13  ;;  %v5495_v18 = vunpack.i.l.bf16 %v5494_v13  ;;  %v5084_v13 = vld [vmem:[%s7529_s0 + $0x270] sm:$0xff]  }
 0x4b4   : > { %v5552_v14 = vpack.i.bf16 %v4838_v8, %v4837_v7  ;;  %v2545_v8 = vld [vmem:[%s5979_s9] sm:$0x1] }
 0x4b5   : > { %v2418_v19 = vmul.f32 %v5491_v15, %v6771_v12  ;;  %v2417_v20 = vmul.f32 %v5490_v16, %v6771_v12  ;;  %v2420_v22 = vmul.f32 %v5496_v17, %v6771_v12  ;;  %v2419_v23 = vmul.f32 %v5495_v18, %v6771_v12 }
 0x4b6   : > { %v5499_v21 = vpop.permute.xlu0 %5498  ;;  %v5504_v26 = vpop.permute.xlu1 %5503  ;;  %v5547_v15 = vpack.i.bf16 %v4834_v10, %v4833_v9  ;;  %v4841_v18 = vunpack.c.l.bf16 %v5084_v13  ;;  %v2579_v9 = vunpack.c.l.bf16 %v2545_v8 }
 0x4b7   : > { %2467 = vrot.lane.b32.xlu1 %v2418_v19, %s5799_s26  ;;  %2465 = vrot.lane.b32.xlu0 %v2417_v20, %s5799_s26  ;;  %v5501_v24 = vunpack.i.h.bf16 %v5499_v21  ;;  %v5500_v25 = vunpack.i.l.bf16 %v5499_v21  ;;  %v5506_v27 = vunpack.i.h.bf16 %v5504_v26  ;;  %v5505_v28 = vunpack.i.l.bf16 %v5504_v26 }
 0x4b8   : > { %v4842_v19 = vunpack.c.h.bf16 %v5084_v13  ;;  %v6879_v10 = vrot.slane %v2579_v9, %v5982_v56 }
 0x4b9   : > { %v2422_v29 = vmul.f32 %v5501_v24, %v6771_v12  ;;  %v2421_v30 = vmul.f32 %v5500_v25, %v6771_v12  ;;  %v2424_v32 = vmul.f32 %v5506_v27, %v6771_v12  ;;  %v2423_v33 = vmul.f32 %v5505_v28, %v6771_v12  ;;  %v2433_v25 = vld [vmem:[%s6001_s13] sm:$0xff] }
 0x4ba   : > { %v5509_v31 = vpop.permute.xlu0 %5508  ;;  %v5514_v36 = vpop.permute.xlu1 %5513  ;;  %v5557_v21 = vpack.i.bf16 %v4842_v19, %v4841_v18 }
 0x4bb   : > { %2471 = vrot.lane.b32.xlu1 %v2420_v22, %s5799_s26  ;;  %2469 = vrot.lane.b32.xlu0 %v2419_v23, %s5799_s26  ;;  %v5511_v34 = vunpack.i.h.bf16 %v5509_v31  ;;  %v5510_v35 = vunpack.i.l.bf16 %v5509_v31  ;;  %v5516_v37 = vunpack.i.h.bf16 %v5514_v36  ;;  %v5515_v38 = vunpack.i.l.bf16 %v5514_v36  ;;  %v2434_v23 = vld [vmem:[%s6001_s13 + $0x8] sm:$0xff]  ;;  %v2435_v31 = vld [vmem:[%s6001_s13 + $0x10] sm:$0xff] }
 0x4bd   : > { %v2426_v39 = vmul.f32 %v5511_v34, %v6771_v12  ;;  %v2425_v40 = vmul.f32 %v5510_v35, %v6771_v12  ;;  %v2428_v42 = vmul.f32 %v5516_v37, %v6771_v12  ;;  %v2427_v43 = vmul.f32 %v5515_v38, %v6771_v12  ;;  %v2438_v35 = vld [vmem:[%s6001_s13 + $0x28] sm:$0xff]  ;;  %v2437_v37 = vld [vmem:[%s6001_s13 + $0x20] sm:$0xff] }
 0x4be   : > { %v5519_v41 = vpop.permute.xlu0 %5518  ;;  %v5524_v46 = vpop.permute.xlu1 %5523 }
 0x4bf   : > { %2475 = vrot.lane.b32.xlu1 %v2422_v29, %s5799_s26  ;;  %2473 = vrot.lane.b32.xlu0 %v2421_v30, %s5799_s26  ;;  %v5521_v44 = vunpack.i.h.bf16 %v5519_v41  ;;  %v5520_v45 = vunpack.i.l.bf16 %v5519_v41  ;;  %v5526_v49 = vunpack.i.h.bf16 %v5524_v46  ;;  %v5525_v50 = vunpack.i.l.bf16 %v5524_v46  ;;  %v2436_v29 = vld [vmem:[%s6001_s13 + $0x18] sm:$0xff] }
 0x4c0   : > { %v2440_v41 = vld [vmem:[%s6001_s13 + $0x38] sm:$0xff] }
 0x4c1   : > { %v2430_v51 = vmul.f32 %v5521_v44, %v6771_v12  ;;  %v2429_v52 = vmul.f32 %v5520_v45, %v6771_v12  ;;  %v2432_v60 = vmul.f32 %v5526_v49, %v6771_v12  ;;  %v2431_v61 = vmul.f32 %v5525_v50, %v6771_v12  ;;  %v5085_v12 = vld [vmem:[%s7529_s0 + $0x278] sm:$0xff]   ;;  %v2441_v49 = vld [vmem:[%s6001_s13 + $0x40] sm:$0xff] }
 0x4c2   : > { %v4845_v16 = vunpack.c.l.bf16 %v5085_v12  ;;  %v4846_v17 = vunpack.c.h.bf16 %v5085_v12 }
 0x4c3   : > { %2479 = vrot.lane.b32.xlu1 %v2424_v32, %s5799_s26  ;;  %2477 = vrot.lane.b32.xlu0 %v2423_v33, %s5799_s26 }
 0x4c4   : > { %v5562_v20 = vpack.i.bf16 %v4846_v17, %v4845_v16 }
 0x4c7   : > { %2483 = vrot.lane.b32.xlu1 %v2426_v39, %s5799_s26  ;;  %2481 = vrot.lane.b32.xlu0 %v2425_v40, %s5799_s26 }
 0x4cb   : > { %2487 = vrot.lane.b32.xlu1 %v2428_v42, %s5799_s26  ;;  %2485 = vrot.lane.b32.xlu0 %v2427_v43, %s5799_s26  ;;  %v2439_v43 = vld [vmem:[%s6001_s13 + $0x30] sm:$0xff] }
 0x4cf   : > { %2491 = vrot.lane.b32.xlu1 %v2430_v51, %s5799_s26  ;;  %2489 = vrot.lane.b32.xlu0 %v2429_v52, %s5799_s26 }
 0x4d3   : > { %2495 = vrot.lane.b32.xlu1 %v2432_v60, %s5799_s26  ;;  %2493 = vrot.lane.b32.xlu0 %v2431_v61, %s5799_s26  ;;  %v2446_v60 = vld [vmem:[%s6001_s13 + $0x68] sm:$0xff] }
 0x4d7   : > { %5533 = vperm.xlu1 %5176, %v5532_v63   ;;  %5528 = vperm.xlu0 %5165, %v5527_v0   ;;  %v2445_v63 = vld [vmem:[%s6001_s13 + $0x60] sm:$0xff] }
 0x4db   : > { %5543 = vperm.xlu1 %5176, %v5542_v11   ;;  %5538 = vperm.xlu0 %5165, %v5537_v62  }
 0x4df   : > { %5553 = vperm.xlu1 %5176, %v5552_v14   ;;  %5548 = vperm.xlu0 %5165, %v5547_v15  }
 0x4e3   : > { %5563 = vperm.xlu1 %5176, %v5562_v20   ;;  %5558 = vperm.xlu0 %5165, %v5557_v21  }
 0x529   : > { %v2468_v22 = vpop.permute.xlu1 %2467  ;;  %v2466_v24 = vpop.permute.xlu0 %2465 }
 0x52a   : > { %v2514_v26 = vadd.f32 %v2468_v22, %v2434_v23  ;;  %v2513_v27 = vadd.f32 %v2466_v24, %v2433_v25 }
 0x52c   : > { %2530 = vst.msk [vmem:[%s6001_s13 + $0x8] sm:$0xff] %vm552_vm0, %v2514_v26  ;;  %2529 = vst.msk [vmem:[%s6001_s13] sm:$0xff] %vm552_vm0, %v2513_v27 }
 0x52d   : > { %v2472_v28 = vpop.permute.xlu1 %2471  ;;  %v2470_v30 = vpop.permute.xlu0 %2469 }
 0x52e   : > { %v2516_v32 = vadd.f32 %v2472_v28, %v2436_v29  ;;  %v2515_v33 = vadd.f32 %v2470_v30, %v2435_v31 }
 0x530   : > { %2532 = vst.msk [vmem:[%s6001_s13 + $0x18] sm:$0xff] %vm552_vm0, %v2516_v32  ;;  %2531 = vst.msk [vmem:[%s6001_s13 + $0x10] sm:$0xff] %vm552_vm0, %v2515_v33 }
 0x531   : > { %v2476_v34 = vpop.permute.xlu1 %2475  ;;  %v2474_v36 = vpop.permute.xlu0 %2473 }
 0x532   : > { %v2518_v38 = vadd.f32 %v2476_v34, %v2438_v35  ;;  %v2517_v39 = vadd.f32 %v2474_v36, %v2437_v37 }
 0x534   : > { %2534 = vst.msk [vmem:[%s6001_s13 + $0x28] sm:$0xff] %vm552_vm0, %v2518_v38  ;;  %2533 = vst.msk [vmem:[%s6001_s13 + $0x20] sm:$0xff] %vm552_vm0, %v2517_v39 }
 0x535   : > { %v2480_v40 = vpop.permute.xlu1 %2479  ;;  %v2478_v42 = vpop.permute.xlu0 %2477 }
 0x536   : > { %v2520_v44 = vadd.f32 %v2480_v40, %v2440_v41  ;;  %v2519_v45 = vadd.f32 %v2478_v42, %v2439_v43 }
 0x538   : > { %2536 = vst.msk [vmem:[%s6001_s13 + $0x38] sm:$0xff] %vm552_vm0, %v2520_v44  ;;  %2535 = vst.msk [vmem:[%s6001_s13 + $0x30] sm:$0xff] %vm552_vm0, %v2519_v45  ;;  %v5087_v44 = vld [vmem:[%s7529_s0 + $0x288] sm:$0xff]   ;;  %v5086_v45 = vld [vmem:[%s7529_s0 + $0x280] sm:$0xff]  }
 0x539   : > { %v2484_v46 = vpop.permute.xlu1 %2483  ;;  %v2482_v48 = vpop.permute.xlu0 %2481 }
 0x53a   : > { %v2522_v50 = vadd.f32 %v2484_v46, %v2442_v47  ;;  %v2521_v51 = vadd.f32 %v2482_v48, %v2441_v49 }
 0x53c   : > { %2538 = vst.msk [vmem:[%s6001_s13 + $0x48] sm:$0xff] %vm552_vm0, %v2522_v50  ;;  %2537 = vst.msk [vmem:[%s6001_s13 + $0x40] sm:$0xff] %vm552_vm0, %v2521_v51  ;;  %v4853_v50 = vunpack.c.l.bf16 %v5087_v44  ;;  %v4854_v51 = vunpack.c.h.bf16 %v5087_v44 }
 0x53d   : > { %v2488_v52 = vpop.permute.xlu1 %2487  ;;  %v2486_v54 = vpop.permute.xlu0 %2485 }
 0x53e   : > { %v2524_v57 = vadd.f32 %v2488_v52, %v2444_v53  ;;  %v2523_v58 = vadd.f32 %v2486_v54, %v2443_v55  ;;  %v4849_v52 = vunpack.c.l.bf16 %v5086_v45  ;;  %v4850_v53 = vunpack.c.h.bf16 %v5086_v45  ;;  %v5089_v54 = vld [vmem:[%s7529_s0 + $0x298] sm:$0xff]   ;;  %v5088_v55 = vld [vmem:[%s7529_s0 + $0x290] sm:$0xff]  }
 0x540   : > { %2540 = vst.msk [vmem:[%s6001_s13 + $0x58] sm:$0xff] %vm552_vm0, %v2524_v57  ;;  %2539 = vst.msk [vmem:[%s6001_s13 + $0x50] sm:$0xff] %vm552_vm0, %v2523_v58 }
 0x541   : > { %v2492_v59 = vpop.permute.xlu1 %2491  ;;  %v2490_v61 = vpop.permute.xlu0 %2489 }
 0x542   : > { %v2526_v0 = vadd.f32 %v2492_v59, %v2446_v60  ;;  %v2525_v1 = vadd.f32 %v2490_v61, %v2445_v63  ;;  %v5572_v59 = vpack.i.bf16 %v4854_v51, %v4853_v50  ;;  %v5567_v60 = vpack.i.bf16 %v4850_v53, %v4849_v52 }
 0x543   : > { %v4861_v61 = vunpack.c.l.bf16 %v5089_v54  ;;  %v4862_v63 = vunpack.c.h.bf16 %v5089_v54  ;;  %v2689_v44 = vld [vmem:[%s6001_s13 + $0x48] sm:$0xff] }
 0x544   : > { %2542 = vst.msk [vmem:[%s6001_s13 + $0x68] sm:$0xff] %vm552_vm0, %v2526_v0  ;;  %2541 = vst.msk [vmem:[%s6001_s13 + $0x60] sm:$0xff] %vm552_vm0, %v2525_v1  ;;  %v4857_v0 = vunpack.c.l.bf16 %v5088_v55  ;;  %v4858_v1 = vunpack.c.h.bf16 %v5088_v55 }
 0x545   : > { %v2496_v2 = vpop.permute.xlu1 %2495  ;;  %v2494_v4 = vpop.permute.xlu0 %2493  ;;  %v5582_v8 = vpack.i.bf16 %v4862_v63, %v4861_v61 }
 0x546   : > { %v2528_v6 = vadd.f32 %v2496_v2, %v2448_v3  ;;  %v2527_v7 = vadd.f32 %v2494_v4, %v2447_v5  ;;  %v5091_v2 = vld [vmem:[%s7529_s0 + $0x2a8] sm:$0xff]   ;;  %v5090_v3 = vld [vmem:[%s7529_s0 + $0x2a0] sm:$0xff]   ;;  %v5577_v9 = vpack.i.bf16 %v4858_v1, %v4857_v0 }
 0x547   : > { %v4869_v4 = vunpack.c.l.bf16 %v5091_v2  ;;  %v4870_v5 = vunpack.c.h.bf16 %v5091_v2  ;;  %v2691_v50 = vld [vmem:[%s6001_s13 + $0x58] sm:$0xff]  ;;  %v2690_v52 = vld [vmem:[%s6001_s13 + $0x50] sm:$0xff] }
 0x548   : > { %2544 = vst.msk [vmem:[%s6001_s13 + $0x78] sm:$0xff] %vm552_vm0, %v2528_v6  ;;  %2543 = vst.msk [vmem:[%s6001_s13 + $0x70] sm:$0xff] %vm552_vm0, %v2527_v7  ;;  %v4865_v6 = vunpack.c.l.bf16 %v5090_v3  ;;  %v4866_v7 = vunpack.c.h.bf16 %v5090_v3 }
 0x54f   : > { %v2695_v0 = vld [vmem:[%s6001_s13 + $0x78] sm:$0xff]  ;;  %v2694_v2 = vld [vmem:[%s6001_s13 + $0x70] sm:$0xff] }
 0x556   : > { %v5534_v11 = vpop.permute.xlu1 %5533  ;;  %v5529_v62 = vpop.permute.xlu0 %5528 }
 0x557   : > { %v5531_v12 = vunpack.i.h.bf16 %v5529_v62  ;;  %v5530_v13 = vunpack.i.l.bf16 %v5529_v62  ;;  %v5536_v14 = vunpack.i.h.bf16 %v5534_v11  ;;  %v5535_v15 = vunpack.i.l.bf16 %v5534_v11  ;;  %v5092_v11 = vld [vmem:[%s7529_s0 + $0x2b0] sm:$0xff]  }
 0x558   : > { %v5592_v62 = vpack.i.bf16 %v4870_v5, %v4869_v4  ;;  %v2792_v5 = vld [vmem:[%s5979_s9] sm:$0x1] }
 0x559   : > { %v2665_v16 = vmul.f32 %v5531_v12, %v6879_v10  ;;  %v2664_v17 = vmul.f32 %v5530_v13, %v6879_v10  ;;  %v2667_v19 = vmul.f32 %v5536_v14, %v6879_v10  ;;  %v2666_v20 = vmul.f32 %v5535_v15, %v6879_v10 }
 0x55a   : > { %v5539_v18 = vpop.permute.xlu0 %5538  ;;  %v5544_v23 = vpop.permute.xlu1 %5543  ;;  %v5587_v12 = vpack.i.bf16 %v4866_v7, %v4865_v6  ;;  %v4873_v15 = vunpack.c.l.bf16 %v5092_v11  ;;  %v2826_v6 = vunpack.c.l.bf16 %v2792_v5 }
 0x55b   : > { %2714 = vrot.lane.b32.xlu1 %v2665_v16, %s5800_s24  ;;  %2712 = vrot.lane.b32.xlu0 %v2664_v17, %s5800_s24  ;;  %v5541_v21 = vunpack.i.h.bf16 %v5539_v18  ;;  %v5540_v22 = vunpack.i.l.bf16 %v5539_v18  ;;  %v5546_v24 = vunpack.i.h.bf16 %v5544_v23  ;;  %v5545_v25 = vunpack.i.l.bf16 %v5544_v23 }
 0x55c   : > { %v4874_v16 = vunpack.c.h.bf16 %v5092_v11  ;;  %v6987_v7 = vrot.slane %v2826_v6, %v5982_v56 }
 0x55d   : > { %v2669_v26 = vmul.f32 %v5541_v21, %v6879_v10  ;;  %v2668_v27 = vmul.f32 %v5540_v22, %v6879_v10  ;;  %v2671_v29 = vmul.f32 %v5546_v24, %v6879_v10  ;;  %v2670_v30 = vmul.f32 %v5545_v25, %v6879_v10  ;;  %v2680_v22 = vld [vmem:[%s6001_s13] sm:$0xff] }
 0x55e   : > { %v5549_v28 = vpop.permute.xlu0 %5548  ;;  %v5554_v33 = vpop.permute.xlu1 %5553  ;;  %v5597_v18 = vpack.i.bf16 %v4874_v16, %v4873_v15 }
 0x55f   : > { %2718 = vrot.lane.b32.xlu1 %v2667_v19, %s5800_s24  ;;  %2716 = vrot.lane.b32.xlu0 %v2666_v20, %s5800_s24  ;;  %v5551_v31 = vunpack.i.h.bf16 %v5549_v28  ;;  %v5550_v32 = vunpack.i.l.bf16 %v5549_v28  ;;  %v5556_v34 = vunpack.i.h.bf16 %v5554_v33  ;;  %v5555_v35 = vunpack.i.l.bf16 %v5554_v33  ;;  %v2681_v20 = vld [vmem:[%s6001_s13 + $0x8] sm:$0xff]  ;;  %v2682_v28 = vld [vmem:[%s6001_s13 + $0x10] sm:$0xff] }
 0x561   : > { %v2673_v36 = vmul.f32 %v5551_v31, %v6879_v10  ;;  %v2672_v37 = vmul.f32 %v5550_v32, %v6879_v10  ;;  %v2675_v39 = vmul.f32 %v5556_v34, %v6879_v10  ;;  %v2674_v40 = vmul.f32 %v5555_v35, %v6879_v10  ;;  %v2685_v32 = vld [vmem:[%s6001_s13 + $0x28] sm:$0xff]  ;;  %v2684_v34 = vld [vmem:[%s6001_s13 + $0x20] sm:$0xff] }
 0x562   : > { %v5559_v38 = vpop.permute.xlu0 %5558  ;;  %v5564_v43 = vpop.permute.xlu1 %5563 }
 0x563   : > { %2722 = vrot.lane.b32.xlu1 %v2669_v26, %s5800_s24  ;;  %2720 = vrot.lane.b32.xlu0 %v2668_v27, %s5800_s24  ;;  %v5561_v41 = vunpack.i.h.bf16 %v5559_v38  ;;  %v5560_v42 = vunpack.i.l.bf16 %v5559_v38  ;;  %v5566_v46 = vunpack.i.h.bf16 %v5564_v43  ;;  %v5565_v47 = vunpack.i.l.bf16 %v5564_v43  ;;  %v2683_v26 = vld [vmem:[%s6001_s13 + $0x18] sm:$0xff] }
 0x564   : > { %v2687_v38 = vld [vmem:[%s6001_s13 + $0x38] sm:$0xff] }
 0x565   : > { %v2677_v48 = vmul.f32 %v5561_v41, %v6879_v10  ;;  %v2676_v49 = vmul.f32 %v5560_v42, %v6879_v10  ;;  %v2679_v57 = vmul.f32 %v5566_v46, %v6879_v10  ;;  %v2678_v58 = vmul.f32 %v5565_v47, %v6879_v10  ;;  %v5093_v10 = vld [vmem:[%s7529_s0 + $0x2b8] sm:$0xff]   ;;  %v2688_v46 = vld [vmem:[%s6001_s13 + $0x40] sm:$0xff] }
 0x566   : > { %v4877_v13 = vunpack.c.l.bf16 %v5093_v10  ;;  %v4878_v14 = vunpack.c.h.bf16 %v5093_v10 }
 0x567   : > { %2726 = vrot.lane.b32.xlu1 %v2671_v29, %s5800_s24  ;;  %2724 = vrot.lane.b32.xlu0 %v2670_v30, %s5800_s24 }
 0x568   : > { %v5602_v17 = vpack.i.bf16 %v4878_v14, %v4877_v13 }
 0x56b   : > { %2730 = vrot.lane.b32.xlu1 %v2673_v36, %s5800_s24  ;;  %2728 = vrot.lane.b32.xlu0 %v2672_v37, %s5800_s24 }
 0x56f   : > { %2734 = vrot.lane.b32.xlu1 %v2675_v39, %s5800_s24  ;;  %2732 = vrot.lane.b32.xlu0 %v2674_v40, %s5800_s24  ;;  %v2686_v40 = vld [vmem:[%s6001_s13 + $0x30] sm:$0xff] }
 0x573   : > { %2738 = vrot.lane.b32.xlu1 %v2677_v48, %s5800_s24  ;;  %2736 = vrot.lane.b32.xlu0 %v2676_v49, %s5800_s24 }
 0x577   : > { %2742 = vrot.lane.b32.xlu1 %v2679_v57, %s5800_s24  ;;  %2740 = vrot.lane.b32.xlu0 %v2678_v58, %s5800_s24  ;;  %v2693_v57 = vld [vmem:[%s6001_s13 + $0x68] sm:$0xff] }
 0x57b   : > { %5573 = vperm.xlu1 %5176, %v5572_v59   ;;  %5568 = vperm.xlu0 %5165, %v5567_v60   ;;  %v2692_v59 = vld [vmem:[%s6001_s13 + $0x60] sm:$0xff] }
 0x57f   : > { %5583 = vperm.xlu1 %5176, %v5582_v8   ;;  %5578 = vperm.xlu0 %5165, %v5577_v9  }
 0x583   : > { %5593 = vperm.xlu1 %5176, %v5592_v62   ;;  %5588 = vperm.xlu0 %5165, %v5587_v12  }
 0x587   : > { %5603 = vperm.xlu1 %5176, %v5602_v17   ;;  %5598 = vperm.xlu0 %5165, %v5597_v18  }
 0x5cd   : > { %v2715_v19 = vpop.permute.xlu1 %2714  ;;  %v2713_v21 = vpop.permute.xlu0 %2712 }
 0x5ce   : > { %v2761_v23 = vadd.f32 %v2715_v19, %v2681_v20  ;;  %v2760_v24 = vadd.f32 %v2713_v21, %v2680_v22 }
 0x5d0   : > { %2777 = vst.msk [vmem:[%s6001_s13 + $0x8] sm:$0xff] %vm552_vm0, %v2761_v23  ;;  %2776 = vst.msk [vmem:[%s6001_s13] sm:$0xff] %vm552_vm0, %v2760_v24 }
 0x5d1   : > { %v2719_v25 = vpop.permute.xlu1 %2718  ;;  %v2717_v27 = vpop.permute.xlu0 %2716 }
 0x5d2   : > { %v2763_v29 = vadd.f32 %v2719_v25, %v2683_v26  ;;  %v2762_v30 = vadd.f32 %v2717_v27, %v2682_v28 }
 0x5d4   : > { %2779 = vst.msk [vmem:[%s6001_s13 + $0x18] sm:$0xff] %vm552_vm0, %v2763_v29  ;;  %2778 = vst.msk [vmem:[%s6001_s13 + $0x10] sm:$0xff] %vm552_vm0, %v2762_v30 }
 0x5d5   : > { %v2723_v31 = vpop.permute.xlu1 %2722  ;;  %v2721_v33 = vpop.permute.xlu0 %2720 }
 0x5d6   : > { %v2765_v35 = vadd.f32 %v2723_v31, %v2685_v32  ;;  %v2764_v36 = vadd.f32 %v2721_v33, %v2684_v34 }
 0x5d8   : > { %2781 = vst.msk [vmem:[%s6001_s13 + $0x28] sm:$0xff] %vm552_vm0, %v2765_v35  ;;  %2780 = vst.msk [vmem:[%s6001_s13 + $0x20] sm:$0xff] %vm552_vm0, %v2764_v36 }
 0x5d9   : > { %v2727_v37 = vpop.permute.xlu1 %2726  ;;  %v2725_v39 = vpop.permute.xlu0 %2724 }
 0x5da   : > { %v2767_v41 = vadd.f32 %v2727_v37, %v2687_v38  ;;  %v2766_v42 = vadd.f32 %v2725_v39, %v2686_v40 }
 0x5dc   : > { %2783 = vst.msk [vmem:[%s6001_s13 + $0x38] sm:$0xff] %vm552_vm0, %v2767_v41  ;;  %2782 = vst.msk [vmem:[%s6001_s13 + $0x30] sm:$0xff] %vm552_vm0, %v2766_v42  ;;  %v5095_v41 = vld [vmem:[%s7529_s0 + $0x2c8] sm:$0xff]   ;;  %v5094_v42 = vld [vmem:[%s7529_s0 + $0x2c0] sm:$0xff]  }
 0x5dd   : > { %v2731_v43 = vpop.permute.xlu1 %2730  ;;  %v2729_v45 = vpop.permute.xlu0 %2728 }
 0x5de   : > { %v2769_v47 = vadd.f32 %v2731_v43, %v2689_v44  ;;  %v2768_v48 = vadd.f32 %v2729_v45, %v2688_v46 }
 0x5e0   : > { %2785 = vst.msk [vmem:[%s6001_s13 + $0x48] sm:$0xff] %vm552_vm0, %v2769_v47  ;;  %2784 = vst.msk [vmem:[%s6001_s13 + $0x40] sm:$0xff] %vm552_vm0, %v2768_v48  ;;  %v4885_v47 = vunpack.c.l.bf16 %v5095_v41  ;;  %v4886_v48 = vunpack.c.h.bf16 %v5095_v41 }
 0x5e1   : > { %v2735_v49 = vpop.permute.xlu1 %2734  ;;  %v2733_v51 = vpop.permute.xlu0 %2732 }
 0x5e2   : > { %v2771_v53 = vadd.f32 %v2735_v49, %v2691_v50  ;;  %v2770_v54 = vadd.f32 %v2733_v51, %v2690_v52  ;;  %v4881_v49 = vunpack.c.l.bf16 %v5094_v42  ;;  %v4882_v50 = vunpack.c.h.bf16 %v5094_v42  ;;  %v5097_v51 = vld [vmem:[%s7529_s0 + $0x2d8] sm:$0xff]   ;;  %v5096_v52 = vld [vmem:[%s7529_s0 + $0x2d0] sm:$0xff]  }
 0x5e4   : > { %2787 = vst.msk [vmem:[%s6001_s13 + $0x58] sm:$0xff] %vm552_vm0, %v2771_v53  ;;  %2786 = vst.msk [vmem:[%s6001_s13 + $0x50] sm:$0xff] %vm552_vm0, %v2770_v54 }
 0x5e5   : > { %v2739_v55 = vpop.permute.xlu1 %2738  ;;  %v2737_v58 = vpop.permute.xlu0 %2736 }
 0x5e6   : > { %v2773_v60 = vadd.f32 %v2739_v55, %v2693_v57  ;;  %v2772_v61 = vadd.f32 %v2737_v58, %v2692_v59  ;;  %v5612_v55 = vpack.i.bf16 %v4886_v48, %v4885_v47  ;;  %v5607_v57 = vpack.i.bf16 %v4882_v50, %v4881_v49 }
 0x5e7   : > { %v4893_v58 = vunpack.c.l.bf16 %v5097_v51  ;;  %v4894_v59 = vunpack.c.h.bf16 %v5097_v51  ;;  %v2936_v41 = vld [vmem:[%s6001_s13 + $0x48] sm:$0xff] }
 0x5e8   : > { %2789 = vst.msk [vmem:[%s6001_s13 + $0x68] sm:$0xff] %vm552_vm0, %v2773_v60  ;;  %2788 = vst.msk [vmem:[%s6001_s13 + $0x60] sm:$0xff] %vm552_vm0, %v2772_v61  ;;  %v4889_v60 = vunpack.c.l.bf16 %v5096_v52  ;;  %v4890_v61 = vunpack.c.h.bf16 %v5096_v52 }
 0x5e9   : > { %v2743_v63 = vpop.permute.xlu1 %2742  ;;  %v2741_v1 = vpop.permute.xlu0 %2740  ;;  %v5622_v5 = vpack.i.bf16 %v4894_v59, %v4893_v58 }
 0x5ea   : > { %v2775_v3 = vadd.f32 %v2743_v63, %v2695_v0  ;;  %v2774_v4 = vadd.f32 %v2741_v1, %v2694_v2  ;;  %v5099_v63 = vld [vmem:[%s7529_s0 + $0x2e8] sm:$0xff]   ;;  %v5098_v0 = vld [vmem:[%s7529_s0 + $0x2e0] sm:$0xff]   ;;  %v5617_v6 = vpack.i.bf16 %v4890_v61, %v4889_v60 }
 0x5eb   : > { %v4901_v1 = vunpack.c.l.bf16 %v5099_v63  ;;  %v4902_v2 = vunpack.c.h.bf16 %v5099_v63  ;;  %v2938_v47 = vld [vmem:[%s6001_s13 + $0x58] sm:$0xff]  ;;  %v2937_v49 = vld [vmem:[%s6001_s13 + $0x50] sm:$0xff] }
 0x5ec   : > { %2791 = vst.msk [vmem:[%s6001_s13 + $0x78] sm:$0xff] %vm552_vm0, %v2775_v3  ;;  %2790 = vst.msk [vmem:[%s6001_s13 + $0x70] sm:$0xff] %vm552_vm0, %v2774_v4  ;;  %v4897_v3 = vunpack.c.l.bf16 %v5098_v0  ;;  %v4898_v4 = vunpack.c.h.bf16 %v5098_v0 }
 0x5f3   : > { %v2942_v60 = vld [vmem:[%s6001_s13 + $0x78] sm:$0xff]  ;;  %v2941_v63 = vld [vmem:[%s6001_s13 + $0x70] sm:$0xff] }
 0x5fa   : > { %v5574_v8 = vpop.permute.xlu1 %5573  ;;  %v5569_v9 = vpop.permute.xlu0 %5568 }
 0x5fb   : > { %v5571_v10 = vunpack.i.h.bf16 %v5569_v9  ;;  %v5570_v11 = vunpack.i.l.bf16 %v5569_v9  ;;  %v5576_v62 = vunpack.i.h.bf16 %v5574_v8  ;;  %v5575_v12 = vunpack.i.l.bf16 %v5574_v8  ;;  %v5100_v8 = vld [vmem:[%s7529_s0 + $0x2f0] sm:$0xff]  }
 0x5fc   : > { %v5632_v9 = vpack.i.bf16 %v4902_v2, %v4901_v1  ;;  %v3039_v2 = vld [vmem:[%s5979_s9] sm:$0x1] }
 0x5fd   : > { %v2912_v13 = vmul.f32 %v5571_v10, %v6987_v7  ;;  %v2911_v14 = vmul.f32 %v5570_v11, %v6987_v7  ;;  %v2914_v16 = vmul.f32 %v5576_v62, %v6987_v7  ;;  %v2913_v17 = vmul.f32 %v5575_v12, %v6987_v7 }
 0x5fe   : > { %v5579_v15 = vpop.permute.xlu0 %5578  ;;  %v5584_v20 = vpop.permute.xlu1 %5583  ;;  %v5627_v10 = vpack.i.bf16 %v4898_v4, %v4897_v3  ;;  %v4905_v12 = vunpack.c.l.bf16 %v5100_v8  ;;  %v3073_v3 = vunpack.c.l.bf16 %v3039_v2 }
 0x5ff   : > { %2961 = vrot.lane.b32.xlu1 %v2912_v13, %s5801_s22  ;;  %2959 = vrot.lane.b32.xlu0 %v2911_v14, %s5801_s22  ;;  %v5581_v18 = vunpack.i.h.bf16 %v5579_v15  ;;  %v5580_v19 = vunpack.i.l.bf16 %v5579_v15  ;;  %v5586_v21 = vunpack.i.h.bf16 %v5584_v20  ;;  %v5585_v22 = vunpack.i.l.bf16 %v5584_v20 }
 0x600   : > { %v4906_v13 = vunpack.c.h.bf16 %v5100_v8  ;;  %v7095_v4 = vrot.slane %v3073_v3, %v5982_v56 }
 0x601   : > { %v2916_v23 = vmul.f32 %v5581_v18, %v6987_v7  ;;  %v2915_v24 = vmul.f32 %v5580_v19, %v6987_v7  ;;  %v2918_v26 = vmul.f32 %v5586_v21, %v6987_v7  ;;  %v2917_v27 = vmul.f32 %v5585_v22, %v6987_v7  ;;  %v2927_v19 = vld [vmem:[%s6001_s13] sm:$0xff] }
 0x602   : > { %v5589_v25 = vpop.permute.xlu0 %5588  ;;  %v5594_v30 = vpop.permute.xlu1 %5593  ;;  %v5637_v15 = vpack.i.bf16 %v4906_v13, %v4905_v12 }
 0x603   : > { %2965 = vrot.lane.b32.xlu1 %v2914_v16, %s5801_s22  ;;  %2963 = vrot.lane.b32.xlu0 %v2913_v17, %s5801_s22  ;;  %v5591_v28 = vunpack.i.h.bf16 %v5589_v25  ;;  %v5590_v29 = vunpack.i.l.bf16 %v5589_v25  ;;  %v5596_v31 = vunpack.i.h.bf16 %v5594_v30  ;;  %v5595_v32 = vunpack.i.l.bf16 %v5594_v30  ;;  %v2928_v17 = vld [vmem:[%s6001_s13 + $0x8] sm:$0xff]  ;;  %v2929_v25 = vld [vmem:[%s6001_s13 + $0x10] sm:$0xff] }
 0x605   : > { %v2920_v33 = vmul.f32 %v5591_v28, %v6987_v7  ;;  %v2919_v34 = vmul.f32 %v5590_v29, %v6987_v7  ;;  %v2922_v36 = vmul.f32 %v5596_v31, %v6987_v7  ;;  %v2921_v37 = vmul.f32 %v5595_v32, %v6987_v7  ;;  %v2932_v29 = vld [vmem:[%s6001_s13 + $0x28] sm:$0xff]  ;;  %v2931_v31 = vld [vmem:[%s6001_s13 + $0x20] sm:$0xff] }
 0x606   : > { %v5599_v35 = vpop.permute.xlu0 %5598  ;;  %v5604_v40 = vpop.permute.xlu1 %5603 }
 0x607   : > { %2969 = vrot.lane.b32.xlu1 %v2916_v23, %s5801_s22  ;;  %2967 = vrot.lane.b32.xlu0 %v2915_v24, %s5801_s22  ;;  %v5601_v38 = vunpack.i.h.bf16 %v5599_v35  ;;  %v5600_v39 = vunpack.i.l.bf16 %v5599_v35  ;;  %v5606_v43 = vunpack.i.h.bf16 %v5604_v40  ;;  %v5605_v44 = vunpack.i.l.bf16 %v5604_v40  ;;  %v2930_v23 = vld [vmem:[%s6001_s13 + $0x18] sm:$0xff] }
 0x608   : > { %v2934_v35 = vld [vmem:[%s6001_s13 + $0x38] sm:$0xff] }
 0x609   : > { %v2924_v45 = vmul.f32 %v5601_v38, %v6987_v7  ;;  %v2923_v46 = vmul.f32 %v5600_v39, %v6987_v7  ;;  %v2926_v53 = vmul.f32 %v5606_v43, %v6987_v7  ;;  %v2925_v54 = vmul.f32 %v5605_v44, %v6987_v7  ;;  %v5101_v7 = vld [vmem:[%s7529_s0 + $0x2f8] sm:$0xff]   ;;  %v2935_v43 = vld [vmem:[%s6001_s13 + $0x40] sm:$0xff] }
 0x60a   : > { %v4909_v11 = vunpack.c.l.bf16 %v5101_v7  ;;  %v4910_v62 = vunpack.c.h.bf16 %v5101_v7 }
 0x60b   : > { %2973 = vrot.lane.b32.xlu1 %v2918_v26, %s5801_s22  ;;  %2971 = vrot.lane.b32.xlu0 %v2917_v27, %s5801_s22 }
 0x60c   : > { %v5642_v14 = vpack.i.bf16 %v4910_v62, %v4909_v11 }
 0x60f   : > { %2977 = vrot.lane.b32.xlu1 %v2920_v33, %s5801_s22  ;;  %2975 = vrot.lane.b32.xlu0 %v2919_v34, %s5801_s22 }
 0x613   : > { %2981 = vrot.lane.b32.xlu1 %v2922_v36, %s5801_s22  ;;  %2979 = vrot.lane.b32.xlu0 %v2921_v37, %s5801_s22  ;;  %v2933_v37 = vld [vmem:[%s6001_s13 + $0x30] sm:$0xff] }
 0x617   : > { %2985 = vrot.lane.b32.xlu1 %v2924_v45, %s5801_s22  ;;  %2983 = vrot.lane.b32.xlu0 %v2923_v46, %s5801_s22 }
 0x61b   : > { %2989 = vrot.lane.b32.xlu1 %v2926_v53, %s5801_s22  ;;  %2987 = vrot.lane.b32.xlu0 %v2925_v54, %s5801_s22  ;;  %v2940_v53 = vld [vmem:[%s6001_s13 + $0x68] sm:$0xff] }
 0x61f   : > { %5613 = vperm.xlu1 %5176, %v5612_v55   ;;  %5608 = vperm.xlu0 %5165, %v5607_v57   ;;  %v2939_v55 = vld [vmem:[%s6001_s13 + $0x60] sm:$0xff] }
 0x623   : > { %5623 = vperm.xlu1 %5176, %v5622_v5   ;;  %5618 = vperm.xlu0 %5165, %v5617_v6  }
 0x627   : > { %5633 = vperm.xlu1 %5176, %v5632_v9   ;;  %5628 = vperm.xlu0 %5165, %v5627_v10  }
 0x62b   : > { %5643 = vperm.xlu1 %5176, %v5642_v14   ;;  %5638 = vperm.xlu0 %5165, %v5637_v15  }
 0x671   : > { %v2962_v16 = vpop.permute.xlu1 %2961  ;;  %v2960_v18 = vpop.permute.xlu0 %2959 }
 0x672   : > { %v3008_v20 = vadd.f32 %v2962_v16, %v2928_v17  ;;  %v3007_v21 = vadd.f32 %v2960_v18, %v2927_v19 }
 0x674   : > { %3024 = vst.msk [vmem:[%s6001_s13 + $0x8] sm:$0xff] %vm552_vm0, %v3008_v20  ;;  %3023 = vst.msk [vmem:[%s6001_s13] sm:$0xff] %vm552_vm0, %v3007_v21 }
 0x675   : > { %v2966_v22 = vpop.permute.xlu1 %2965  ;;  %v2964_v24 = vpop.permute.xlu0 %2963 }
 0x676   : > { %v3010_v26 = vadd.f32 %v2966_v22, %v2930_v23  ;;  %v3009_v27 = vadd.f32 %v2964_v24, %v2929_v25 }
 0x678   : > { %3026 = vst.msk [vmem:[%s6001_s13 + $0x18] sm:$0xff] %vm552_vm0, %v3010_v26  ;;  %3025 = vst.msk [vmem:[%s6001_s13 + $0x10] sm:$0xff] %vm552_vm0, %v3009_v27 }
 0x679   : > { %v2970_v28 = vpop.permute.xlu1 %2969  ;;  %v2968_v30 = vpop.permute.xlu0 %2967 }
 0x67a   : > { %v3012_v32 = vadd.f32 %v2970_v28, %v2932_v29  ;;  %v3011_v33 = vadd.f32 %v2968_v30, %v2931_v31 }
 0x67c   : > { %3028 = vst.msk [vmem:[%s6001_s13 + $0x28] sm:$0xff] %vm552_vm0, %v3012_v32  ;;  %3027 = vst.msk [vmem:[%s6001_s13 + $0x20] sm:$0xff] %vm552_vm0, %v3011_v33 }
 0x67d   : > { %v2974_v34 = vpop.permute.xlu1 %2973  ;;  %v2972_v36 = vpop.permute.xlu0 %2971 }
 0x67e   : > { %v3014_v38 = vadd.f32 %v2974_v34, %v2934_v35  ;;  %v3013_v39 = vadd.f32 %v2972_v36, %v2933_v37 }
 0x680   : > { %3030 = vst.msk [vmem:[%s6001_s13 + $0x38] sm:$0xff] %vm552_vm0, %v3014_v38  ;;  %3029 = vst.msk [vmem:[%s6001_s13 + $0x30] sm:$0xff] %vm552_vm0, %v3013_v39  ;;  %v5103_v38 = vld [vmem:[%s7529_s0 + $0x308] sm:$0xff]   ;;  %v5102_v39 = vld [vmem:[%s7529_s0 + $0x300] sm:$0xff]  }
 0x681   : > { %v2978_v40 = vpop.permute.xlu1 %2977  ;;  %v2976_v42 = vpop.permute.xlu0 %2975 }
 0x682   : > { %v3016_v44 = vadd.f32 %v2978_v40, %v2936_v41  ;;  %v3015_v45 = vadd.f32 %v2976_v42, %v2935_v43 }
 0x684   : > { %3032 = vst.msk [vmem:[%s6001_s13 + $0x48] sm:$0xff] %vm552_vm0, %v3016_v44  ;;  %3031 = vst.msk [vmem:[%s6001_s13 + $0x40] sm:$0xff] %vm552_vm0, %v3015_v45  ;;  %v4917_v44 = vunpack.c.l.bf16 %v5103_v38  ;;  %v4918_v45 = vunpack.c.h.bf16 %v5103_v38 }
 0x685   : > { %v2982_v46 = vpop.permute.xlu1 %2981  ;;  %v2980_v48 = vpop.permute.xlu0 %2979 }
 0x686   : > { %v3018_v50 = vadd.f32 %v2982_v46, %v2938_v47  ;;  %v3017_v51 = vadd.f32 %v2980_v48, %v2937_v49  ;;  %v4913_v46 = vunpack.c.l.bf16 %v5102_v39  ;;  %v4914_v47 = vunpack.c.h.bf16 %v5102_v39  ;;  %v5105_v48 = vld [vmem:[%s7529_s0 + $0x318] sm:$0xff]   ;;  %v5104_v49 = vld [vmem:[%s7529_s0 + $0x310] sm:$0xff]  }
 0x688   : > { %3034 = vst.msk [vmem:[%s6001_s13 + $0x58] sm:$0xff] %vm552_vm0, %v3018_v50  ;;  %3033 = vst.msk [vmem:[%s6001_s13 + $0x50] sm:$0xff] %vm552_vm0, %v3017_v51 }
 0x689   : > { %v2986_v52 = vpop.permute.xlu1 %2985  ;;  %v2984_v54 = vpop.permute.xlu0 %2983 }
 0x68a   : > { %v3020_v57 = vadd.f32 %v2986_v52, %v2940_v53  ;;  %v3019_v58 = vadd.f32 %v2984_v54, %v2939_v55  ;;  %v5652_v52 = vpack.i.bf16 %v4918_v45, %v4917_v44  ;;  %v5647_v53 = vpack.i.bf16 %v4914_v47, %v4913_v46 }
 0x68b   : > { %v4925_v54 = vunpack.c.l.bf16 %v5105_v48  ;;  %v4926_v55 = vunpack.c.h.bf16 %v5105_v48  ;;  %v3183_v38 = vld [vmem:[%s6001_s13 + $0x48] sm:$0xff] }
 0x68c   : > { %3036 = vst.msk [vmem:[%s6001_s13 + $0x68] sm:$0xff] %vm552_vm0, %v3020_v57  ;;  %3035 = vst.msk [vmem:[%s6001_s13 + $0x60] sm:$0xff] %vm552_vm0, %v3019_v58  ;;  %v4921_v57 = vunpack.c.l.bf16 %v5104_v49  ;;  %v4922_v58 = vunpack.c.h.bf16 %v5104_v49 }
 0x68d   : > { %v2990_v59 = vpop.permute.xlu1 %2989  ;;  %v2988_v61 = vpop.permute.xlu0 %2987  ;;  %v5662_v2 = vpack.i.bf16 %v4926_v55, %v4925_v54 }
 0x68e   : > { %v3022_v0 = vadd.f32 %v2990_v59, %v2942_v60  ;;  %v3021_v1 = vadd.f32 %v2988_v61, %v2941_v63  ;;  %v5107_v59 = vld [vmem:[%s7529_s0 + $0x328] sm:$0xff]   ;;  %v5106_v60 = vld [vmem:[%s7529_s0 + $0x320] sm:$0xff]   ;;  %v5657_v3 = vpack.i.bf16 %v4922_v58, %v4921_v57 }
 0x68f   : > { %v4933_v61 = vunpack.c.l.bf16 %v5107_v59  ;;  %v4934_v63 = vunpack.c.h.bf16 %v5107_v59  ;;  %v3185_v44 = vld [vmem:[%s6001_s13 + $0x58] sm:$0xff]  ;;  %v3184_v46 = vld [vmem:[%s6001_s13 + $0x50] sm:$0xff] }
 0x690   : > { %3038 = vst.msk [vmem:[%s6001_s13 + $0x78] sm:$0xff] %vm552_vm0, %v3022_v0  ;;  %3037 = vst.msk [vmem:[%s6001_s13 + $0x70] sm:$0xff] %vm552_vm0, %v3021_v1  ;;  %v4929_v0 = vunpack.c.l.bf16 %v5106_v60  ;;  %v4930_v1 = vunpack.c.h.bf16 %v5106_v60 }
 0x697   : > { %v3189_v57 = vld [vmem:[%s6001_s13 + $0x78] sm:$0xff]  ;;  %v3188_v59 = vld [vmem:[%s6001_s13 + $0x70] sm:$0xff] }
 0x69e   : > { %v5614_v5 = vpop.permute.xlu1 %5613  ;;  %v5609_v6 = vpop.permute.xlu0 %5608 }
 0x69f   : > { %v5611_v7 = vunpack.i.h.bf16 %v5609_v6  ;;  %v5610_v8 = vunpack.i.l.bf16 %v5609_v6  ;;  %v5616_v9 = vunpack.i.h.bf16 %v5614_v5  ;;  %v5615_v10 = vunpack.i.l.bf16 %v5614_v5  ;;  %v5108_v5 = vld [vmem:[%s7529_s0 + $0x330] sm:$0xff]  }
 0x6a0   : > { %v5672_v6 = vpack.i.bf16 %v4934_v63, %v4933_v61  ;;  %v3286_v63 = vld [vmem:[%s5979_s9] sm:$0x1] }
 0x6a1   : > { %v3159_v11 = vmul.f32 %v5611_v7, %v7095_v4  ;;  %v3158_v62 = vmul.f32 %v5610_v8, %v7095_v4  ;;  %v3161_v13 = vmul.f32 %v5616_v9, %v7095_v4  ;;  %v3160_v14 = vmul.f32 %v5615_v10, %v7095_v4 }
 0x6a2   : > { %v5619_v12 = vpop.permute.xlu0 %5618  ;;  %v5624_v17 = vpop.permute.xlu1 %5623  ;;  %v5667_v7 = vpack.i.bf16 %v4930_v1, %v4929_v0  ;;  %v4937_v10 = vunpack.c.l.bf16 %v5108_v5  ;;  %v3320_v0 = vunpack.c.l.bf16 %v3286_v63 }
 0x6a3   : > { %3208 = vrot.lane.b32.xlu1 %v3159_v11, %s5802_s20  ;;  %3206 = vrot.lane.b32.xlu0 %v3158_v62, %s5802_s20  ;;  %v5621_v15 = vunpack.i.h.bf16 %v5619_v12  ;;  %v5620_v16 = vunpack.i.l.bf16 %v5619_v12  ;;  %v5626_v18 = vunpack.i.h.bf16 %v5624_v17  ;;  %v5625_v19 = vunpack.i.l.bf16 %v5624_v17 }
 0x6a4   : > { %v4938_v11 = vunpack.c.h.bf16 %v5108_v5  ;;  %v7203_v1 = vrot.slane %v3320_v0, %v5982_v56 }
 0x6a5   : > { %v3163_v20 = vmul.f32 %v5621_v15, %v7095_v4  ;;  %v3162_v21 = vmul.f32 %v5620_v16, %v7095_v4  ;;  %v3165_v23 = vmul.f32 %v5626_v18, %v7095_v4  ;;  %v3164_v24 = vmul.f32 %v5625_v19, %v7095_v4  ;;  %v3174_v16 = vld [vmem:[%s6001_s13] sm:$0xff] }
 0x6a6   : > { %v5629_v22 = vpop.permute.xlu0 %5628  ;;  %v5634_v27 = vpop.permute.xlu1 %5633  ;;  %v5677_v12 = vpack.i.bf16 %v4938_v11, %v4937_v10 }
 0x6a7   : > { %3212 = vrot.lane.b32.xlu1 %v3161_v13, %s5802_s20  ;;  %3210 = vrot.lane.b32.xlu0 %v3160_v14, %s5802_s20  ;;  %v5631_v25 = vunpack.i.h.bf16 %v5629_v22  ;;  %v5630_v26 = vunpack.i.l.bf16 %v5629_v22  ;;  %v5636_v28 = vunpack.i.h.bf16 %v5634_v27  ;;  %v5635_v29 = vunpack.i.l.bf16 %v5634_v27  ;;  %v3175_v14 = vld [vmem:[%s6001_s13 + $0x8] sm:$0xff]  ;;  %v3176_v22 = vld [vmem:[%s6001_s13 + $0x10] sm:$0xff] }
 0x6a9   : > { %v3167_v30 = vmul.f32 %v5631_v25, %v7095_v4  ;;  %v3166_v31 = vmul.f32 %v5630_v26, %v7095_v4  ;;  %v3169_v33 = vmul.f32 %v5636_v28, %v7095_v4  ;;  %v3168_v34 = vmul.f32 %v5635_v29, %v7095_v4  ;;  %v3179_v26 = vld [vmem:[%s6001_s13 + $0x28] sm:$0xff]  ;;  %v3178_v28 = vld [vmem:[%s6001_s13 + $0x20] sm:$0xff] }
 0x6aa   : > { %v5639_v32 = vpop.permute.xlu0 %5638  ;;  %v5644_v37 = vpop.permute.xlu1 %5643 }
 0x6ab   : > { %3216 = vrot.lane.b32.xlu1 %v3163_v20, %s5802_s20  ;;  %3214 = vrot.lane.b32.xlu0 %v3162_v21, %s5802_s20  ;;  %v5641_v35 = vunpack.i.h.bf16 %v5639_v32  ;;  %v5640_v36 = vunpack.i.l.bf16 %v5639_v32  ;;  %v5646_v40 = vunpack.i.h.bf16 %v5644_v37  ;;  %v5645_v41 = vunpack.i.l.bf16 %v5644_v37  ;;  %v3177_v20 = vld [vmem:[%s6001_s13 + $0x18] sm:$0xff] }
 0x6ac   : > { %v3181_v32 = vld [vmem:[%s6001_s13 + $0x38] sm:$0xff] }
 0x6ad   : > { %v3171_v42 = vmul.f32 %v5641_v35, %v7095_v4  ;;  %v3170_v43 = vmul.f32 %v5640_v36, %v7095_v4  ;;  %v3173_v50 = vmul.f32 %v5646_v40, %v7095_v4  ;;  %v3172_v51 = vmul.f32 %v5645_v41, %v7095_v4  ;;  %v5109_v4 = vld [vmem:[%s7529_s0 + $0x338] sm:$0xff]   ;;  %v3182_v40 = vld [vmem:[%s6001_s13 + $0x40] sm:$0xff] }
 0x6ae   : > { %v4941_v8 = vunpack.c.l.bf16 %v5109_v4  ;;  %v4942_v9 = vunpack.c.h.bf16 %v5109_v4 }
 0x6af   : > { %3220 = vrot.lane.b32.xlu1 %v3165_v23, %s5802_s20  ;;  %3218 = vrot.lane.b32.xlu0 %v3164_v24, %s5802_s20 }
 0x6b0   : > { %v5682_v62 = vpack.i.bf16 %v4942_v9, %v4941_v8 }
 0x6b3   : > { %3224 = vrot.lane.b32.xlu1 %v3167_v30, %s5802_s20  ;;  %3222 = vrot.lane.b32.xlu0 %v3166_v31, %s5802_s20 }
 0x6b7   : > { %3228 = vrot.lane.b32.xlu1 %v3169_v33, %s5802_s20  ;;  %3226 = vrot.lane.b32.xlu0 %v3168_v34, %s5802_s20  ;;  %v3180_v34 = vld [vmem:[%s6001_s13 + $0x30] sm:$0xff] }
 0x6bb   : > { %3232 = vrot.lane.b32.xlu1 %v3171_v42, %s5802_s20  ;;  %3230 = vrot.lane.b32.xlu0 %v3170_v43, %s5802_s20 }
 0x6bf   : > { %3236 = vrot.lane.b32.xlu1 %v3173_v50, %s5802_s20  ;;  %3234 = vrot.lane.b32.xlu0 %v3172_v51, %s5802_s20  ;;  %v3187_v50 = vld [vmem:[%s6001_s13 + $0x68] sm:$0xff] }
 0x6c3   : > { %5653 = vperm.xlu1 %5176, %v5652_v52   ;;  %5648 = vperm.xlu0 %5165, %v5647_v53   ;;  %v3186_v52 = vld [vmem:[%s6001_s13 + $0x60] sm:$0xff] }
 0x6c7   : > { %5663 = vperm.xlu1 %5176, %v5662_v2   ;;  %5658 = vperm.xlu0 %5165, %v5657_v3  }
 0x6cb   : > { %5673 = vperm.xlu1 %5176, %v5672_v6   ;;  %5668 = vperm.xlu0 %5165, %v5667_v7  }
 0x6cf   : > { %5683 = vperm.xlu1 %5176, %v5682_v62   ;;  %5678 = vperm.xlu0 %5165, %v5677_v12  }
 0x715   : > { %v3209_v13 = vpop.permute.xlu1 %3208  ;;  %v3207_v15 = vpop.permute.xlu0 %3206 }
 0x716   : > { %v3255_v17 = vadd.f32 %v3209_v13, %v3175_v14  ;;  %v3254_v18 = vadd.f32 %v3207_v15, %v3174_v16 }
 0x718   : > { %3271 = vst.msk [vmem:[%s6001_s13 + $0x8] sm:$0xff] %vm552_vm0, %v3255_v17  ;;  %3270 = vst.msk [vmem:[%s6001_s13] sm:$0xff] %vm552_vm0, %v3254_v18 }
 0x719   : > { %v3213_v19 = vpop.permute.xlu1 %3212  ;;  %v3211_v21 = vpop.permute.xlu0 %3210 }
 0x71a   : > { %v3257_v23 = vadd.f32 %v3213_v19, %v3177_v20  ;;  %v3256_v24 = vadd.f32 %v3211_v21, %v3176_v22 }
 0x71c   : > { %3273 = vst.msk [vmem:[%s6001_s13 + $0x18] sm:$0xff] %vm552_vm0, %v3257_v23  ;;  %3272 = vst.msk [vmem:[%s6001_s13 + $0x10] sm:$0xff] %vm552_vm0, %v3256_v24 }
 0x71d   : > { %v3217_v25 = vpop.permute.xlu1 %3216  ;;  %v3215_v27 = vpop.permute.xlu0 %3214 }
 0x71e   : > { %v3259_v29 = vadd.f32 %v3217_v25, %v3179_v26  ;;  %v3258_v30 = vadd.f32 %v3215_v27, %v3178_v28 }
 0x720   : > { %3275 = vst.msk [vmem:[%s6001_s13 + $0x28] sm:$0xff] %vm552_vm0, %v3259_v29  ;;  %3274 = vst.msk [vmem:[%s6001_s13 + $0x20] sm:$0xff] %vm552_vm0, %v3258_v30 }
 0x721   : > { %v3221_v31 = vpop.permute.xlu1 %3220  ;;  %v3219_v33 = vpop.permute.xlu0 %3218 }
 0x722   : > { %v3261_v35 = vadd.f32 %v3221_v31, %v3181_v32  ;;  %v3260_v36 = vadd.f32 %v3219_v33, %v3180_v34 }
 0x724   : > { %3277 = vst.msk [vmem:[%s6001_s13 + $0x38] sm:$0xff] %vm552_vm0, %v3261_v35  ;;  %3276 = vst.msk [vmem:[%s6001_s13 + $0x30] sm:$0xff] %vm552_vm0, %v3260_v36  ;;  %v5111_v35 = vld [vmem:[%s7529_s0 + $0x348] sm:$0xff]   ;;  %v5110_v36 = vld [vmem:[%s7529_s0 + $0x340] sm:$0xff]  }
 0x725   : > { %v3225_v37 = vpop.permute.xlu1 %3224  ;;  %v3223_v39 = vpop.permute.xlu0 %3222 }
 0x726   : > { %v3263_v41 = vadd.f32 %v3225_v37, %v3183_v38  ;;  %v3262_v42 = vadd.f32 %v3223_v39, %v3182_v40 }
 0x728   : > { %3279 = vst.msk [vmem:[%s6001_s13 + $0x48] sm:$0xff] %vm552_vm0, %v3263_v41  ;;  %3278 = vst.msk [vmem:[%s6001_s13 + $0x40] sm:$0xff] %vm552_vm0, %v3262_v42  ;;  %v4949_v41 = vunpack.c.l.bf16 %v5111_v35  ;;  %v4950_v42 = vunpack.c.h.bf16 %v5111_v35 }
 0x729   : > { %v3229_v43 = vpop.permute.xlu1 %3228  ;;  %v3227_v45 = vpop.permute.xlu0 %3226 }
 0x72a   : > { %v3265_v47 = vadd.f32 %v3229_v43, %v3185_v44  ;;  %v3264_v48 = vadd.f32 %v3227_v45, %v3184_v46  ;;  %v4945_v43 = vunpack.c.l.bf16 %v5110_v36  ;;  %v4946_v44 = vunpack.c.h.bf16 %v5110_v36  ;;  %v5113_v45 = vld [vmem:[%s7529_s0 + $0x358] sm:$0xff]   ;;  %v5112_v46 = vld [vmem:[%s7529_s0 + $0x350] sm:$0xff]  }
 0x72c   : > { %3281 = vst.msk [vmem:[%s6001_s13 + $0x58] sm:$0xff] %vm552_vm0, %v3265_v47  ;;  %3280 = vst.msk [vmem:[%s6001_s13 + $0x50] sm:$0xff] %vm552_vm0, %v3264_v48 }
 0x72d   : > { %v3233_v49 = vpop.permute.xlu1 %3232  ;;  %v3231_v51 = vpop.permute.xlu0 %3230 }
 0x72e   : > { %v3267_v53 = vadd.f32 %v3233_v49, %v3187_v50  ;;  %v3266_v54 = vadd.f32 %v3231_v51, %v3186_v52  ;;  %v5692_v49 = vpack.i.bf16 %v4950_v42, %v4949_v41  ;;  %v5687_v50 = vpack.i.bf16 %v4946_v44, %v4945_v43  ;;  %v3422_v43 = vld [vmem:[%s6001_s13 + $0x8] sm:$0xff] }
 0x72f   : > { %v4957_v51 = vunpack.c.l.bf16 %v5113_v45  ;;  %v4958_v52 = vunpack.c.h.bf16 %v5113_v45  ;;  %v3421_v45 = vld [vmem:[%s6001_s13] sm:$0xff] }
 0x730   : > { %3283 = vst.msk [vmem:[%s6001_s13 + $0x68] sm:$0xff] %vm552_vm0, %v3267_v53  ;;  %3282 = vst.msk [vmem:[%s6001_s13 + $0x60] sm:$0xff] %vm552_vm0, %v3266_v54  ;;  %v4953_v53 = vunpack.c.l.bf16 %v5112_v46  ;;  %v4954_v54 = vunpack.c.h.bf16 %v5112_v46 }
 0x731   : > { %v3237_v55 = vpop.permute.xlu1 %3236  ;;  %v3235_v58 = vpop.permute.xlu0 %3234  ;;  %v5702_v63 = vpack.i.bf16 %v4958_v52, %v4957_v51  ;;  %v3423_v51 = vld [vmem:[%s6001_s13 + $0x10] sm:$0xff] }
 0x732   : > { %v3269_v60 = vadd.f32 %v3237_v55, %v3189_v57  ;;  %v3268_v61 = vadd.f32 %v3235_v58, %v3188_v59  ;;  %v5115_v55 = vld [vmem:[%s7529_s0 + $0x368] sm:$0xff]   ;;  %v5114_v57 = vld [vmem:[%s7529_s0 + $0x360] sm:$0xff]   ;;  %v5697_v0 = vpack.i.bf16 %v4954_v54, %v4953_v53 }
 0x733   : > { %v4965_v58 = vunpack.c.l.bf16 %v5115_v55  ;;  %v4966_v59 = vunpack.c.h.bf16 %v5115_v55  ;;  %v3426_v55 = vld [vmem:[%s6001_s13 + $0x28] sm:$0xff] }
 0x734   : > { %3285 = vst.msk [vmem:[%s6001_s13 + $0x78] sm:$0xff] %vm552_vm0, %v3269_v60  ;;  %3284 = vst.msk [vmem:[%s6001_s13 + $0x70] sm:$0xff] %vm552_vm0, %v3268_v61  ;;  %v4961_v60 = vunpack.c.l.bf16 %v5114_v57  ;;  %v4962_v61 = vunpack.c.h.bf16 %v5114_v57 }
 0x742   : > { %v5654_v2 = vpop.permute.xlu1 %5653  ;;  %v5649_v3 = vpop.permute.xlu0 %5648 }
 0x743   : > { %v5651_v4 = vunpack.i.h.bf16 %v5649_v3  ;;  %v5650_v5 = vunpack.i.l.bf16 %v5649_v3  ;;  %v5656_v6 = vunpack.i.h.bf16 %v5654_v2  ;;  %v5655_v7 = vunpack.i.l.bf16 %v5654_v2  ;;  %v5116_v2 = vld [vmem:[%s7529_s0 + $0x370] sm:$0xff]  }
 0x744   : > { %v5712_v3 = vpack.i.bf16 %v4966_v59, %v4965_v58  ;;  %v3425_v58 = vld [vmem:[%s6001_s13 + $0x20] sm:$0xff] }
 0x745   : > { %v3406_v8 = vmul.f32 %v5651_v4, %v7203_v1  ;;  %v3405_v9 = vmul.f32 %v5650_v5, %v7203_v1  ;;  %v3408_v11 = vmul.f32 %v5656_v6, %v7203_v1  ;;  %v3407_v62 = vmul.f32 %v5655_v7, %v7203_v1 }
 0x746   : > { %v5659_v10 = vpop.permute.xlu0 %5658  ;;  %v5664_v14 = vpop.permute.xlu1 %5663  ;;  %v5707_v4 = vpack.i.bf16 %v4962_v61, %v4961_v60  ;;  %v4969_v7 = vunpack.c.l.bf16 %v5116_v2 }
 0x747   : > { %3455 = vrot.lane.b32.xlu1 %v3406_v8, %s5803_s14  ;;  %3453 = vrot.lane.b32.xlu0 %v3405_v9, %s5803_s14  ;;  %v5661_v12 = vunpack.i.h.bf16 %v5659_v10  ;;  %v5660_v13 = vunpack.i.l.bf16 %v5659_v10  ;;  %v5666_v15 = vunpack.i.h.bf16 %v5664_v14  ;;  %v5665_v16 = vunpack.i.l.bf16 %v5664_v14  ;;  %v5119_v9 = vld [vmem:[%s7529_s0 + $0x388] sm:$0xff]   ;;  %v5118_v10 = vld [vmem:[%s7529_s0 + $0x380] sm:$0xff]  }
 0x748   : > { %v4970_v8 = vunpack.c.h.bf16 %v5116_v2 }
 0x749   : > { %v3410_v17 = vmul.f32 %v5661_v12, %v7203_v1  ;;  %v3409_v18 = vmul.f32 %v5660_v13, %v7203_v1  ;;  %v3412_v20 = vmul.f32 %v5666_v15, %v7203_v1  ;;  %v3411_v21 = vmul.f32 %v5665_v16, %v7203_v1  ;;  %v5121_v16 = vld [vmem:[%s7529_s0 + $0x398] sm:$0xff]  }
 0x74a   : > { %v5669_v19 = vpop.permute.xlu0 %5668  ;;  %v5674_v24 = vpop.permute.xlu1 %5673  ;;  %v4977_v12 = vunpack.c.l.bf16 %v5118_v10  ;;  %v4978_v13 = vunpack.c.h.bf16 %v5118_v10  ;;  %v5717_v15 = vpack.i.bf16 %v4970_v8, %v4969_v7  ;;  %v3429_v7 = vld [vmem:[%s6001_s13 + $0x40] sm:$0xff] }
 0x74b   : > { %3459 = vrot.lane.b32.xlu1 %v3408_v11, %s5803_s14  ;;  %3457 = vrot.lane.b32.xlu0 %v3407_v62, %s5803_s14  ;;  %v5671_v22 = vunpack.i.h.bf16 %v5669_v19  ;;  %v5670_v23 = vunpack.i.l.bf16 %v5669_v19  ;;  %v5676_v25 = vunpack.i.h.bf16 %v5674_v24  ;;  %v5675_v26 = vunpack.i.l.bf16 %v5674_v24  ;;  %v5123_v24 = vld [vmem:[%s7529_s0 + $0x3a8] sm:$0xff]  }
 0x74c   : > { %v4981_v11 = vunpack.c.l.bf16 %v5119_v9  ;;  %v4982_v62 = vunpack.c.h.bf16 %v5119_v9  ;;  %v5727_v19 = vpack.i.bf16 %v4978_v13, %v4977_v12  ;;  %v3431_v12 = vld [vmem:[%s6001_s13 + $0x50] sm:$0xff] }
 0x74d   : > { %v3414_v27 = vmul.f32 %v5671_v22, %v7203_v1  ;;  %v3413_v28 = vmul.f32 %v5670_v23, %v7203_v1  ;;  %v3416_v30 = vmul.f32 %v5676_v25, %v7203_v1  ;;  %v3415_v31 = vmul.f32 %v5675_v26, %v7203_v1  ;;  %v5122_v25 = vld [vmem:[%s7529_s0 + $0x3a0] sm:$0xff]  }
 0x74e   : > { %v5679_v29 = vpop.permute.xlu0 %5678  ;;  %v5684_v34 = vpop.permute.xlu1 %5683  ;;  %v4997_v26 = vunpack.c.l.bf16 %v5123_v24 }
 0x74f   : > { %3463 = vrot.lane.b32.xlu1 %v3410_v17, %s5803_s14  ;;  %3461 = vrot.lane.b32.xlu0 %v3409_v18, %s5803_s14  ;;  %v5681_v32 = vunpack.i.h.bf16 %v5679_v29  ;;  %v5680_v33 = vunpack.i.l.bf16 %v5679_v29  ;;  %v5686_v37 = vunpack.i.h.bf16 %v5684_v34  ;;  %v5685_v38 = vunpack.i.l.bf16 %v5684_v34  ;;  %v5120_v17 = vld [vmem:[%s7529_s0 + $0x390] sm:$0xff]  }
 0x750   : > { %v5732_v18 = vpack.i.bf16 %v4982_v62, %v4981_v11  ;;  %v4985_v22 = vunpack.c.l.bf16 %v5120_v17  ;;  %v4986_v23 = vunpack.c.h.bf16 %v5120_v17  ;;  %v4994_v29 = vunpack.c.h.bf16 %v5122_v25  ;;  %v3432_v11 = vld [vmem:[%s6001_s13 + $0x58] sm:$0xff] }
 0x751   : > { %v3418_v39 = vmul.f32 %v5681_v32, %v7203_v1  ;;  %v3417_v40 = vmul.f32 %v5680_v33, %v7203_v1  ;;  %v3420_v47 = vmul.f32 %v5686_v37, %v7203_v1  ;;  %v3419_v48 = vmul.f32 %v5685_v38, %v7203_v1  ;;  %v5117_v1 = vld [vmem:[%s7529_s0 + $0x378] sm:$0xff]   ;;  %v5124_v33 = vld [vmem:[%s7529_s0 + $0x3b0] sm:$0xff]  }
 0x752   : > { %v4973_v5 = vunpack.c.l.bf16 %v5117_v1  ;;  %v4974_v6 = vunpack.c.h.bf16 %v5117_v1  ;;  %v5125_v32 = vld [vmem:[%s7529_s0 + $0x3b8] sm:$0xff]   ;;  %v5001_v38 = vunpack.c.l.bf16 %v5124_v33  ;;  %v3427_v1 = vld [vmem:[%s6001_s13 + $0x30] sm:$0xff] }
 0x753   : > { %3467 = vrot.lane.b32.xlu1 %v3412_v20, %s5803_s14  ;;  %3465 = vrot.lane.b32.xlu0 %v3411_v21, %s5803_s14  ;;  %v4989_v20 = vunpack.c.l.bf16 %v5121_v16  ;;  %v4990_v21 = vunpack.c.h.bf16 %v5121_v16  ;;  %v5005_v36 = vunpack.c.l.bf16 %v5125_v32  ;;  %v5006_v37 = vunpack.c.h.bf16 %v5125_v32  ;;  %v3434_v16 = vld [vmem:[%s6001_s13 + $0x68] sm:$0xff] }
 0x754   : > { %v5722_v14 = vpack.i.bf16 %v4974_v6, %v4973_v5  ;;  %v3430_v5 = vld [vmem:[%s6001_s13 + $0x48] sm:$0xff] }
 0x757   : > { %3471 = vrot.lane.b32.xlu1 %v3414_v27, %s5803_s14  ;;  %3469 = vrot.lane.b32.xlu0 %v3413_v28, %s5803_s14  ;;  %v4998_v27 = vunpack.c.h.bf16 %v5123_v24  ;;  %v4993_v28 = vunpack.c.l.bf16 %v5122_v25  ;;  %v3435_v24 = vld [vmem:[%s6001_s13 + $0x70] sm:$0xff] }
 0x759   : > { %v5752_v34 = vpack.i.bf16 %v4998_v27, %v4997_v26  ;;  %v5747_v35 = vpack.i.bf16 %v4994_v29, %v4993_v28  ;;  %v3533_v27 = vld [vmem:[%s5979_s9] sm:$0x1] }
 0x75a   : > { %v3567_v28 = vunpack.c.l.bf16 %v3533_v27 }
 0x75b   : > { %3475 = vrot.lane.b32.xlu1 %v3416_v30, %s5803_s14  ;;  %3473 = vrot.lane.b32.xlu0 %v3415_v31, %s5803_s14  ;;  %v5742_v30 = vpack.i.bf16 %v4990_v21, %v4989_v20  ;;  %v5737_v31 = vpack.i.bf16 %v4986_v23, %v4985_v22  ;;  %v3436_v22 = vld [vmem:[%s6001_s13 + $0x78] sm:$0xff] }
 0x75c   : > { %v3651_v29 = vrot.slane %v3567_v28, %v5982_v56 }
 0x75f   : > { %3479 = vrot.lane.b32.xlu1 %v3418_v39, %s5803_s14  ;;  %3477 = vrot.lane.b32.xlu0 %v3417_v40, %s5803_s14  ;;  %v5002_v39 = vunpack.c.h.bf16 %v5124_v33  ;;  %v5762_v40 = vpack.i.bf16 %v5006_v37, %v5005_v36 }
 0x761   : > { %v5757_v41 = vpack.i.bf16 %v5002_v39, %v5001_v38 }
 0x763   : > { %3483 = vrot.lane.b32.xlu1 %v3420_v47, %s5803_s14  ;;  %3481 = vrot.lane.b32.xlu0 %v3419_v48, %s5803_s14 }
 0x767   : > { %5693 = vperm.xlu1 %5176, %v5692_v49   ;;  %5688 = vperm.xlu0 %5165, %v5687_v50   ;;  %v3424_v49 = vld [vmem:[%s6001_s13 + $0x18] sm:$0xff] }
 0x76b   : > { %5703 = vperm.xlu1 %5176, %v5702_v63   ;;  %5698 = vperm.xlu0 %5165, %v5697_v0   ;;  %v3428_v63 = vld [vmem:[%s6001_s13 + $0x38] sm:$0xff] }
 0x76f   : > { %5713 = vperm.xlu1 %5176, %v5712_v3   ;;  %5708 = vperm.xlu0 %5165, %v5707_v4  }
 0x773   : > { %5723 = vperm.xlu1 %5176, %v5722_v14   ;;  %5718 = vperm.xlu0 %5165, %v5717_v15  }
 0x777   : > { %5733 = vperm.xlu1 %5176, %v5732_v18   ;;  %5728 = vperm.xlu0 %5165, %v5727_v19   ;;  %v3433_v18 = vld [vmem:[%s6001_s13 + $0x60] sm:$0xff] }
 0x77b   : > { %5743 = vperm.xlu1 %5176, %v5742_v30   ;;  %5738 = vperm.xlu0 %5165, %v5737_v31  }
 0x77f   : > { %5753 = vperm.xlu1 %5176, %v5752_v34   ;;  %5748 = vperm.xlu0 %5165, %v5747_v35  }
 0x783   : > { %5763 = vperm.xlu1 %5176, %v5762_v40   ;;  %5758 = vperm.xlu0 %5165, %v5757_v41  }
 0x7b9   : > { %v3456_v42 = vpop.permute.xlu1 %3455  ;;  %v3454_v44 = vpop.permute.xlu0 %3453 }
 0x7ba   : > { %v3502_v46 = vadd.f32 %v3456_v42, %v3422_v43  ;;  %v3501_v47 = vadd.f32 %v3454_v44, %v3421_v45 }
 0x7bc   : > { %3518 = vst.msk [vmem:[%s6001_s13 + $0x8] sm:$0xff] %vm552_vm0, %v3502_v46  ;;  %3517 = vst.msk [vmem:[%s6001_s13] sm:$0xff] %vm552_vm0, %v3501_v47 }
 0x7bd   : > { %v3460_v48 = vpop.permute.xlu1 %3459  ;;  %v3458_v50 = vpop.permute.xlu0 %3457 }
 0x7be   : > { %v3504_v52 = vadd.f32 %v3460_v48, %v3424_v49  ;;  %v3503_v53 = vadd.f32 %v3458_v50, %v3423_v51 }
 0x7c0   : > { %3520 = vst.msk [vmem:[%s6001_s13 + $0x18] sm:$0xff] %vm552_vm0, %v3504_v52  ;;  %3519 = vst.msk [vmem:[%s6001_s13 + $0x10] sm:$0xff] %vm552_vm0, %v3503_v53 }
 0x7c1   : > { %v3464_v54 = vpop.permute.xlu1 %3463  ;;  %v3462_v57 = vpop.permute.xlu0 %3461 }
 0x7c2   : > { %v3506_v59 = vadd.f32 %v3464_v54, %v3426_v55  ;;  %v3505_v60 = vadd.f32 %v3462_v57, %v3425_v58 }
 0x7c4   : > { %3522 = vst.msk [vmem:[%s6001_s13 + $0x28] sm:$0xff] %vm552_vm0, %v3506_v59  ;;  %3521 = vst.msk [vmem:[%s6001_s13 + $0x20] sm:$0xff] %vm552_vm0, %v3505_v60 }
 0x7c5   : > { %v3468_v61 = vpop.permute.xlu1 %3467  ;;  %v3466_v0 = vpop.permute.xlu0 %3465 }
 0x7c6   : > { %v3508_v2 = vadd.f32 %v3468_v61, %v3428_v63  ;;  %v3507_v3 = vadd.f32 %v3466_v0, %v3427_v1  ;;  %v3780_v1 = vld [vmem:[%s5979_s9] sm:$0x1]  ;;  %s5805_s9 = smov 114  }
 0x7c8   : > { %3524 = vst.msk [vmem:[%s6001_s13 + $0x38] sm:$0xff] %vm552_vm0, %v3508_v2  ;;  %3523 = vst.msk [vmem:[%s6001_s13 + $0x30] sm:$0xff] %vm552_vm0, %v3507_v3  ;;  %v3814_v3 = vunpack.c.l.bf16 %v3780_v1 }
 0x7c9   : > { %v3472_v4 = vpop.permute.xlu1 %3471  ;;  %v3470_v6 = vpop.permute.xlu0 %3469 }
 0x7ca   : > { %v3510_v8 = vadd.f32 %v3472_v4, %v3430_v5  ;;  %v3509_v9 = vadd.f32 %v3470_v6, %v3429_v7 }
 0x7cc   : > { %3526 = vst.msk [vmem:[%s6001_s13 + $0x48] sm:$0xff] %vm552_vm0, %v3510_v8  ;;  %3525 = vst.msk [vmem:[%s6001_s13 + $0x40] sm:$0xff] %vm552_vm0, %v3509_v9  ;;  %v3898_v9 = vrot.slane %v3814_v3, %v5982_v56 }
 0x7cd   : > { %v3476_v10 = vpop.permute.xlu1 %3475  ;;  %v3474_v62 = vpop.permute.xlu0 %3473 }
 0x7ce   : > { %v3512_v13 = vadd.f32 %v3476_v10, %v3432_v11  ;;  %v3511_v14 = vadd.f32 %v3474_v62, %v3431_v12 }
 0x7d0   : > { %3528 = vst.msk [vmem:[%s6001_s13 + $0x58] sm:$0xff] %vm552_vm0, %v3512_v13  ;;  %3527 = vst.msk [vmem:[%s6001_s13 + $0x50] sm:$0xff] %vm552_vm0, %v3511_v14 }
 0x7d1   : > { %v3480_v15 = vpop.permute.xlu1 %3479  ;;  %v3478_v17 = vpop.permute.xlu0 %3477 }
 0x7d2   : > { %v3514_v19 = vadd.f32 %v3480_v15, %v3434_v16  ;;  %v3513_v20 = vadd.f32 %v3478_v17, %v3433_v18 }
 0x7d4   : > { %3530 = vst.msk [vmem:[%s6001_s13 + $0x68] sm:$0xff] %vm552_vm0, %v3514_v19  ;;  %3529 = vst.msk [vmem:[%s6001_s13 + $0x60] sm:$0xff] %vm552_vm0, %v3513_v20 }
 0x7d5   : > { %v3484_v21 = vpop.permute.xlu1 %3483  ;;  %v3482_v23 = vpop.permute.xlu0 %3481 }
 0x7d6   : > { %v3516_v25 = vadd.f32 %v3484_v21, %v3436_v22  ;;  %v3515_v26 = vadd.f32 %v3482_v23, %v3435_v24 }
 0x7d8   : > { %3532 = vst.msk [vmem:[%s6001_s13 + $0x78] sm:$0xff] %vm552_vm0, %v3516_v25  ;;  %3531 = vst.msk [vmem:[%s6001_s13 + $0x70] sm:$0xff] %vm552_vm0, %v3515_v26 }
 0x7e6   : > { %v5694_v30 = vpop.permute.xlu1 %5693  ;;  %v5689_v31 = vpop.permute.xlu0 %5688 }
 0x7e7   : > { %v5691_v32 = vunpack.i.h.bf16 %v5689_v31  ;;  %v5690_v33 = vunpack.i.l.bf16 %v5689_v31  ;;  %v5696_v34 = vunpack.i.h.bf16 %v5694_v30  ;;  %v5695_v35 = vunpack.i.l.bf16 %v5694_v30 }
 0x7e9   : > { %v3653_v36 = vmul.f32 %v5691_v32, %v3651_v29  ;;  %v3652_v37 = vmul.f32 %v5690_v33, %v3651_v29  ;;  %v3655_v39 = vmul.f32 %v5696_v34, %v3651_v29  ;;  %v3654_v40 = vmul.f32 %v5695_v35, %v3651_v29 }
 0x7ea   : > { %v5699_v38 = vpop.permute.xlu0 %5698  ;;  %v5704_v43 = vpop.permute.xlu1 %5703 }
 0x7eb   : > { %3702 = vrot.lane.b32.xlu1 %v3653_v36, %s5804_s6  ;;  %3700 = vrot.lane.b32.xlu0 %v3652_v37, %s5804_s6  ;;  %v5701_v41 = vunpack.i.h.bf16 %v5699_v38  ;;  %v5700_v42 = vunpack.i.l.bf16 %v5699_v38  ;;  %v5706_v44 = vunpack.i.h.bf16 %v5704_v43  ;;  %v5705_v45 = vunpack.i.l.bf16 %v5704_v43 }
 0x7ed   : > { %v3657_v46 = vmul.f32 %v5701_v41, %v3651_v29  ;;  %v3656_v47 = vmul.f32 %v5700_v42, %v3651_v29  ;;  %v3659_v49 = vmul.f32 %v5706_v44, %v3651_v29  ;;  %v3658_v50 = vmul.f32 %v5705_v45, %v3651_v29 }
 0x7ee   : > { %v5709_v48 = vpop.permute.xlu0 %5708  ;;  %v5714_v53 = vpop.permute.xlu1 %5713 }
 0x7ef   : > { %3706 = vrot.lane.b32.xlu1 %v3655_v39, %s5804_s6  ;;  %3704 = vrot.lane.b32.xlu0 %v3654_v40, %s5804_s6  ;;  %v5711_v51 = vunpack.i.h.bf16 %v5709_v48  ;;  %v5710_v52 = vunpack.i.l.bf16 %v5709_v48  ;;  %v5716_v54 = vunpack.i.h.bf16 %v5714_v53  ;;  %v5715_v55 = vunpack.i.l.bf16 %v5714_v53 }
 0x7f1   : > { %v3661_v57 = vmul.f32 %v5711_v51, %v3651_v29  ;;  %v3660_v58 = vmul.f32 %v5710_v52, %v3651_v29  ;;  %v3663_v60 = vmul.f32 %v5716_v54, %v3651_v29  ;;  %v3662_v61 = vmul.f32 %v5715_v55, %v3651_v29  ;;  %v3668_v52 = vld [vmem:[%s6001_s13] sm:$0xff] }
 0x7f2   : > { %v5719_v59 = vpop.permute.xlu0 %5718  ;;  %v5724_v2 = vpop.permute.xlu1 %5723 }
 0x7f3   : > { %3710 = vrot.lane.b32.xlu1 %v3657_v46, %s5804_s6  ;;  %3708 = vrot.lane.b32.xlu0 %v3656_v47, %s5804_s6  ;;  %v5721_v63 = vunpack.i.h.bf16 %v5719_v59  ;;  %v5720_v0 = vunpack.i.l.bf16 %v5719_v59  ;;  %v5726_v4 = vunpack.i.h.bf16 %v5724_v2  ;;  %v5725_v5 = vunpack.i.l.bf16 %v5724_v2  ;;  %v3670_v59 = vld [vmem:[%s6001_s13 + $0x10] sm:$0xff]  ;;  %v3672_v2 = vld [vmem:[%s6001_s13 + $0x20] sm:$0xff] }
 0x7f5   : > { %v3665_v6 = vmul.f32 %v5721_v63, %v3651_v29  ;;  %v3664_v7 = vmul.f32 %v5720_v0, %v3651_v29  ;;  %v3667_v10 = vmul.f32 %v5726_v4, %v3651_v29  ;;  %v3666_v11 = vmul.f32 %v5725_v5, %v3651_v29  ;;  %v3673_v0 = vld [vmem:[%s6001_s13 + $0x28] sm:$0xff] }
 0x7f6   : > { %v5729_v8 = vpop.permute.xlu0 %5728  ;;  %v5734_v13 = vpop.permute.xlu1 %5733 }
 0x7f7   : > { %3714 = vrot.lane.b32.xlu1 %v3659_v49, %s5804_s6  ;;  %3712 = vrot.lane.b32.xlu0 %v3658_v50, %s5804_s6  ;;  %v5731_v62 = vunpack.i.h.bf16 %v5729_v8  ;;  %v5730_v12 = vunpack.i.l.bf16 %v5729_v8  ;;  %v5736_v14 = vunpack.i.h.bf16 %v5734_v13  ;;  %v5735_v15 = vunpack.i.l.bf16 %v5734_v13  ;;  %v3669_v50 = vld [vmem:[%s6001_s13 + $0x8] sm:$0xff]  ;;  %v3674_v8 = vld [vmem:[%s6001_s13 + $0x30] sm:$0xff] }
 0x7f8   : > { %v3676_v13 = vld [vmem:[%s6001_s13 + $0x40] sm:$0xff] }
 0x7f9   : > { %v3900_v16 = vmul.f32 %v5731_v62, %v3898_v9  ;;  %v3899_v17 = vmul.f32 %v5730_v12, %v3898_v9  ;;  %v3902_v56 = vmul.f32 %v5736_v14, %v3898_v9  ;;  %v3901_v19 = vmul.f32 %v5735_v15, %v3898_v9  ;;  %v3677_v62 = vld [vmem:[%s6001_s13 + $0x48] sm:$0xff] }
 0x7fa   : > { %v5739_v18 = vpop.permute.xlu0 %5738  ;;  %v5744_v22 = vpop.permute.xlu1 %5743 }
 0x7fb   : > { %3718 = vrot.lane.b32.xlu1 %v3661_v57, %s5804_s6  ;;  %3716 = vrot.lane.b32.xlu0 %v3660_v58, %s5804_s6  ;;  %v5741_v20 = vunpack.i.h.bf16 %v5739_v18  ;;  %v5740_v21 = vunpack.i.l.bf16 %v5739_v18  ;;  %v5746_v23 = vunpack.i.h.bf16 %v5744_v22  ;;  %v5745_v24 = vunpack.i.l.bf16 %v5744_v22  ;;  %v3671_v57 = vld [vmem:[%s6001_s13 + $0x18] sm:$0xff]  ;;  %v3681_v22 = vld [vmem:[%s6001_s13 + $0x68] sm:$0xff] }
 0x7fd   : > { %v3904_v25 = vmul.f32 %v5741_v20, %v3898_v9  ;;  %v3903_v26 = vmul.f32 %v5740_v21, %v3898_v9  ;;  %v3906_v28 = vmul.f32 %v5746_v23, %v3898_v9  ;;  %v3905_v29 = vmul.f32 %v5745_v24, %v3898_v9  ;;  %v3680_v24 = vld [vmem:[%s6001_s13 + $0x60] sm:$0xff] }
 0x7fe   : > { %v5749_v27 = vpop.permute.xlu0 %5748  ;;  %v5754_v32 = vpop.permute.xlu1 %5753 }
 0x7ff   : > { %3722 = vrot.lane.b32.xlu1 %v3663_v60, %s5804_s6  ;;  %3720 = vrot.lane.b32.xlu0 %v3662_v61, %s5804_s6  ;;  %v5751_v30 = vunpack.i.h.bf16 %v5749_v27  ;;  %v5750_v31 = vunpack.i.l.bf16 %v5749_v27  ;;  %v5756_v33 = vunpack.i.h.bf16 %v5754_v32  ;;  %v5755_v34 = vunpack.i.l.bf16 %v5754_v32 }
 0x801   : > { %v3908_v35 = vmul.f32 %v5751_v30, %v3898_v9  ;;  %v3907_v36 = vmul.f32 %v5750_v31, %v3898_v9  ;;  %v3910_v38 = vmul.f32 %v5756_v33, %v3898_v9  ;;  %v3909_v39 = vmul.f32 %v5755_v34, %v3898_v9  ;;  %v3682_v30 = vld [vmem:[%s6001_s13 + $0x70] sm:$0xff] }
 0x802   : > { %v5759_v37 = vpop.permute.xlu0 %5758  ;;  %v5764_v42 = vpop.permute.xlu1 %5763 }
 0x803   : > { %3726 = vrot.lane.b32.xlu1 %v3665_v6, %s5804_s6  ;;  %3724 = vrot.lane.b32.xlu0 %v3664_v7, %s5804_s6  ;;  %v5761_v40 = vunpack.i.h.bf16 %v5759_v37  ;;  %v5760_v41 = vunpack.i.l.bf16 %v5759_v37  ;;  %v5766_v43 = vunpack.i.h.bf16 %v5764_v42  ;;  %v5765_v44 = vunpack.i.l.bf16 %v5764_v42  ;;  %v3675_v6 = vld [vmem:[%s6001_s13 + $0x38] sm:$0xff] }
 0x805   : > { %v3912_v45 = vmul.f32 %v5761_v40, %v3898_v9  ;;  %v3911_v46 = vmul.f32 %v5760_v41, %v3898_v9  ;;  %v3914_v47 = vmul.f32 %v5766_v43, %v3898_v9  ;;  %v3913_v48 = vmul.f32 %v5765_v44, %v3898_v9 }
 0x807   : > { %3730 = vrot.lane.b32.xlu1 %v3667_v10, %s5804_s6  ;;  %3728 = vrot.lane.b32.xlu0 %v3666_v11, %s5804_s6 }
 0x80b   : > { %3949 = vrot.lane.b32.xlu1 %v3900_v16, %s5805_s9  ;;  %3947 = vrot.lane.b32.xlu0 %v3899_v17, %s5805_s9  ;;  %v3679_v17 = vld [vmem:[%s6001_s13 + $0x58] sm:$0xff] }
 0x80f   : > { %3953 = vrot.lane.b32.xlu1 %v3902_v56, %s5805_s9  ;;  %3951 = vrot.lane.b32.xlu0 %v3901_v19, %s5805_s9  ;;  %v3678_v56 = vld [vmem:[%s6001_s13 + $0x50] sm:$0xff] }
 0x813   : > { %3957 = vrot.lane.b32.xlu1 %v3904_v25, %s5805_s9  ;;  %3955 = vrot.lane.b32.xlu0 %v3903_v26, %s5805_s9 }
 0x817   : > { %3961 = vrot.lane.b32.xlu1 %v3906_v28, %s5805_s9  ;;  %3959 = vrot.lane.b32.xlu0 %v3905_v29, %s5805_s9  ;;  %v3683_v28 = vld [vmem:[%s6001_s13 + $0x78] sm:$0xff] }
 0x81b   : > { %3965 = vrot.lane.b32.xlu1 %v3908_v35, %s5805_s9  ;;  %3963 = vrot.lane.b32.xlu0 %v3907_v36, %s5805_s9 }
 0x81f   : > { %3969 = vrot.lane.b32.xlu1 %v3910_v38, %s5805_s9  ;;  %3967 = vrot.lane.b32.xlu0 %v3909_v39, %s5805_s9 }
 0x823   : > { %3973 = vrot.lane.b32.xlu1 %v3912_v45, %s5805_s9  ;;  %3971 = vrot.lane.b32.xlu0 %v3911_v46, %s5805_s9 }
 0x827   : > { %3977 = vrot.lane.b32.xlu1 %v3914_v47, %s5805_s9  ;;  %3975 = vrot.lane.b32.xlu0 %v3913_v48, %s5805_s9 }
 0x85d   : > { %v3703_v49 = vpop.permute.xlu1 %3702  ;;  %v3701_v51 = vpop.permute.xlu0 %3700 }
 0x85e   : > { %v3749_v53 = vadd.f32 %v3703_v49, %v3669_v50  ;;  %v3748_v54 = vadd.f32 %v3701_v51, %v3668_v52 }
 0x860   : > { %3765 = vst.msk [vmem:[%s6001_s13 + $0x8] sm:$0xff] %vm552_vm0, %v3749_v53  ;;  %3764 = vst.msk [vmem:[%s6001_s13] sm:$0xff] %vm552_vm0, %v3748_v54 }
 0x861   : > { %v3707_v55 = vpop.permute.xlu1 %3706  ;;  %v3705_v58 = vpop.permute.xlu0 %3704 }
 0x862   : > { %v3751_v60 = vadd.f32 %v3707_v55, %v3671_v57  ;;  %v3750_v61 = vadd.f32 %v3705_v58, %v3670_v59 }
 0x864   : > { %3767 = vst.msk [vmem:[%s6001_s13 + $0x18] sm:$0xff] %vm552_vm0, %v3751_v60  ;;  %3766 = vst.msk [vmem:[%s6001_s13 + $0x10] sm:$0xff] %vm552_vm0, %v3750_v61 }
 0x865   : > { %v3711_v63 = vpop.permute.xlu1 %3710  ;;  %v3709_v1 = vpop.permute.xlu0 %3708 }
 0x866   : > { %v3753_v3 = vadd.f32 %v3711_v63, %v3673_v0  ;;  %v3752_v4 = vadd.f32 %v3709_v1, %v3672_v2 }
 0x867   : > { %v3916_v34 = vld [vmem:[%s6001_s13 + $0x8] sm:$0xff]  ;;  %v3915_v36 = vld [vmem:[%s6001_s13] sm:$0xff] }
 0x868   : > { %3769 = vst.msk [vmem:[%s6001_s13 + $0x28] sm:$0xff] %vm552_vm0, %v3753_v3  ;;  %3768 = vst.msk [vmem:[%s6001_s13 + $0x20] sm:$0xff] %vm552_vm0, %v3752_v4 }
 0x869   : > { %v3715_v5 = vpop.permute.xlu1 %3714  ;;  %v3713_v7 = vpop.permute.xlu0 %3712 }
 0x86a   : > { %v3755_v9 = vadd.f32 %v3715_v5, %v3675_v6  ;;  %v3754_v10 = vadd.f32 %v3713_v7, %v3674_v8 }
 0x86b   : > { %v3918_v40 = vld [vmem:[%s6001_s13 + $0x18] sm:$0xff]  ;;  %v3917_v42 = vld [vmem:[%s6001_s13 + $0x10] sm:$0xff] }
 0x86c   : > { %3771 = vst.msk [vmem:[%s6001_s13 + $0x38] sm:$0xff] %vm552_vm0, %v3755_v9  ;;  %3770 = vst.msk [vmem:[%s6001_s13 + $0x30] sm:$0xff] %vm552_vm0, %v3754_v10 }
 0x86d   : > { %v3719_v11 = vpop.permute.xlu1 %3718  ;;  %v3717_v12 = vpop.permute.xlu0 %3716 }
 0x86e   : > { %v3757_v14 = vadd.f32 %v3719_v11, %v3677_v62  ;;  %v3756_v15 = vadd.f32 %v3717_v12, %v3676_v13 }
 0x86f   : > { %v3920_v46 = vld [vmem:[%s6001_s13 + $0x28] sm:$0xff]  ;;  %v3919_v48 = vld [vmem:[%s6001_s13 + $0x20] sm:$0xff] }
 0x870   : > { %3773 = vst.msk [vmem:[%s6001_s13 + $0x48] sm:$0xff] %vm552_vm0, %v3757_v14  ;;  %3772 = vst.msk [vmem:[%s6001_s13 + $0x40] sm:$0xff] %vm552_vm0, %v3756_v15 }
 0x871   : > { %v3723_v16 = vpop.permute.xlu1 %3722  ;;  %v3721_v18 = vpop.permute.xlu0 %3720 }
 0x872   : > { %v3759_v19 = vadd.f32 %v3723_v16, %v3679_v17  ;;  %v3758_v20 = vadd.f32 %v3721_v18, %v3678_v56 }
 0x873   : > { %v3922_v57 = vld [vmem:[%s6001_s13 + $0x38] sm:$0xff]  ;;  %v3921_v59 = vld [vmem:[%s6001_s13 + $0x30] sm:$0xff] }
 0x874   : > { %3775 = vst.msk [vmem:[%s6001_s13 + $0x58] sm:$0xff] %vm552_vm0, %v3759_v19  ;;  %3774 = vst.msk [vmem:[%s6001_s13 + $0x50] sm:$0xff] %vm552_vm0, %v3758_v20 }
 0x875   : > { %v3727_v21 = vpop.permute.xlu1 %3726  ;;  %v3725_v23 = vpop.permute.xlu0 %3724 }
 0x876   : > { %v3761_v25 = vadd.f32 %v3727_v21, %v3681_v22  ;;  %v3760_v26 = vadd.f32 %v3725_v23, %v3680_v24 }
 0x877   : > { %v3924_v6 = vld [vmem:[%s6001_s13 + $0x48] sm:$0xff]  ;;  %v3923_v8 = vld [vmem:[%s6001_s13 + $0x40] sm:$0xff] }
 0x878   : > { %3777 = vst.msk [vmem:[%s6001_s13 + $0x68] sm:$0xff] %vm552_vm0, %v3761_v25  ;;  %3776 = vst.msk [vmem:[%s6001_s13 + $0x60] sm:$0xff] %vm552_vm0, %v3760_v26 }
 0x879   : > { %v3731_v27 = vpop.permute.xlu1 %3730  ;;  %v3729_v29 = vpop.permute.xlu0 %3728 }
 0x87a   : > { %v3763_v31 = vadd.f32 %v3731_v27, %v3683_v28  ;;  %v3762_v32 = vadd.f32 %v3729_v29, %v3682_v30 }
 0x87b   : > { %v3926_v17 = vld [vmem:[%s6001_s13 + $0x58] sm:$0xff]  ;;  %v3925_v56 = vld [vmem:[%s6001_s13 + $0x50] sm:$0xff] }
 0x87c   : > { %3779 = vst.msk [vmem:[%s6001_s13 + $0x78] sm:$0xff] %vm552_vm0, %v3763_v31  ;;  %3778 = vst.msk [vmem:[%s6001_s13 + $0x70] sm:$0xff] %vm552_vm0, %v3762_v32 }
 0x87d   : > { %v3950_v33 = vpop.permute.xlu1 %3949  ;;  %v3948_v35 = vpop.permute.xlu0 %3947 }
 0x87e   : > { %v3996_v37 = vadd.f32 %v3950_v33, %v3916_v34  ;;  %v3995_v38 = vadd.f32 %v3948_v35, %v3915_v36 }
 0x87f   : > { %v3928_v28 = vld [vmem:[%s6001_s13 + $0x68] sm:$0xff]  ;;  %v3927_v30 = vld [vmem:[%s6001_s13 + $0x60] sm:$0xff] }
 0x880   : > { %4012 = vst.msk [vmem:[%s6001_s13 + $0x8] sm:$0xff] %vm552_vm0, %v3996_v37  ;;  %4011 = vst.msk [vmem:[%s6001_s13] sm:$0xff] %vm552_vm0, %v3995_v38 }
 0x881   : > { %v3954_v39 = vpop.permute.xlu1 %3953  ;;  %v3952_v41 = vpop.permute.xlu0 %3951 }
 0x882   : > { %v3998_v43 = vadd.f32 %v3954_v39, %v3918_v40  ;;  %v3997_v44 = vadd.f32 %v3952_v41, %v3917_v42 }
 0x883   : > { %v3930_v40 = vld [vmem:[%s6001_s13 + $0x78] sm:$0xff]  ;;  %v3929_v42 = vld [vmem:[%s6001_s13 + $0x70] sm:$0xff] }
 0x884   : > { %4014 = vst.msk [vmem:[%s6001_s13 + $0x18] sm:$0xff] %vm552_vm0, %v3998_v43  ;;  %4013 = vst.msk [vmem:[%s6001_s13 + $0x10] sm:$0xff] %vm552_vm0, %v3997_v44 }
 0x885   : > { %v3958_v45 = vpop.permute.xlu1 %3957  ;;  %v3956_v47 = vpop.permute.xlu0 %3955 }
 0x886   : > { %v4000_v49 = vadd.f32 %v3958_v45, %v3920_v46  ;;  %v3999_v50 = vadd.f32 %v3956_v47, %v3919_v48 }
 0x887   : > { %v4028_v51 = vld [vmem:[%s6001_s13 + $0x8] sm:$0xff]  ;;  %v4027_v52 = vld [vmem:[%s6001_s13] sm:$0xff] }
 0x888   : > { %vm4044_vm1 = vcmp.gt.f32.partialorder %v4028_v51, 0.0  ;;  %v4060_v53 = vmul.f32 0.1, %v4028_v51  ;;  %vm4043_vm2 = vcmp.gt.f32.partialorder %v4027_v52, 0.0  ;;  %v4059_v54 = vmul.f32 0.1, %v4027_v52 }
 0x889   : > { %4016 = vst.msk [vmem:[%s6001_s13 + $0x28] sm:$0xff] %vm552_vm0, %v4000_v49  ;;  %4015 = vst.msk [vmem:[%s6001_s13 + $0x20] sm:$0xff] %vm552_vm0, %v3999_v50  ;;  %v3962_v55 = vpop.permute.xlu1 %3961  ;;  %v3960_v58 = vpop.permute.xlu0 %3959 }
 0x88a   : > { %v4076_v60 = vsel %vm4044_vm1, %v4028_v51, %v4060_v53  ;;  %v4075_v61 = vsel %vm4043_vm2, %v4027_v52, %v4059_v54  ;;  %v4002_v63 = vadd.f32 %v3962_v55, %v3922_v57  ;;  %v4001_v0 = vadd.f32 %v3960_v58, %v3921_v59 }
 0x88b   : > { %4092 = vst.msk [vmem:[%s7438_s11 + $0x8] sm:$0xff] %vm552_vm0, %v4076_v60  ;;  %4091 = vst.msk [vmem:[%s7438_s11] sm:$0xff] %vm552_vm0, %v4075_v61  ;;  %v4030_v1 = vld [vmem:[%s6001_s13 + $0x18] sm:$0xff]  ;;  %v4029_v2 = vld [vmem:[%s6001_s13 + $0x10] sm:$0xff] }
 0x88c   : > { %vm4046_vm3 = vcmp.gt.f32.partialorder %v4030_v1, 0.0  ;;  %v4062_v3 = vmul.f32 0.1, %v4030_v1  ;;  %vm4045_vm4 = vcmp.gt.f32.partialorder %v4029_v2, 0.0  ;;  %v4061_v4 = vmul.f32 0.1, %v4029_v2 }
 0x88d   : > { %4018 = vst.msk [vmem:[%s6001_s13 + $0x38] sm:$0xff] %vm552_vm0, %v4002_v63  ;;  %4017 = vst.msk [vmem:[%s6001_s13 + $0x30] sm:$0xff] %vm552_vm0, %v4001_v0  ;;  %v3966_v5 = vpop.permute.xlu1 %3965  ;;  %v3964_v7 = vpop.permute.xlu0 %3963 }
 0x88e   : > { %v4078_v9 = vsel %vm4046_vm3, %v4030_v1, %v4062_v3  ;;  %v4077_v10 = vsel %vm4045_vm4, %v4029_v2, %v4061_v4  ;;  %v4004_v11 = vadd.f32 %v3966_v5, %v3924_v6  ;;  %v4003_v62 = vadd.f32 %v3964_v7, %v3923_v8 }
 0x88f   : > { %4094 = vst.msk [vmem:[%s7438_s11 + $0x18] sm:$0xff] %vm552_vm0, %v4078_v9  ;;  %4093 = vst.msk [vmem:[%s7438_s11 + $0x10] sm:$0xff] %vm552_vm0, %v4077_v10 }
 0x890   : > { %v4032_v12 = vld [vmem:[%s6001_s13 + $0x28] sm:$0xff]  ;;  %v4031_v13 = vld [vmem:[%s6001_s13 + $0x20] sm:$0xff]  ;;  %4020 = vst.msk [vmem:[%s6001_s13 + $0x48] sm:$0xff] %vm552_vm0, %v4004_v11  ;;  %4019 = vst.msk [vmem:[%s6001_s13 + $0x40] sm:$0xff] %vm552_vm0, %v4003_v62 }
 0x891   : > { %vm4048_vm5 = vcmp.gt.f32.partialorder %v4032_v12, 0.0  ;;  %v4064_v14 = vmul.f32 0.1, %v4032_v12  ;;  %vm4047_vm6 = vcmp.gt.f32.partialorder %v4031_v13, 0.0  ;;  %v4063_v15 = vmul.f32 0.1, %v4031_v13  ;;  %v3970_v16 = vpop.permute.xlu1 %3969  ;;  %v3968_v18 = vpop.permute.xlu0 %3967 }
 0x892   : > { %v4006_v21 = vadd.f32 %v3970_v16, %v3926_v17  ;;  %v4005_v22 = vadd.f32 %v3968_v18, %v3925_v56 }
 0x893   : > { %v4080_v19 = vsel %vm4048_vm5, %v4032_v12, %v4064_v14  ;;  %v4079_v20 = vsel %vm4047_vm6, %v4031_v13, %v4063_v15 }
 0x894   : > { %4096 = vst.msk [vmem:[%s7438_s11 + $0x28] sm:$0xff] %vm552_vm0, %v4080_v19  ;;  %4095 = vst.msk [vmem:[%s7438_s11 + $0x20] sm:$0xff] %vm552_vm0, %v4079_v20  ;;  %v4034_v23 = vld [vmem:[%s6001_s13 + $0x38] sm:$0xff]  ;;  %v4033_v24 = vld [vmem:[%s6001_s13 + $0x30] sm:$0xff] }
 0x895   : > { %vm4050_vm7 = vcmp.gt.f32.partialorder %v4034_v23, 0.0  ;;  %v4066_v25 = vmul.f32 0.1, %v4034_v23  ;;  %vm4049_vm8 = vcmp.gt.f32.partialorder %v4033_v24, 0.0  ;;  %v4065_v26 = vmul.f32 0.1, %v4033_v24  ;;  %v3974_v27 = vpop.permute.xlu1 %3973  ;;  %v3972_v29 = vpop.permute.xlu0 %3971 }
 0x896   : > { %4022 = vst.msk [vmem:[%s6001_s13 + $0x58] sm:$0xff] %vm552_vm0, %v4006_v21  ;;  %4021 = vst.msk [vmem:[%s6001_s13 + $0x50] sm:$0xff] %vm552_vm0, %v4005_v22  ;;  %v4008_v33 = vadd.f32 %v3974_v27, %v3928_v28  ;;  %v4007_v34 = vadd.f32 %v3972_v29, %v3927_v30 }
 0x897   : > { %v4082_v31 = vsel %vm4050_vm7, %v4034_v23, %v4066_v25  ;;  %v4081_v32 = vsel %vm4049_vm8, %v4033_v24, %v4065_v26  ;;  %v4036_v35 = vld [vmem:[%s6001_s13 + $0x48] sm:$0xff]  ;;  %v4035_v36 = vld [vmem:[%s6001_s13 + $0x40] sm:$0xff] }
 0x898   : > { %4098 = vst.msk [vmem:[%s7438_s11 + $0x38] sm:$0xff] %vm552_vm0, %v4082_v31  ;;  %4097 = vst.msk [vmem:[%s7438_s11 + $0x30] sm:$0xff] %vm552_vm0, %v4081_v32  ;;  %vm4052_vm9 = vcmp.gt.f32.partialorder %v4036_v35, 0.0  ;;  %v4068_v37 = vmul.f32 0.1, %v4036_v35  ;;  %vm4051_vm10 = vcmp.gt.f32.partialorder %v4035_v36, 0.0 }
 0x899   : > { %v4067_v38 = vmul.f32 0.1, %v4035_v36  ;;  %4024 = vst.msk [vmem:[%s6001_s13 + $0x68] sm:$0xff] %vm552_vm0, %v4008_v33  ;;  %4023 = vst.msk [vmem:[%s6001_s13 + $0x60] sm:$0xff] %vm552_vm0, %v4007_v34  ;;  %v3978_v39 = vpop.permute.xlu1 %3977  ;;  %v3976_v41 = vpop.permute.xlu0 %3975 }
 0x89a   : > { %v4084_v43 = vsel %vm4052_vm9, %v4036_v35, %v4068_v37  ;;  %v4010_v45 = vadd.f32 %v3978_v39, %v3930_v40  ;;  %v4009_v46 = vadd.f32 %v3976_v41, %v3929_v42 }
 0x89b   : > { %v4083_v44 = vsel %vm4051_vm10, %v4035_v36, %v4067_v38  ;;  %4100 = vst.msk [vmem:[%s7438_s11 + $0x48] sm:$0xff] %vm552_vm0, %v4084_v43 }
 0x89c   : > { %4099 = vst.msk [vmem:[%s7438_s11 + $0x40] sm:$0xff] %vm552_vm0, %v4083_v44  ;;  %4026 = vst.msk [vmem:[%s6001_s13 + $0x78] sm:$0xff] %vm552_vm0, %v4010_v45 }
 0x89d   : > { %v4038_v47 = vld [vmem:[%s6001_s13 + $0x58] sm:$0xff]  ;;  %v4037_v48 = vld [vmem:[%s6001_s13 + $0x50] sm:$0xff]  ;;  %4025 = vst.msk [vmem:[%s6001_s13 + $0x70] sm:$0xff] %vm552_vm0, %v4009_v46 }
 0x89e   : > { %vm4054_vm11 = vcmp.gt.f32.partialorder %v4038_v47, 0.0  ;;  %v4070_v49 = vmul.f32 0.1, %v4038_v47  ;;  %vm4053_vm12 = vcmp.gt.f32.partialorder %v4037_v48, 0.0  ;;  %v4069_v50 = vmul.f32 0.1, %v4037_v48 }
 0x8a0   : > { %v4086_v51 = vsel %vm4054_vm11, %v4038_v47, %v4070_v49  ;;  %v4085_v52 = vsel %vm4053_vm12, %v4037_v48, %v4069_v50  ;;  %v4040_v53 = vld [vmem:[%s6001_s13 + $0x68] sm:$0xff]  ;;  %v4039_v54 = vld [vmem:[%s6001_s13 + $0x60] sm:$0xff] }
 0x8a1   : > { %4102 = vst.msk [vmem:[%s7438_s11 + $0x58] sm:$0xff] %vm552_vm0, %v4086_v51  ;;  %4101 = vst.msk [vmem:[%s7438_s11 + $0x50] sm:$0xff] %vm552_vm0, %v4085_v52  ;;  %vm4056_vm13 = vcmp.gt.f32.partialorder %v4040_v53, 0.0  ;;  %v4072_v55 = vmul.f32 0.1, %v4040_v53  ;;  %vm4055_vm14 = vcmp.gt.f32.partialorder %v4039_v54, 0.0 }
 0x8a2   : > { %v4071_v57 = vmul.f32 0.1, %v4039_v54 }
 0x8a3   : > { %v4088_v58 = vsel %vm4056_vm13, %v4040_v53, %v4072_v55  ;;  %v4042_v60 = vld [vmem:[%s6001_s13 + $0x78] sm:$0xff] }
 0x8a4   : > { %v4087_v59 = vsel %vm4055_vm14, %v4039_v54, %v4071_v57  ;;  %4104 = vst.msk [vmem:[%s7438_s11 + $0x68] sm:$0xff] %vm552_vm0, %v4088_v58  ;;  %v4041_v61 = vld [vmem:[%s6001_s13 + $0x70] sm:$0xff]  ;;  %vm4058_vm15 = vcmp.gt.f32.partialorder %v4042_v60, 0.0  ;;  %v4074_v63 = vmul.f32 0.1, %v4042_v60 }
 0x8a5   : > { %4103 = vst.msk [vmem:[%s7438_s11 + $0x60] sm:$0xff] %vm552_vm0, %v4087_v59  ;;  %vm4057_vm1 = vcmp.gt.f32.partialorder %v4041_v61, 0.0  ;;  %v4073_v0 = vmul.f32 0.1, %v4041_v61 }
 0x8a6   : > { %v4090_v1 = vsel %vm4058_vm15, %v4042_v60, %v4074_v63 }
 0x8a7   : > { %v4089_v2 = vsel %vm4057_vm1, %v4041_v61, %v4073_v0  ;;  %4106 = vst.msk [vmem:[%s7438_s11 + $0x78] sm:$0xff] %vm552_vm0, %v4090_v1 }
 0x8a8   : > { %4105 = vst.msk [vmem:[%s7438_s11 + $0x70] sm:$0xff] %vm552_vm0, %v4089_v2 }
 0x8a9 PF: > { %s15_s17 = sadd.s32 1, %s5789_s17   ;;  %s7534_s15 = smov %s5785_s16 }
 0x8aa   : > { %p12_p5 = scmp.ge.s32.totalorder %s15_s17, 4   ;;  %s7535_s16 = smov %s7537_s18 }
 0x8ac   :  { %14 = sbr.rel (!%p12_p5) target bundleno = 2 (0x2), region = 94 }

</bundles_post_ra>
